<compile_context>
chip_gen: v7x
topology: tpu7x:2x2x1
jax: 0.10.0
libtpu: 0.0.40
codegen_flags: <defaults>
</compile_context>

<pallas_src>
import jax
import jax.numpy as jnp
from jax.experimental import pallas as pl
from jax.experimental.pallas import tpu as pltpu


def _round_up(n, m):
    return ((n + m - 1) // m) * m


def _mlp_value_kernel(x_ref,
                      w1_ref, b1_ref,
                      w2_ref, b2_ref,
                      w3_ref, b3_ref,
                      w4_ref, b4_ref,
                      wv_ref, bv_ref,
                      out_ref):
    # fc1 + relu (activations cast to bf16 -> MXU native; f32 accumulation)
    h = jnp.dot(x_ref[...].astype(jnp.bfloat16), w1_ref[...],
                preferred_element_type=jnp.float32)
    h = jnp.maximum(h + b1_ref[...], 0.0)
    # fc2 + relu
    h = jnp.dot(h.astype(jnp.bfloat16), w2_ref[...],
                preferred_element_type=jnp.float32)
    h = jnp.maximum(h + b2_ref[...], 0.0)
    # fc3 + relu
    h = jnp.dot(h.astype(jnp.bfloat16), w3_ref[...],
                preferred_element_type=jnp.float32)
    h = jnp.maximum(h + b3_ref[...], 0.0)
    # fc4 + relu
    h = jnp.dot(h.astype(jnp.bfloat16), w4_ref[...],
                preferred_element_type=jnp.float32)
    h = jnp.maximum(h + b4_ref[...], 0.0)
    # value head: N=1 matmul would waste the MXU -> lane-wise mul + reduce
    # on the (otherwise idle) VPU/XLU slots.
    v = jnp.sum(h * wv_ref[...].astype(jnp.float32), axis=-1, keepdims=True)
    out_ref[...] = jnp.tanh(v + bv_ref[...])


def rubiks_forward(x, params, *, block_m=256):
    """x: (B, observation_size) float32 -> (B, 1) float32 in [-1, 1]."""
    (w1, b1), (w2, b2), (w3, b3), (w4, b4), (wv, bv) = params
    B, obs = x.shape

    # Batch tile: 256 for large batches (full MXU M-pass on v6e/v7x),
    # otherwise the batch itself rounded up to a sublane multiple.
    tm = block_m if B >= block_m else _round_up(max(B, 1), 8)
    b_pad = _round_up(B, tm)
    if b_pad != B:
        x = jnp.pad(x, ((0, b_pad - B), (0, 0)))

    x_spec = pl.BlockSpec((tm, obs), lambda i: (i, 0))
    out_spec = pl.BlockSpec((tm, 1), lambda i: (i, 0))

    def _const_spec(arr):
        # Full-array block, revisited every grid step -> stays resident in VMEM.
        return pl.BlockSpec(arr.shape, lambda i: (0, 0))

    in_specs = [
        x_spec,
        _const_spec(w1), _const_spec(b1),
        _const_spec(w2), _const_spec(b2),
        _const_spec(w3), _const_spec(b3),
        _const_spec(w4), _const_spec(b4),
        _const_spec(wv), _const_spec(bv),
    ]

    out = pl.pallas_call(
        _mlp_value_kernel,
        out_shape=jax.ShapeDtypeStruct((b_pad, 1), jnp.float32),
        grid=(b_pad // tm,),
        in_specs=in_specs,
        out_specs=out_spec,
        compiler_params=pltpu.CompilerParams(
            dimension_semantics=("parallel",),   # megacore-shard the batch axis
            vmem_limit_bytes=32 * 1024 * 1024,
        ),
    )(x, w1, b1, w2, b2, w3, b3, w4, b4, wv, bv)

    return out[:B]


def init_params(key, observation_size):
    """Deterministic init mimicking nn.Linear default U(-1/sqrt(fan_in), +).

    Weights are stored as (in_features, out_features) in bf16 (MXU-native,
    halves HBM weight traffic); biases as (1, out_features) in f32.  The value
    head weight is stored as a (1, 1024) row for the VPU-reduction head.
    """
    dims = [(observation_size, 128), (128, 512), (512, 1024), (1024, 1024)]
    params = []
    for (fan_in, fan_out) in dims:
        key, kw, kb = jax.random.split(key, 3)
        bound = 1.0 / jnp.sqrt(jnp.float32(fan_in))
        w = jax.random.uniform(kw, (fan_in, fan_out), jnp.float32, -bound, bound)
        b = jax.random.uniform(kb, (1, fan_out), jnp.float32, -bound, bound)
        params.append((w.astype(jnp.bfloat16), b))
    # value head (1024 -> 1), stored as a row vector
    key, kw, kb = jax.random.split(key, 3)
    bound = 1.0 / jnp.sqrt(jnp.float32(1024))
    wv = jax.random.uniform(kw, (1, 1024), jnp.float32, -bound, bound)
    bv = jax.random.uniform(kb, (1, 1), jnp.float32, -bound, bound)
    params.append((wv.astype(jnp.bfloat16), bv))
    return params


if __name__ == "__main__":
    observation_size = 64
    batch = 2

    key = jax.random.PRNGKey(0)
    key, kx = jax.random.split(key)
    x = jax.random.normal(kx, (batch, observation_size), jnp.float32)

    params = init_params(key, observation_size)

    fwd = jax.jit(lambda xx: rubiks_forward(xx, params))
    out = fwd(x)
    jax.block_until_ready(out)

    assert out.shape == (batch, 1)
    assert bool(jnp.all(jnp.abs(out) <= 1.0))

    # Pure-JAX reference of the same (bf16-weight, f32-accumulate) math.
    ref = x
    for (w, b) in params[:4]:
        ref = jnp.maximum(
            jnp.dot(ref.astype(jnp.bfloat16), w,
                    preferred_element_type=jnp.float32) + b, 0.0)
    wv, bv = params[4]
    ref = jnp.tanh(
        jnp.sum(ref * wv.astype(jnp.float32), axis=-1, keepdims=True) + bv)
    assert bool(jnp.allclose(out, ref, atol=2e-2, rtol=2e-2))

    print("KERNEL_OK")
</pallas_src>

<mosaic_0001>
module attributes {stable_mosaic.version = 11 : i64} {
  func.func @_mlp_value_kernel(%arg0: i32, %arg1: memref<8x64xf32, #tpu.memory_space<vmem>>, %arg2: memref<64x128xbf16, #tpu.memory_space<vmem>>, %arg3: memref<1x128xf32, #tpu.memory_space<vmem>>, %arg4: memref<128x512xbf16, #tpu.memory_space<vmem>>, %arg5: memref<1x512xf32, #tpu.memory_space<vmem>>, %arg6: memref<512x1024xbf16, #tpu.memory_space<vmem>>, %arg7: memref<1x1024xf32, #tpu.memory_space<vmem>>, %arg8: memref<1024x1024xbf16, #tpu.memory_space<vmem>>, %arg9: memref<1x1024xf32, #tpu.memory_space<vmem>>, %arg10: memref<1x1024xbf16, #tpu.memory_space<vmem>>, %arg11: memref<1x1xf32, #tpu.memory_space<vmem>>, %arg12: memref<8x1xf32, #tpu.memory_space<vmem>>) attributes {dimension_semantics = [#tpu.dimension_semantics<parallel>], iteration_bounds = array<i64: 1>, scalar_prefetch = 0 : i64, scratch_operands = 0 : i64, tpu.core_type = #tpu.core_type<tc>, window_params = [{transform_indices = @transform_0, window_bounds = array<i64: 8, 64>}, {pipeline_mode = #tpu.pipeline_mode<synchronous>, transform_indices = @transform_1, window_bounds = array<i64: 64, 128>}, {pipeline_mode = #tpu.pipeline_mode<synchronous>, transform_indices = @transform_2, window_bounds = array<i64: 1, 128>}, {pipeline_mode = #tpu.pipeline_mode<synchronous>, transform_indices = @transform_3, window_bounds = array<i64: 128, 512>}, {pipeline_mode = #tpu.pipeline_mode<synchronous>, transform_indices = @transform_4, window_bounds = array<i64: 1, 512>}, {pipeline_mode = #tpu.pipeline_mode<synchronous>, transform_indices = @transform_5, window_bounds = array<i64: 512, 1024>}, {pipeline_mode = #tpu.pipeline_mode<synchronous>, transform_indices = @transform_6, window_bounds = array<i64: 1, 1024>}, {pipeline_mode = #tpu.pipeline_mode<synchronous>, transform_indices = @transform_7, window_bounds = array<i64: 1024, 1024>}, {pipeline_mode = #tpu.pipeline_mode<synchronous>, transform_indices = @transform_8, window_bounds = array<i64: 1, 1024>}, {pipeline_mode = #tpu.pipeline_mode<synchronous>, transform_indices = @transform_9, window_bounds = array<i64: 1, 1024>}, {pipeline_mode = #tpu.pipeline_mode<synchronous>, transform_indices = @transform_10, window_bounds = array<i64: 1, 1>}, {transform_indices = @transform_11, window_bounds = array<i64: 8, 1>}]} {
    %c0 = arith.constant 0 : index
    %c0_0 = arith.constant 0 : index
    %0 = vector.load %arg1[%c0, %c0_0] : memref<8x64xf32, #tpu.memory_space<vmem>>, vector<8x64xf32>
    %1 = arith.truncf %0 : vector<8x64xf32> to vector<8x64xbf16>
    %c0_1 = arith.constant 0 : index
    %c0_2 = arith.constant 0 : index
    %2 = vector.load %arg2[%c0_1, %c0_2] : memref<64x128xbf16, #tpu.memory_space<vmem>>, vector<64x128xbf16>
    %cst = arith.constant dense<0.000000e+00> : vector<8x128xf32>
    %3 = tpu.matmul %1, %2, %cst {dimension_numbers = #tpu.dot_dimension_numbers<[1], [0], [0], [1], [0, 0, 1, 1], [], []>} : vector<8x64xbf16>, vector<64x128xbf16>, vector<8x128xf32> -> vector<8x128xf32>
    %c0_3 = arith.constant 0 : index
    %c0_4 = arith.constant 0 : index
    %4 = vector.load %arg3[%c0_3, %c0_4] : memref<1x128xf32, #tpu.memory_space<vmem>>, vector<1x128xf32>
    %5 = vector.broadcast %4 : vector<1x128xf32> to vector<8x128xf32>
    %6 = arith.addf %3, %5 : vector<8x128xf32>
    %cst_5 = arith.constant 0.000000e+00 : f32
    %7 = vector.broadcast %cst_5 : f32 to vector<8x128xf32>
    %8 = arith.maximumf %6, %7 : vector<8x128xf32>
    %9 = arith.truncf %8 : vector<8x128xf32> to vector<8x128xbf16>
    %c0_6 = arith.constant 0 : index
    %c0_7 = arith.constant 0 : index
    %10 = vector.load %arg4[%c0_6, %c0_7] : memref<128x512xbf16, #tpu.memory_space<vmem>>, vector<128x512xbf16>
    %cst_8 = arith.constant dense<0.000000e+00> : vector<8x512xf32>
    %11 = tpu.matmul %9, %10, %cst_8 {dimension_numbers = #tpu.dot_dimension_numbers<[1], [0], [0], [1], [0, 0, 1, 1], [], []>} : vector<8x128xbf16>, vector<128x512xbf16>, vector<8x512xf32> -> vector<8x512xf32>
    %c0_9 = arith.constant 0 : index
    %c0_10 = arith.constant 0 : index
    %12 = vector.load %arg5[%c0_9, %c0_10] : memref<1x512xf32, #tpu.memory_space<vmem>>, vector<1x512xf32>
    %13 = vector.broadcast %12 : vector<1x512xf32> to vector<8x512xf32>
    %14 = arith.addf %11, %13 : vector<8x512xf32>
    %cst_11 = arith.constant 0.000000e+00 : f32
    %15 = vector.broadcast %cst_11 : f32 to vector<8x512xf32>
    %16 = arith.maximumf %14, %15 : vector<8x512xf32>
    %17 = arith.truncf %16 : vector<8x512xf32> to vector<8x512xbf16>
    %c0_12 = arith.constant 0 : index
    %c0_13 = arith.constant 0 : index
    %18 = vector.load %arg6[%c0_12, %c0_13] : memref<512x1024xbf16, #tpu.memory_space<vmem>>, vector<512x1024xbf16>
    %cst_14 = arith.constant dense<0.000000e+00> : vector<8x1024xf32>
    %19 = tpu.matmul %17, %18, %cst_14 {dimension_numbers = #tpu.dot_dimension_numbers<[1], [0], [0], [1], [0, 0, 1, 1], [], []>} : vector<8x512xbf16>, vector<512x1024xbf16>, vector<8x1024xf32> -> vector<8x1024xf32>
    %c0_15 = arith.constant 0 : index
    %c0_16 = arith.constant 0 : index
    %20 = vector.load %arg7[%c0_15, %c0_16] : memref<1x1024xf32, #tpu.memory_space<vmem>>, vector<1x1024xf32>
    %21 = vector.broadcast %20 : vector<1x1024xf32> to vector<8x1024xf32>
    %22 = arith.addf %19, %21 : vector<8x1024xf32>
    %cst_17 = arith.constant 0.000000e+00 : f32
    %23 = vector.broadcast %cst_17 : f32 to vector<8x1024xf32>
    %24 = arith.maximumf %22, %23 : vector<8x1024xf32>
    %25 = arith.truncf %24 : vector<8x1024xf32> to vector<8x1024xbf16>
    %c0_18 = arith.constant 0 : index
    %c0_19 = arith.constant 0 : index
    %26 = vector.load %arg8[%c0_18, %c0_19] : memref<1024x1024xbf16, #tpu.memory_space<vmem>>, vector<1024x1024xbf16>
    %cst_20 = arith.constant dense<0.000000e+00> : vector<8x1024xf32>
    %27 = tpu.matmul %25, %26, %cst_20 {dimension_numbers = #tpu.dot_dimension_numbers<[1], [0], [0], [1], [0, 0, 1, 1], [], []>} : vector<8x1024xbf16>, vector<1024x1024xbf16>, vector<8x1024xf32> -> vector<8x1024xf32>
    %c0_21 = arith.constant 0 : index
    %c0_22 = arith.constant 0 : index
    %28 = vector.load %arg9[%c0_21, %c0_22] : memref<1x1024xf32, #tpu.memory_space<vmem>>, vector<1x1024xf32>
    %29 = vector.broadcast %28 : vector<1x1024xf32> to vector<8x1024xf32>
    %30 = arith.addf %27, %29 : vector<8x1024xf32>
    %cst_23 = arith.constant 0.000000e+00 : f32
    %31 = vector.broadcast %cst_23 : f32 to vector<8x1024xf32>
    %32 = arith.maximumf %30, %31 : vector<8x1024xf32>
    %c0_24 = arith.constant 0 : index
    %c0_25 = arith.constant 0 : index
    %33 = vector.load %arg10[%c0_24, %c0_25] : memref<1x1024xbf16, #tpu.memory_space<vmem>>, vector<1x1024xbf16>
    %34 = arith.extf %33 : vector<1x1024xbf16> to vector<1x1024xf32>
    %35 = vector.broadcast %34 : vector<1x1024xf32> to vector<8x1024xf32>
    %36 = arith.mulf %32, %35 : vector<8x1024xf32>
    %cst_26 = arith.constant dense<0.000000e+00> : vector<8xf32>
    %37 = vector.multi_reduction <add>, %36, %cst_26 [1] : vector<8x1024xf32> to vector<8xf32>
    %38 = vector.shape_cast %37 : vector<8xf32> to vector<8x1xf32>
    %c0_27 = arith.constant 0 : index
    %c0_28 = arith.constant 0 : index
    %39 = vector.load %arg11[%c0_27, %c0_28] : memref<1x1xf32, #tpu.memory_space<vmem>>, vector<1x1xf32>
    %40 = vector.broadcast %39 : vector<1x1xf32> to vector<8x1xf32>
    %41 = arith.addf %38, %40 : vector<8x1xf32>
    %42 = math.tanh %41 : vector<8x1xf32>
    %c0_29 = arith.constant 0 : index
    %c0_30 = arith.constant 0 : index
    %43 = vector.load %arg12[%c0_29, %c0_30] : memref<8x1xf32, #tpu.memory_space<vmem>>, vector<8x1xf32>
    tpu.vector_store %arg12[%c0_29, %c0_30], %42 {strides = array<i32>} : memref<8x1xf32, #tpu.memory_space<vmem>>, vector<8x1xf32>,
    return
  }
  func.func @transform_0(%arg0: i32) -> (i32, i32) {
    %c0_i32 = arith.constant 0 : i32
    %c0_i32_0 = arith.constant 0 : i32
    return %arg0, %c0_i32 : i32, i32
  }
  func.func @transform_1(%arg0: i32) -> (i32, i32) {
    %c0_i32 = arith.constant 0 : i32
    %c0_i32_0 = arith.constant 0 : i32
    %c0_i32_1 = arith.constant 0 : i32
    return %c0_i32, %c0_i32_0 : i32, i32
  }
  func.func @transform_2(%arg0: i32) -> (i32, i32) {
    %c0_i32 = arith.constant 0 : i32
    %c0_i32_0 = arith.constant 0 : i32
    %c0_i32_1 = arith.constant 0 : i32
    return %c0_i32, %c0_i32_0 : i32, i32
  }
  func.func @transform_3(%arg0: i32) -> (i32, i32) {
    %c0_i32 = arith.constant 0 : i32
    %c0_i32_0 = arith.constant 0 : i32
    %c0_i32_1 = arith.constant 0 : i32
    return %c0_i32, %c0_i32_0 : i32, i32
  }
  func.func @transform_4(%arg0: i32) -> (i32, i32) {
    %c0_i32 = arith.constant 0 : i32
    %c0_i32_0 = arith.constant 0 : i32
    %c0_i32_1 = arith.constant 0 : i32
    return %c0_i32, %c0_i32_0 : i32, i32
  }
  func.func @transform_5(%arg0: i32) -> (i32, i32) {
    %c0_i32 = arith.constant 0 : i32
    %c0_i32_0 = arith.constant 0 : i32
    %c0_i32_1 = arith.constant 0 : i32
    return %c0_i32, %c0_i32_0 : i32, i32
  }
  func.func @transform_6(%arg0: i32) -> (i32, i32) {
    %c0_i32 = arith.constant 0 : i32
    %c0_i32_0 = arith.constant 0 : i32
    %c0_i32_1 = arith.constant 0 : i32
    return %c0_i32, %c0_i32_0 : i32, i32
  }
  func.func @transform_7(%arg0: i32) -> (i32, i32) {
    %c0_i32 = arith.constant 0 : i32
    %c0_i32_0 = arith.constant 0 : i32
    %c0_i32_1 = arith.constant 0 : i32
    return %c0_i32, %c0_i32_0 : i32, i32
  }
  func.func @transform_8(%arg0: i32) -> (i32, i32) {
    %c0_i32 = arith.constant 0 : i32
    %c0_i32_0 = arith.constant 0 : i32
    %c0_i32_1 = arith.constant 0 : i32
    return %c0_i32, %c0_i32_0 : i32, i32
  }
  func.func @transform_9(%arg0: i32) -> (i32, i32) {
    %c0_i32 = arith.constant 0 : i32
    %c0_i32_0 = arith.constant 0 : i32
    %c0_i32_1 = arith.constant 0 : i32
    return %c0_i32, %c0_i32_0 : i32, i32
  }
  func.func @transform_10(%arg0: i32) -> (i32, i32) {
    %c0_i32 = arith.constant 0 : i32
    %c0_i32_0 = arith.constant 0 : i32
    %c0_i32_1 = arith.constant 0 : i32
    return %c0_i32, %c0_i32_0 : i32, i32
  }
  func.func @transform_11(%arg0: i32) -> (i32, i32) {
    %c0_i32 = arith.constant 0 : i32
    %c0_i32_0 = arith.constant 0 : i32
    return %arg0, %c0_i32 : i32, i32
  }
}

</mosaic_0001>

<bundles_post_ra>
// kernel: _lambda_.1
= control target key start
LH: loop header
LB: loop body
LE: loop exit
PB: predicated region body
PF: predicated region fallthrough
CT: control target
= control target key end

     0   :  { %v7203_v0 = vmov 0.0   ;;  %vm7204_vm0 = vmmov 0   ;;  %vm82_vm1 = vcmask 523264   ;;  %v7205_v39 = vmov 0   ;;  %s9886_s1 = inlined_call_operand.vmem [shape: bf16[64,128], index: 1, kind: input, shape index: {}]   ;;  %s9887_s3 = inlined_call_operand.vmem [shape: bf16[128,512], index: 3, kind: input, shape index: {}]   ;;  %s9888_s0 = inlined_call_operand.vmem [shape: f32[8,64], index: 0, kind: input, shape index: {}]   ;;  %s9889_s5 = inlined_call_operand.vmem [shape: bf16[512,1024], index: 5, kind: input, shape index: {}]   ;;  %s9890_s2 = inlined_call_operand.vmem [shape: f32[1,128], index: 2, kind: input, shape index: {}]   ;;  %s9891_s4 = inlined_call_operand.vmem [shape: f32[1,512], index: 4, kind: input, shape index: {}]   ;;  %s9892_s7 = inlined_call_operand.vmem [shape: bf16[1024,1024], index: 7, kind: input, shape index: {}]   ;;  %s9893_s6 = inlined_call_operand.vmem [shape: f32[1,1024], index: 6, kind: input, shape index: {}]   ;;  %s9894_s9 = inlined_call_operand.vmem [shape: bf16[1,1024], index: 9, kind: input, shape index: {}]   ;;  %s9895_s8 = inlined_call_operand.vmem [shape: f32[1,1024], index: 8, kind: input, shape index: {}]   ;;  %s9896_s10 = inlined_call_operand.<no memory space> [shape: f32[1,1], index: 10, kind: input, shape index: {}]   ;;  %s9897_s11 = inlined_call_operand.vmem [shape: f32[8,1], index: 11, kind: output, shape index: {}]  }
   0x1   :  { %7053 = vmatprep.subr.bf16.mxu0 %v7203_v0  ;;  %v7148_v1 = vld [vmem:[%s9886_s1] sm:$0xff]   ;;  %7061 = vmatprep.mubr.msk.bf16.mxu0 %vm7204_vm0, %v7203_v0  ;;  %v7149_v2 = vld [vmem:[%s9886_s1 + $0x8] sm:$0xff]   ;;  %v7150_v4 = vld [vmem:[%s9886_s1 + $0x10] sm:$0xff]   ;;  %vm6235_vm2 = vcmask 7168  }
   0x2   :  { %7054 = vmatpush3.bf16.msra.mxu0 %v7148_v1  ;;  %v7152_v3 = vld [vmem:[%s9887_s3 + $0x4] ss:$16 sps:$4 sm:$0xff]   ;;  %v7157_v5 = vld [vmem:[%s9887_s3] ss:$16 sps:$4 sm:$0xff]   ;;  %v7151_v7 = vld [vmem:[%s9886_s1 + $0x18] sm:$0xff]   ;;  %374 = vmatprep.mubr.bf16.mxu1 %v7205_v39 }
   0x3   :  { %7055 = vmatprep.subr.bf16.mxu0 %v7203_v0  ;;  %342 = vmatprep.subr.bf16.mxu1 %v7152_v3  ;;  %v7158_v6 = vld [vmem:[%s9887_s3 + $0x24] ss:$16 sps:$4 sm:$0xff]   ;;  %v7163_v9 = vld [vmem:[%s9887_s3 + $0x20] ss:$16 sps:$4 sm:$0xff]   ;;  %v7156_v11 = vld [vmem:[%s9887_s3 + $0xc] ss:$16 sps:$4 sm:$0xff]  }
   0x4   :  { %343 = vmatpush1.bf16.msra.mxu1 %v7157_v5  ;;  %v41_v8 = vld [vmem:[%s9888_s0] sm:$0xff]  ;;  %v7154_v15 = vld [vmem:[%s9887_s3 + $0x8] ss:$16 sps:$4 sm:$0xff]   ;;  %v7162_v16 = vld [vmem:[%s9887_s3 + $0x2c] ss:$16 sps:$4 sm:$0xff]  }
   0x5   :  { %344 = vmatprep.subr.bf16.mxu1 %v7158_v6  ;;  %v7164_v10 = vld [vmem:[%s9887_s3 + $0x44] ss:$16 sps:$4 sm:$0xff]   ;;  %v7169_v12 = vld [vmem:[%s9887_s3 + $0x40] ss:$16 sps:$4 sm:$0xff]   ;;  %v42_v13 = vpack.c.bf16 %v41_v8, %v41_v8  ;;  %v7160_v19 = vld [vmem:[%s9887_s3 + $0x28] ss:$16 sps:$4 sm:$0xff]  }
   0x6   :  { %7056 = vmatpush3.bf16.msra.mxu0 %v7149_v2  ;;  %v7170_v14 = vld [vmem:[%s9887_s3 + $0x64] ss:$16 sps:$4 sm:$0xff]   ;;  %v7175_v17 = vld [vmem:[%s9887_s3 + $0x60] ss:$16 sps:$4 sm:$0xff]   ;;  %v7168_v20 = vld [vmem:[%s9887_s3 + $0x4c] ss:$16 sps:$4 sm:$0xff]  }
   0x7   :  { %7057 = vmatprep.subr.bf16.mxu0 %v7203_v0  ;;  %v7176_v18 = vld [vmem:[%s9887_s3 + $0x84] ss:$16 sps:$4 sm:$0xff]   ;;  %v7181_v21 = vld [vmem:[%s9887_s3 + $0x80] ss:$16 sps:$4 sm:$0xff]   ;;  %v7166_v23 = vld [vmem:[%s9887_s3 + $0x48] ss:$16 sps:$4 sm:$0xff]  }
   0x8   :  { %345 = vmatpush1.bf16.msra.mxu1 %v7163_v9  ;;  %v7182_v22 = vld [vmem:[%s9887_s3 + $0xa4] ss:$16 sps:$4 sm:$0xff]   ;;  %v7174_v24 = vld [vmem:[%s9887_s3 + $0x6c] ss:$16 sps:$4 sm:$0xff]   ;;  %v7187_v25 = vld [vmem:[%s9887_s3 + $0xa0] ss:$16 sps:$4 sm:$0xff]  }
   0x9   :  { %346 = vmatprep.subr.bf16.mxu1 %v7164_v10  ;;  %v7188_v26 = vld [vmem:[%s9887_s3 + $0xc4] ss:$16 sps:$4 sm:$0xff]   ;;  %v7172_v27 = vld [vmem:[%s9887_s3 + $0x68] ss:$16 sps:$4 sm:$0xff]   ;;  %v7180_v28 = vld [vmem:[%s9887_s3 + $0x8c] ss:$16 sps:$4 sm:$0xff]  }
   0xa   :  { %7058 = vmatpush3.bf16.msra.mxu0 %v7150_v4  ;;  %v7178_v29 = vld [vmem:[%s9887_s3 + $0x88] ss:$16 sps:$4 sm:$0xff]   ;;  %v7186_v30 = vld [vmem:[%s9887_s3 + $0xac] ss:$16 sps:$4 sm:$0xff]   ;;  %v7193_v34 = vld [vmem:[%s9887_s3 + $0xc0] ss:$16 sps:$4 sm:$0xff]  }
   0xb   :  { %7059 = vmatprep.subr.bf16.mxu0 %v7203_v0  ;;  %v7184_v31 = vld [vmem:[%s9887_s3 + $0xa8] ss:$16 sps:$4 sm:$0xff]   ;;  %v7192_v32 = vld [vmem:[%s9887_s3 + $0xcc] ss:$16 sps:$4 sm:$0xff]   ;;  %v7194_v35 = vld [vmem:[%s9887_s3 + $0xe4] ss:$16 sps:$4 sm:$0xff]  }
   0xc   :  { %347 = vmatpush1.bf16.msra.mxu1 %v7169_v12  ;;  %v7190_v33 = vld [vmem:[%s9887_s3 + $0xc8] ss:$16 sps:$4 sm:$0xff]   ;;  %v7198_v36 = vld [vmem:[%s9887_s3 + $0xec] ss:$16 sps:$4 sm:$0xff]   ;;  %v7199_v38 = vld [vmem:[%s9887_s3 + $0xe0] ss:$16 sps:$4 sm:$0xff]  }
   0xd   :  { %348 = vmatprep.subr.bf16.mxu1 %v7170_v14  ;;  %v7196_v37 = vld [vmem:[%s9887_s3 + $0xe8] ss:$16 sps:$4 sm:$0xff]   ;;  %v432_v40 = vld [vmem:[%s9889_s5] sm:$0xff] }
   0xe   :  { %7060 = vmatpush3.bf16.msra.mxu0 %v7151_v7  ;;  %v436_v41 = vld [vmem:[%s9889_s5 + $0x20] sm:$0xff]  ;;  %v433_v42 = vld [vmem:[%s9889_s5 + $0x8] sm:$0xff] }
   0xf   :  { %383 = vmatprep.subr.bf16.mxu0 %v7156_v11  ;;  %v6279_v43 = vcombine.low %v432_v40, %v436_v41  ;;  %v6280_v44 = vcombine.high %v432_v40, %v436_v41  ;;  %v437_v45 = vld [vmem:[%s9889_s5 + $0x28] sm:$0xff]  ;;  %v6241_v48 = vld [vmem:[%s9890_s2] ss:$0 sm:$0xff] }
  0x10   :  { %349 = vmatpush1.bf16.msra.mxu1 %v7175_v17  ;;  %v6281_v46 = vcombine.low %v433_v42, %v437_v45  ;;  %v6282_v47 = vcombine.high %v433_v42, %v437_v45  ;;  %v440_v52 = vld [vmem:[%s9889_s5 + $0x40] sm:$0xff]  ;;  %v441_v55 = vld [vmem:[%s9889_s5 + $0x48] sm:$0xff] }
  0x11   :  { %7062 = vmatmul.mubr.msk.bf16.vlgmr.msra.gmra.mrb[0].mxu0 %vm82_vm1, %v42_v13  ;;  %350 = vmatprep.subr.bf16.mxu1 %v7176_v18  ;;  %v444_v54 = vld [vmem:[%s9889_s5 + $0x60] sm:$0xff]  ;;  %v445_v56 = vld [vmem:[%s9889_s5 + $0x68] sm:$0xff] }
  0x12   :  { %384 = vmatpush1.bf16.msra.mxu0 %v7154_v15  ;;  %415 = vmatprep.mubr.bf16.mxu0 %v7205_v39  ;;  %v6288_v60 = vcombine.high %v440_v52, %v444_v54  ;;  %v6290_v61 = vcombine.high %v441_v55, %v445_v56  ;;  %v448_v62 = vld [vmem:[%s9889_s5 + $0x80] sm:$0xff]  ;;  %v449_v0 = vld [vmem:[%s9889_s5 + $0x88] sm:$0xff]  ;;  %v6287_v2 = vcombine.low %v440_v52, %v444_v54 }
  0x13   :  { %385 = vmatprep.subr.bf16.mxu0 %v7162_v16  ;;  %v452_v63 = vld [vmem:[%s9889_s5 + $0xa0] sm:$0xff]  ;;  %v453_v1 = vld [vmem:[%s9889_s5 + $0xa8] sm:$0xff]  ;;  %v6289_v3 = vcombine.low %v441_v55, %v445_v56 }
  0x14   :  { %351 = vmatpush1.bf16.msra.mxu1 %v7181_v21  ;;  %v6296_v4 = vcombine.high %v448_v62, %v452_v63  ;;  %v6298_v5 = vcombine.high %v449_v0, %v453_v1  ;;  %v456_v6 = vld [vmem:[%s9889_s5 + $0xc0] sm:$0xff]  ;;  %v457_v8 = vld [vmem:[%s9889_s5 + $0xc8] sm:$0xff]  ;;  %v6295_v10 = vcombine.low %v448_v62, %v452_v63  ;;  %v6297_v11 = vcombine.low %v449_v0, %v453_v1 }
  0x15   :  { %352 = vmatprep.subr.bf16.mxu1 %v7182_v22  ;;  %v460_v7 = vld [vmem:[%s9889_s5 + $0xe0] sm:$0xff]  ;;  %v461_v9 = vld [vmem:[%s9889_s5 + $0xe8] sm:$0xff] }
  0x16   :  { %386 = vmatpush1.bf16.msra.mxu0 %v7160_v19  ;;  %v6304_v12 = vcombine.high %v456_v6, %v460_v7  ;;  %v6306_v13 = vcombine.high %v457_v8, %v461_v9  ;;  %v464_v14 = vld [vmem:[%s9889_s5 + $0x100] sm:$0xff]  ;;  %v465_v16 = vld [vmem:[%s9889_s5 + $0x108] sm:$0xff]  ;;  %v6303_v18 = vcombine.low %v456_v6, %v460_v7  ;;  %v6305_v19 = vcombine.low %v457_v8, %v461_v9 }
  0x17   :  { %387 = vmatprep.subr.bf16.mxu0 %v7168_v20  ;;  %v468_v15 = vld [vmem:[%s9889_s5 + $0x120] sm:$0xff]  ;;  %v469_v17 = vld [vmem:[%s9889_s5 + $0x128] sm:$0xff] }
  0x18   :  { %353 = vmatpush1.bf16.msra.mxu1 %v7187_v25  ;;  %v6312_v20 = vcombine.high %v464_v14, %v468_v15  ;;  %v6314_v21 = vcombine.high %v465_v16, %v469_v17  ;;  %v472_v22 = vld [vmem:[%s9889_s5 + $0x140] sm:$0xff]  ;;  %v477_v25 = vld [vmem:[%s9889_s5 + $0x168] sm:$0xff] }
  0x19   :  { %354 = vmatprep.subr.bf16.mxu1 %v7188_v26  ;;  %v6311_v26 = vcombine.low %v464_v14, %v468_v15  ;;  %v492_v39 = vld [vmem:[%s9889_s5 + $0x1e0] sm:$0xff]  ;;  %v489_v40 = vld [vmem:[%s9889_s5 + $0x1c8] sm:$0xff] }
  0x1a   :  { %388 = vmatpush1.bf16.msra.mxu0 %v7166_v23  ;;  %v476_v23 = vld [vmem:[%s9889_s5 + $0x160] sm:$0xff]  ;;  %v493_v41 = vld [vmem:[%s9889_s5 + $0x1e8] sm:$0xff] }
  0x1b   :  { %389 = vmatprep.subr.bf16.mxu0 %v7174_v24  ;;  %v473_v24 = vld [vmem:[%s9889_s5 + $0x148] sm:$0xff]  ;;  %v6338_v45 = vcombine.high %v489_v40, %v493_v41  ;;  %v504_v54 = vld [vmem:[%s9889_s5 + $0x240] sm:$0xff] }
  0x1c   :  { %355 = vmatpush1.bf16.msra.mxu1 %v7193_v34  ;;  %v6319_v34 = vcombine.low %v472_v22, %v476_v23  ;;  %v508_v55 = vld [vmem:[%s9889_s5 + $0x260] sm:$0xff]  ;;  %v505_v56 = vld [vmem:[%s9889_s5 + $0x248] sm:$0xff] }
  0x1d   :  { %356 = vmatprep.subr.bf16.mxu1 %v7194_v35  ;;  %v6321_v35 = vcombine.low %v473_v24, %v477_v25  ;;  %v512_v62 = vld [vmem:[%s9889_s5 + $0x280] sm:$0xff]  ;;  %v513_v0 = vld [vmem:[%s9889_s5 + $0x288] sm:$0xff] }
  0x1e   :  { %390 = vmatpush1.bf16.msra.mxu0 %v7172_v27  ;;  %v6313_v27 = vcombine.low %v465_v16, %v469_v17  ;;  %v516_v63 = vld [vmem:[%s9889_s5 + $0x2a0] sm:$0xff]  ;;  %v517_v1 = vld [vmem:[%s9889_s5 + $0x2a8] sm:$0xff] }
  0x1f   :  { %391 = vmatprep.subr.bf16.mxu0 %v7180_v28  ;;  %v6320_v28 = vcombine.high %v472_v22, %v476_v23  ;;  %v520_v6 = vld [vmem:[%s9889_s5 + $0x2c0] sm:$0xff]  ;;  %v521_v8 = vld [vmem:[%s9889_s5 + $0x2c8] sm:$0xff] }
  0x20   :  { %357 = vmatpush1.bf16.msra.mxu1 %v7199_v38  ;;  %v488_v38 = vld [vmem:[%s9889_s5 + $0x1c0] sm:$0xff]  ;;  %v525_v9 = vld [vmem:[%s9889_s5 + $0x2e8] sm:$0xff] }
  0x21   :  { %2010 = vmatprep.subr.bf16.mxu1 %v6280_v44  ;;  %v6336_v44 = vcombine.high %v488_v38, %v492_v39  ;;  %v524_v7 = vld [vmem:[%s9889_s5 + $0x2e0] sm:$0xff]  ;;  %v529_v16 = vld [vmem:[%s9889_s5 + $0x308] sm:$0xff] }
  0x22   :  { %392 = vmatpush1.bf16.msra.mxu0 %v7178_v29  ;;  %v6322_v29 = vcombine.high %v473_v24, %v477_v25  ;;  %v528_v14 = vld [vmem:[%s9889_s5 + $0x300] sm:$0xff]  ;;  %v533_v17 = vld [vmem:[%s9889_s5 + $0x328] sm:$0xff] }
  0x23   :  { %393 = vmatprep.subr.bf16.mxu0 %v7186_v30  ;;  %v480_v30 = vld [vmem:[%s9889_s5 + $0x180] sm:$0xff]  ;;  %v537_v24 = vld [vmem:[%s9889_s5 + $0x348] sm:$0xff] }
  0x24   :  { %v532_v15 = vld [vmem:[%s9889_s5 + $0x320] sm:$0xff]  ;;  %v541_v25 = vld [vmem:[%s9889_s5 + $0x368] sm:$0xff] }
  0x25   :  { %v536_v22 = vld [vmem:[%s9889_s5 + $0x340] sm:$0xff] }
  0x26   :  { %394 = vmatpush1.bf16.msra.mxu0 %v7184_v31  ;;  %v484_v31 = vld [vmem:[%s9889_s5 + $0x1a0] sm:$0xff] }
  0x27   :  { %395 = vmatprep.subr.bf16.mxu0 %v7192_v32  ;;  %v481_v32 = vld [vmem:[%s9889_s5 + $0x188] sm:$0xff]  ;;  %v6327_v42 = vcombine.low %v480_v30, %v484_v31  ;;  %v540_v23 = vld [vmem:[%s9889_s5 + $0x360] sm:$0xff] }
  0x2a   :  { %396 = vmatpush1.bf16.msra.mxu0 %v7190_v33  ;;  %v485_v33 = vld [vmem:[%s9889_s5 + $0x1a8] sm:$0xff] }
  0x2b   :  { %397 = vmatprep.subr.bf16.mxu0 %v7198_v36  ;;  %v6328_v36 = vcombine.high %v480_v30, %v484_v31  ;;  %v6383_v30 = vcombine.low %v536_v22, %v540_v23  ;;  %v6385_v31 = vcombine.low %v537_v24, %v541_v25 }
  0x2e   :  { %398 = vmatpush1.bf16.msra.mxu0 %v7196_v37  ;;  %v6330_v37 = vcombine.high %v481_v32, %v485_v33 }
  0x2f   :  { %2092 = vmatprep.subr.bf16.mxu0 %v6282_v47  ;;  %v500_v47 = vld [vmem:[%s9889_s5 + $0x220] sm:$0xff] }
  0xe4   :  { %v120_v49 = vpop.f32.mrb[0].mxu0 }
  0xe5   :  { %v121_v50 = vadd.f32 %v6241_v48, %v120_v49  ;;  %v7063_v51 = vpop.f32.mrb[1].mxu0  ;;  %v497_v48 = vld [vmem:[%s9889_s5 + $0x208] sm:$0xff] }
  0xe6   :  { %v123_v53 = vpop.f32.mrb[2].mxu0  ;;  %v501_v49 = vld [vmem:[%s9889_s5 + $0x228] sm:$0xff]  ;;  %v6337_v51 = vcombine.low %v489_v40, %v493_v41  ;;  %v552_v40 = vld [vmem:[%s9889_s5 + $0x3c0] sm:$0xff] }
  0xe7   :  { %v126_v57 = vmax.f32 %v121_v50, 0.0  ;;  %v7064_v58 = vpop.f32.mrb[3].mxu0  ;;  %v6335_v50 = vcombine.low %v488_v38, %v492_v39  ;;  %v6346_v53 = vcombine.high %v497_v48, %v501_v49  ;;  %v556_v41 = vld [vmem:[%s9889_s5 + $0x3e0] sm:$0xff] }
  0xe9   :  { %v127_v59 = vpack.c.bf16 %v126_v57, %v126_v57  ;;  %v509_v57 = vld [vmem:[%s9889_s5 + $0x268] sm:$0xff] }
  0xeb   :  { %375 = vmatmul.mubr.bf16.vlgmr.msra.gmra.mrb[0].mxu1 %v127_v59  ;;  %416 = vmatmul.mubr.bf16.vlgmr.msra.gmra.mrb[4].mxu0 %v127_v59  ;;  %v6345_v59 = vcombine.low %v497_v48, %v501_v49  ;;  %v560_v48 = vld [vmem:[%s9889_s5 + $0x400] sm:$0xff] }
  0xec   :  { %2011 = vmatpush1.bf16.msra.mxu1 %v6279_v43  ;;  %2093 = vmatpush1.bf16.msra.mxu0 %v6281_v46  ;;  %v6329_v43 = vcombine.low %v481_v32, %v485_v33  ;;  %v496_v46 = vld [vmem:[%s9889_s5 + $0x200] sm:$0xff] }
  0xed   :  { %2012 = vmatprep.subr.bf16.mxu1 %v6288_v60  ;;  %2094 = vmatprep.subr.bf16.mxu0 %v6290_v61  ;;  %v6344_v52 = vcombine.high %v496_v46, %v500_v47  ;;  %v6343_v58 = vcombine.low %v496_v46, %v500_v47  ;;  %v6352_v60 = vcombine.high %v504_v54, %v508_v55  ;;  %v544_v32 = vld [vmem:[%s9889_s5 + $0x380] sm:$0xff] }
  0xee   :  { %v6354_v61 = vcombine.high %v505_v56, %v509_v57  ;;  %v548_v33 = vld [vmem:[%s9889_s5 + $0x3a0] sm:$0xff] }
  0xef   :  { %v564_v49 = vld [vmem:[%s9889_s5 + $0x420] sm:$0xff] }
  0xf0   :  { %2013 = vmatpush1.bf16.msra.mxu1 %v6287_v2  ;;  %2095 = vmatpush1.bf16.msra.mxu0 %v6289_v3  ;;  %v6351_v2 = vcombine.low %v504_v54, %v508_v55  ;;  %v6353_v3 = vcombine.low %v505_v56, %v509_v57  ;;  %v162_v56 = vlaneseq }
  0xf1   :  { %2014 = vmatprep.subr.bf16.mxu1 %v6296_v4  ;;  %2096 = vmatprep.subr.bf16.mxu0 %v6298_v5  ;;  %v6360_v4 = vcombine.high %v512_v62, %v516_v63  ;;  %v6362_v5 = vcombine.high %v513_v0, %v517_v1 }
  0xf2   :  { %v7584_v57 = vshrl.u32 %v162_v56, 7  ;;  %v608_v56 = vld [vmem:[%s9889_s5 + $0x580] sm:$0xff] }
  0xf4   :  { %2015 = vmatpush1.bf16.msra.mxu1 %v6295_v10  ;;  %2097 = vmatpush1.bf16.msra.mxu0 %v6297_v11  ;;  %v6359_v10 = vcombine.low %v512_v62, %v516_v63  ;;  %v6361_v11 = vcombine.low %v513_v0, %v517_v1 }
  0xf5   :  { %2016 = vmatprep.subr.bf16.mxu1 %v6304_v12  ;;  %2098 = vmatprep.subr.bf16.mxu0 %v6306_v13  ;;  %v6368_v12 = vcombine.high %v520_v6, %v524_v7  ;;  %v6370_v13 = vcombine.high %v521_v8, %v525_v9 }
  0xf8   :  { %2017 = vmatpush1.bf16.msra.mxu1 %v6303_v18  ;;  %2099 = vmatpush1.bf16.msra.mxu0 %v6305_v19  ;;  %v6367_v18 = vcombine.low %v520_v6, %v524_v7  ;;  %v6369_v19 = vcombine.low %v521_v8, %v525_v9 }
  0xf9   :  { %2018 = vmatprep.subr.bf16.mxu1 %v6312_v20  ;;  %2100 = vmatprep.subr.bf16.mxu0 %v6314_v21  ;;  %v6376_v20 = vcombine.high %v528_v14, %v532_v15  ;;  %v6378_v21 = vcombine.high %v529_v16, %v533_v17 }
  0xfc   :  { %2019 = vmatpush1.bf16.msra.mxu1 %v6311_v26  ;;  %2101 = vmatpush1.bf16.msra.mxu0 %v6313_v27  ;;  %v6375_v26 = vcombine.low %v528_v14, %v532_v15  ;;  %v6377_v27 = vcombine.low %v529_v16, %v533_v17  ;;  %v568_v14 = vld [vmem:[%s9889_s5 + $0x440] sm:$0xff]  ;;  %v569_v17 = vld [vmem:[%s9889_s5 + $0x448] sm:$0xff] }
  0xfd   :  { %2020 = vmatprep.subr.bf16.mxu1 %v6320_v28  ;;  %2102 = vmatprep.subr.bf16.mxu0 %v6322_v29  ;;  %v6384_v28 = vcombine.high %v536_v22, %v540_v23  ;;  %v6386_v29 = vcombine.high %v537_v24, %v541_v25  ;;  %v572_v16 = vld [vmem:[%s9889_s5 + $0x460] sm:$0xff]  ;;  %v577_v25 = vld [vmem:[%s9889_s5 + $0x488] sm:$0xff] }
  0xfe   :  { %v6416_v22 = vcombine.high %v568_v14, %v572_v16  ;;  %v580_v24 = vld [vmem:[%s9889_s5 + $0x4a0] sm:$0xff] }
 0x100   :  { %2021 = vmatpush1.bf16.msra.mxu1 %v6319_v34  ;;  %2103 = vmatpush1.bf16.msra.mxu0 %v6321_v35  ;;  %v545_v34 = vld [vmem:[%s9889_s5 + $0x388] sm:$0xff]  ;;  %v6392_v35 = vcombine.high %v544_v32, %v548_v33 }
 0x101   :  { %2022 = vmatprep.subr.bf16.mxu1 %v6328_v36  ;;  %2104 = vmatprep.subr.bf16.mxu0 %v6330_v37  ;;  %v549_v36 = vld [vmem:[%s9889_s5 + $0x3a8] sm:$0xff]  ;;  %v6391_v37 = vcombine.low %v544_v32, %v548_v33  ;;  %v584_v32 = vld [vmem:[%s9889_s5 + $0x4c0] sm:$0xff] }
 0x102   :  { %v6393_v38 = vcombine.low %v545_v34, %v549_v36  ;;  %v6394_v39 = vcombine.high %v545_v34, %v549_v36  ;;  %v588_v33 = vld [vmem:[%s9889_s5 + $0x4e0] sm:$0xff]  ;;  %v585_v34 = vld [vmem:[%s9889_s5 + $0x4c8] sm:$0xff] }
 0x104   :  { %2023 = vmatpush1.bf16.msra.mxu1 %v6327_v42  ;;  %2105 = vmatpush1.bf16.msra.mxu0 %v6329_v43  ;;  %v553_v42 = vld [vmem:[%s9889_s5 + $0x3c8] sm:$0xff]  ;;  %v6400_v43 = vcombine.high %v552_v40, %v556_v41 }
 0x105   :  { %2024 = vmatprep.subr.bf16.mxu1 %v6336_v44  ;;  %2106 = vmatprep.subr.bf16.mxu0 %v6338_v45  ;;  %v557_v44 = vld [vmem:[%s9889_s5 + $0x3e8] sm:$0xff]  ;;  %v6399_v45 = vcombine.low %v552_v40, %v556_v41  ;;  %v592_v40 = vld [vmem:[%s9889_s5 + $0x500] sm:$0xff] }
 0x106   :  { %v6401_v46 = vcombine.low %v553_v42, %v557_v44  ;;  %v6402_v47 = vcombine.high %v553_v42, %v557_v44  ;;  %v596_v41 = vld [vmem:[%s9889_s5 + $0x520] sm:$0xff]  ;;  %v593_v42 = vld [vmem:[%s9889_s5 + $0x508] sm:$0xff]  ;;  %v6431_v44 = vcombine.low %v584_v32, %v588_v33 }
 0x108   :  { %2025 = vmatpush1.bf16.msra.mxu1 %v6335_v50  ;;  %2107 = vmatpush1.bf16.msra.mxu0 %v6337_v51  ;;  %v561_v50 = vld [vmem:[%s9889_s5 + $0x408] sm:$0xff]  ;;  %v6408_v51 = vcombine.high %v560_v48, %v564_v49 }
 0x109   :  { %2026 = vmatprep.subr.bf16.mxu1 %v6344_v52  ;;  %2108 = vmatprep.subr.bf16.mxu0 %v6346_v53  ;;  %v565_v52 = vld [vmem:[%s9889_s5 + $0x428] sm:$0xff]  ;;  %v6407_v53 = vcombine.low %v560_v48, %v564_v49  ;;  %v600_v48 = vld [vmem:[%s9889_s5 + $0x540] sm:$0xff] }
 0x10a   :  { %v6409_v54 = vcombine.low %v561_v50, %v565_v52  ;;  %v6410_v55 = vcombine.high %v561_v50, %v565_v52  ;;  %v604_v49 = vld [vmem:[%s9889_s5 + $0x560] sm:$0xff]  ;;  %v601_v50 = vld [vmem:[%s9889_s5 + $0x548] sm:$0xff]  ;;  %v6439_v52 = vcombine.low %v592_v40, %v596_v41 }
 0x10c   :  { %2027 = vmatpush1.bf16.msra.mxu1 %v6343_v58  ;;  %2109 = vmatpush1.bf16.msra.mxu0 %v6345_v59  ;;  %v7587_v58 = vsub.s32 0, %v7584_v57  ;;  %v7592_v59 = vld [vmem:[%s9891_s4] sm:$0xf] }
 0x10d   :  { %2028 = vmatprep.subr.bf16.mxu1 %v6352_v60  ;;  %2110 = vmatprep.subr.bf16.mxu0 %v6354_v61  ;;  %v7595_v60 = vsub.s32 1, %v7584_v57  ;;  %v7598_v61 = vsub.s32 3, %v7584_v57 }
 0x10e   :  { %v165_v62 = vrot.slane %v7592_v59, %v7587_v58 }
 0x10f   :  { %v169_v63 = vrot.slane %v7592_v59, %v7595_v60  ;;  %v177_v0 = vrot.slane %v7592_v59, %v7598_v61 }
 0x110   :  { %2029 = vmatpush1.bf16.msra.mxu1 %v6351_v2  ;;  %2111 = vmatpush1.bf16.msra.mxu0 %v6353_v3 }
 0x111   :  { %2030 = vmatprep.subr.bf16.mxu1 %v6360_v4  ;;  %2112 = vmatprep.subr.bf16.mxu0 %v6362_v5 }
 0x114   :  { %2031 = vmatpush1.bf16.msra.mxu1 %v6359_v10  ;;  %2113 = vmatpush1.bf16.msra.mxu0 %v6361_v11 }
 0x115   :  { %2032 = vmatprep.subr.bf16.mxu1 %v6368_v12  ;;  %2114 = vmatprep.subr.bf16.mxu0 %v6370_v13 }
 0x118   :  { %2033 = vmatpush1.bf16.msra.mxu1 %v6367_v18  ;;  %2115 = vmatpush1.bf16.msra.mxu0 %v6369_v19  ;;  %v573_v18 = vld [vmem:[%s9889_s5 + $0x468] sm:$0xff] }
 0x119   :  { %2034 = vmatprep.subr.bf16.mxu1 %v6376_v20  ;;  %2116 = vmatprep.subr.bf16.mxu0 %v6378_v21  ;;  %v576_v21 = vld [vmem:[%s9889_s5 + $0x480] sm:$0xff]  ;;  %v6418_v23 = vcombine.high %v569_v17, %v573_v18 }
 0x11a   :  { %v6423_v36 = vcombine.low %v576_v21, %v580_v24 }
 0x11c   :  { %2035 = vmatpush1.bf16.msra.mxu1 %v6375_v26  ;;  %2117 = vmatpush1.bf16.msra.mxu0 %v6377_v27  ;;  %v581_v26 = vld [vmem:[%s9889_s5 + $0x4a8] sm:$0xff] }
 0x11d   :  { %2036 = vmatprep.subr.bf16.mxu1 %v6384_v28  ;;  %2118 = vmatprep.subr.bf16.mxu0 %v6386_v29  ;;  %v6415_v28 = vcombine.low %v568_v14, %v572_v16  ;;  %v6417_v29 = vcombine.low %v569_v17, %v573_v18  ;;  %v624_v14 = vld [vmem:[%s9889_s5 + $0x600] sm:$0xff]  ;;  %v625_v16 = vld [vmem:[%s9889_s5 + $0x608] sm:$0xff] }
 0x11e   :  { %v629_v17 = vld [vmem:[%s9889_s5 + $0x628] sm:$0xff] }
 0x120   :  { %2037 = vmatpush1.bf16.msra.mxu1 %v6383_v30  ;;  %2119 = vmatpush1.bf16.msra.mxu0 %v6385_v31  ;;  %v6424_v30 = vcombine.high %v576_v21, %v580_v24  ;;  %v6426_v31 = vcombine.high %v577_v25, %v581_v26  ;;  %v632_v24 = vld [vmem:[%s9889_s5 + $0x640] sm:$0xff] }
 0x121   :  { %2038 = vmatprep.subr.bf16.mxu1 %v6392_v35  ;;  %2120 = vmatprep.subr.bf16.mxu0 %v6394_v39  ;;  %v589_v35 = vld [vmem:[%s9889_s5 + $0x4e8] sm:$0xff] }
 0x122   :  { %v6434_v39 = vcombine.high %v585_v34, %v589_v35 }
 0x124   :  { %2039 = vmatpush1.bf16.msra.mxu1 %v6391_v37  ;;  %2121 = vmatpush1.bf16.msra.mxu0 %v6393_v38  ;;  %v6425_v37 = vcombine.low %v577_v25, %v581_v26  ;;  %v6432_v38 = vcombine.high %v584_v32, %v588_v33  ;;  %v636_v25 = vld [vmem:[%s9889_s5 + $0x660] sm:$0xff]  ;;  %v633_v26 = vld [vmem:[%s9889_s5 + $0x648] sm:$0xff] }
 0x125   :  { %2040 = vmatprep.subr.bf16.mxu1 %v6400_v43  ;;  %2122 = vmatprep.subr.bf16.mxu0 %v6402_v47  ;;  %v597_v43 = vld [vmem:[%s9889_s5 + $0x528] sm:$0xff]  ;;  %v640_v33 = vld [vmem:[%s9889_s5 + $0x680] sm:$0xff] }
 0x126   :  { %v6442_v47 = vcombine.high %v593_v42, %v597_v43 }
 0x128   :  { %2041 = vmatpush1.bf16.msra.mxu1 %v6399_v45  ;;  %2123 = vmatpush1.bf16.msra.mxu0 %v6401_v46  ;;  %v6433_v45 = vcombine.low %v585_v34, %v589_v35  ;;  %v6440_v46 = vcombine.high %v592_v40, %v596_v41  ;;  %v644_v34 = vld [vmem:[%s9889_s5 + $0x6a0] sm:$0xff]  ;;  %v641_v35 = vld [vmem:[%s9889_s5 + $0x688] sm:$0xff] }
 0x129   :  { %2051 = vmatprep.subr.bf16.mxu1 %v6408_v51  ;;  %2133 = vmatprep.subr.bf16.mxu0 %v6410_v55  ;;  %v605_v51 = vld [vmem:[%s9889_s5 + $0x568] sm:$0xff]  ;;  %v648_v41 = vld [vmem:[%s9889_s5 + $0x6c0] sm:$0xff] }
 0x12a   :  { %v6450_v55 = vcombine.high %v601_v50, %v605_v51 }
 0x1be   :  { %v376_v1 = vpop.f32.mrb[0].mxu1  ;;  %v7606_v2 = vpop.f32.mrb[4].mxu0 }
 0x1bf   :  { %v377_v3 = vadd.f32 %v376_v1, %v165_v62  ;;  %v378_v4 = vpop.f32.mrb[1].mxu1  ;;  %v419_v5 = vpop.f32.mrb[5].mxu0  ;;  %v612_v62 = vld [vmem:[%s9889_s5 + $0x5a0] sm:$0xff]  ;;  %v6447_v1 = vcombine.low %v600_v48, %v604_v49 }
 0x1c0   :  { %v379_v6 = vadd.f32 %v378_v4, %v169_v63  ;;  %v420_v7 = vadd.f32 %v419_v5, %v177_v0  ;;  %v380_v8 = vpop.f32.mrb[2].mxu1  ;;  %v421_v9 = vpop.f32.mrb[6].mxu0  ;;  %v609_v63 = vld [vmem:[%s9889_s5 + $0x588] sm:$0xff]  ;;  %v6456_v4 = vcombine.high %v608_v56, %v612_v62 }
 0x1c1   :  { %v424_v10 = vmax.f32 %v377_v3, 0.0  ;;  %v381_v11 = vpop.f32.mrb[3].mxu1  ;;  %v422_v12 = vpop.f32.mrb[7].mxu0  ;;  %v613_v0 = vld [vmem:[%s9889_s5 + $0x5a8] sm:$0xff]  ;;  %v6449_v3 = vcombine.low %v601_v50, %v605_v51  ;;  %v660_v50 = vld [vmem:[%s9889_s5 + $0x720] sm:$0xff] }
 0x1c2   :  { %v425_v13 = vmax.f32 %v379_v6, 0.0  ;;  %v427_v15 = vmax.f32 %v420_v7, 0.0  ;;  %v6458_v5 = vcombine.high %v609_v63, %v613_v0  ;;  %v616_v6 = vld [vmem:[%s9889_s5 + $0x5c0] sm:$0xff]  ;;  %v617_v8 = vld [vmem:[%s9889_s5 + $0x5c8] sm:$0xff]  ;;  %v6457_v11 = vcombine.low %v609_v63, %v613_v0 }
 0x1c3   :  { %v7622_v20 = vpack.c.bf16 %v424_v10, %v424_v10  ;;  %v620_v7 = vld [vmem:[%s9889_s5 + $0x5e0] sm:$0xff]  ;;  %v621_v9 = vld [vmem:[%s9889_s5 + $0x5e8] sm:$0xff]  ;;  %v6455_v10 = vcombine.low %v608_v56, %v612_v62 }
 0x1c4   :  { %v7620_v19 = vpack.c.bf16 %v425_v13, %v425_v13  ;;  %v7638_v27 = vpack.c.bf16 %v427_v15, %v427_v15  ;;  %v6464_v12 = vcombine.high %v616_v6, %v620_v7  ;;  %v6466_v13 = vcombine.high %v617_v8, %v621_v9  ;;  %v628_v15 = vld [vmem:[%s9889_s5 + $0x620] sm:$0xff]  ;;  %v657_v51 = vld [vmem:[%s9889_s5 + $0x708] sm:$0xff] }
 0x1c5   :  { %v6463_v18 = vcombine.low %v616_v6, %v620_v7  ;;  %v6465_v21 = vcombine.low %v617_v8, %v621_v9  ;;  %v664_v62 = vld [vmem:[%s9889_s5 + $0x740] sm:$0xff]  ;;  %v665_v0 = vld [vmem:[%s9889_s5 + $0x748] sm:$0xff] }
 0x1c6   :  { %2042 = vmatprep.mubr.bf16.mxu1 %v7620_v19  ;;  %2124 = vmatprep.mubr.bf16.mxu0 %v7620_v19  ;;  %v668_v63 = vld [vmem:[%s9889_s5 + $0x760] sm:$0xff] }
 0x1c7   :  { %2043 = vmatmul.mubr.bf16.vlgmr.msra.gmra.mrb[4].mxu1 %v7622_v20  ;;  %2125 = vmatmul.mubr.bf16.vlgmr.msra.gmra.mrb[8].mxu0 %v7622_v20  ;;  %v6512_v6 = vcombine.high %v664_v62, %v668_v63  ;;  %v672_v8 = vld [vmem:[%s9889_s5 + $0x780] sm:$0xff] }
 0x1c8   :  { %2052 = vmatpush1.bf16.msra.mxu1 %v6407_v53  ;;  %2134 = vmatpush1.bf16.msra.mxu0 %v6409_v54  ;;  %v6441_v53 = vcombine.low %v593_v42, %v597_v43  ;;  %v6448_v54 = vcombine.high %v600_v48, %v604_v49  ;;  %v652_v42 = vld [vmem:[%s9889_s5 + $0x6e0] sm:$0xff]  ;;  %v649_v43 = vld [vmem:[%s9889_s5 + $0x6c8] sm:$0xff] }
 0x1c9   :  { %2083 = vmatprep.mubr.bf16.mxu1 %v7638_v27  ;;  %2165 = vmatprep.mubr.bf16.mxu0 %v7638_v27  ;;  %v656_v49 = vld [vmem:[%s9889_s5 + $0x700] sm:$0xff] }
 0x1ca   :  { %2053 = vmatprep.subr.bf16.mxu1 %v6416_v22  ;;  %2135 = vmatprep.subr.bf16.mxu0 %v6418_v23  ;;  %v6472_v22 = vcombine.high %v624_v14, %v628_v15  ;;  %v6474_v23 = vcombine.high %v625_v16, %v629_v17  ;;  %v676_v9 = vld [vmem:[%s9889_s5 + $0x7a0] sm:$0xff] }
 0x1cc   :  { %2054 = vmatpush1.bf16.msra.mxu1 %v6415_v28  ;;  %2136 = vmatpush1.bf16.msra.mxu0 %v6417_v29  ;;  %v637_v28 = vld [vmem:[%s9889_s5 + $0x668] sm:$0xff]  ;;  %v6471_v29 = vcombine.low %v624_v14, %v628_v15  ;;  %v6520_v15 = vcombine.high %v672_v8, %v676_v9 }
 0x1cd   :  { %2055 = vmatprep.subr.bf16.mxu1 %v6424_v30  ;;  %2137 = vmatprep.subr.bf16.mxu0 %v6426_v31  ;;  %v6473_v30 = vcombine.low %v625_v16, %v629_v17  ;;  %v6480_v31 = vcombine.high %v632_v24, %v636_v25  ;;  %v6482_v32 = vcombine.high %v633_v26, %v637_v28  ;;  %v680_v17 = vld [vmem:[%s9889_s5 + $0x7c0] sm:$0xff] }
 0x1d0   :  { %2056 = vmatpush1.bf16.msra.mxu1 %v6423_v36  ;;  %2138 = vmatpush1.bf16.msra.mxu0 %v6425_v37  ;;  %v645_v36 = vld [vmem:[%s9889_s5 + $0x6a8] sm:$0xff]  ;;  %v6479_v37 = vcombine.low %v632_v24, %v636_v25 }
 0x1d1   :  { %2057 = vmatprep.subr.bf16.mxu1 %v6432_v38  ;;  %2139 = vmatprep.subr.bf16.mxu0 %v6434_v39  ;;  %v6481_v38 = vcombine.low %v633_v26, %v637_v28  ;;  %v6488_v39 = vcombine.high %v640_v33, %v644_v34  ;;  %v6490_v40 = vcombine.high %v641_v35, %v645_v36  ;;  %v434_v28 = vld [vmem:[%s9889_s5 + $0x10] sm:$0xff] }
 0x1d4   :  { %2058 = vmatpush1.bf16.msra.mxu1 %v6431_v44  ;;  %2140 = vmatpush1.bf16.msra.mxu0 %v6433_v45  ;;  %v653_v44 = vld [vmem:[%s9889_s5 + $0x6e8] sm:$0xff]  ;;  %v6487_v45 = vcombine.low %v640_v33, %v644_v34 }
 0x1d5   :  { %2059 = vmatprep.subr.bf16.mxu1 %v6440_v46  ;;  %2141 = vmatprep.subr.bf16.mxu0 %v6442_v47  ;;  %v6489_v46 = vcombine.low %v641_v35, %v645_v36  ;;  %v6496_v47 = vcombine.high %v648_v41, %v652_v42  ;;  %v6498_v48 = vcombine.high %v649_v43, %v653_v44  ;;  %v442_v36 = vld [vmem:[%s9889_s5 + $0x50] sm:$0xff] }
 0x1d8   :  { %2060 = vmatpush1.bf16.msra.mxu1 %v6439_v52  ;;  %2142 = vmatpush1.bf16.msra.mxu0 %v6441_v53  ;;  %v661_v52 = vld [vmem:[%s9889_s5 + $0x728] sm:$0xff]  ;;  %v6495_v53 = vcombine.low %v648_v41, %v652_v42 }
 0x1d9   :  { %2061 = vmatprep.subr.bf16.mxu1 %v6448_v54  ;;  %2143 = vmatprep.subr.bf16.mxu0 %v6450_v55  ;;  %v6497_v54 = vcombine.low %v649_v43, %v653_v44  ;;  %v6504_v55 = vcombine.high %v656_v49, %v660_v50  ;;  %v6506_v56 = vcombine.high %v657_v51, %v661_v52 }
 0x1dc   :  { %2062 = vmatpush1.bf16.msra.mxu1 %v6447_v1  ;;  %2144 = vmatpush1.bf16.msra.mxu0 %v6449_v3  ;;  %v669_v1 = vld [vmem:[%s9889_s5 + $0x768] sm:$0xff]  ;;  %v6503_v3 = vcombine.low %v656_v49, %v660_v50 }
 0x1dd   :  { %2063 = vmatprep.subr.bf16.mxu1 %v6456_v4  ;;  %2145 = vmatprep.subr.bf16.mxu0 %v6458_v5  ;;  %v6505_v4 = vcombine.low %v657_v51, %v661_v52  ;;  %v7777_v5 = vsub.s32 2, %v7584_v57  ;;  %v6514_v7 = vcombine.high %v665_v0, %v669_v1 }
 0x1df   :  { %v173_v14 = vrot.slane %v7592_v59, %v7777_v5  ;;  %v685_v59 = vld [vmem:[%s9889_s5 + $0x7e8] sm:$0xff] }
 0x1e0   :  { %2064 = vmatpush1.bf16.msra.mxu1 %v6455_v10  ;;  %2146 = vmatpush1.bf16.msra.mxu0 %v6457_v11  ;;  %v673_v10 = vld [vmem:[%s9889_s5 + $0x788] sm:$0xff] }
 0x1e1   :  { %2065 = vmatprep.subr.bf16.mxu1 %v6464_v12  ;;  %2147 = vmatprep.subr.bf16.mxu0 %v6466_v13  ;;  %v677_v11 = vld [vmem:[%s9889_s5 + $0x7a8] sm:$0xff]  ;;  %v6511_v12 = vcombine.low %v664_v62, %v668_v63  ;;  %v6513_v13 = vcombine.low %v665_v0, %v669_v1  ;;  %v418_v24 = vadd.f32 %v7606_v2, %v173_v14  ;;  %v439_v2 = vld [vmem:[%s9889_s5 + $0x38] sm:$0xff]  ;;  %v466_v1 = vld [vmem:[%s9889_s5 + $0x110] sm:$0xff] }
 0x1e2   :  { %v6522_v16 = vcombine.high %v673_v10, %v677_v11  ;;  %v479_v14 = vld [vmem:[%s9889_s5 + $0x178] sm:$0xff] }
 0x1e3   :  { %v426_v33 = vmax.f32 %v418_v24, 0.0 }
 0x1e4   :  { %2066 = vmatpush1.bf16.msra.mxu1 %v6463_v18  ;;  %2148 = vmatpush1.bf16.msra.mxu0 %v6465_v21  ;;  %v684_v18 = vld [vmem:[%s9889_s5 + $0x7e0] sm:$0xff]  ;;  %v681_v21 = vld [vmem:[%s9889_s5 + $0x7c8] sm:$0xff] }
 0x1e5   :  { %2067 = vmatprep.subr.bf16.mxu1 %v6472_v22  ;;  %2149 = vmatprep.subr.bf16.mxu0 %v6474_v23  ;;  %v6519_v22 = vcombine.low %v672_v8, %v676_v9  ;;  %v6521_v23 = vcombine.low %v673_v10, %v677_v11  ;;  %v6528_v25 = vcombine.high %v680_v17, %v684_v18  ;;  %v474_v11 = vld [vmem:[%s9889_s5 + $0x150] sm:$0xff] }
 0x1e6   :  { %v6530_v26 = vcombine.high %v681_v21, %v685_v59  ;;  %v7830_v41 = vpack.c.bf16 %v426_v33, %v426_v33 }
 0x1e8   :  { %2068 = vmatpush1.bf16.msra.mxu1 %v6471_v29  ;;  %2150 = vmatpush1.bf16.msra.mxu0 %v6473_v30  ;;  %v438_v29 = vld [vmem:[%s9889_s5 + $0x30] sm:$0xff]  ;;  %v435_v30 = vld [vmem:[%s9889_s5 + $0x18] sm:$0xff] }
 0x1e9   :  { %2069 = vmatprep.subr.bf16.mxu1 %v6480_v31  ;;  %2151 = vmatprep.subr.bf16.mxu0 %v6482_v32  ;;  %v6527_v31 = vcombine.low %v680_v17, %v684_v18  ;;  %v6529_v32 = vcombine.low %v681_v21, %v685_v59  ;;  %v6284_v34 = vcombine.high %v434_v28, %v438_v29  ;;  %v482_v21 = vld [vmem:[%s9889_s5 + $0x190] sm:$0xff] }
 0x1ea   :  { %v6286_v35 = vcombine.high %v435_v30, %v439_v2  ;;  %v6285_v42 = vcombine.low %v435_v30, %v439_v2  ;;  %v486_v59 = vld [vmem:[%s9889_s5 + $0x1b0] sm:$0xff]  ;;  %v491_v2 = vld [vmem:[%s9889_s5 + $0x1d8] sm:$0xff] }
 0x1eb   :  { %v494_v30 = vld [vmem:[%s9889_s5 + $0x1f0] sm:$0xff] }
 0x1ec   :  { %2070 = vmatpush1.bf16.msra.mxu1 %v6479_v37  ;;  %2152 = vmatpush1.bf16.msra.mxu0 %v6481_v38  ;;  %v446_v37 = vld [vmem:[%s9889_s5 + $0x70] sm:$0xff]  ;;  %v443_v38 = vld [vmem:[%s9889_s5 + $0x58] sm:$0xff] }
 0x1ed   :  { %2071 = vmatprep.subr.bf16.mxu1 %v6488_v39  ;;  %2153 = vmatprep.subr.bf16.mxu0 %v6490_v40  ;;  %v447_v39 = vld [vmem:[%s9889_s5 + $0x78] sm:$0xff]  ;;  %v6283_v40 = vcombine.low %v434_v28, %v438_v29  ;;  %v6292_v43 = vcombine.high %v442_v36, %v446_v37  ;;  %v6291_v49 = vcombine.low %v442_v36, %v446_v37  ;;  %v490_v29 = vld [vmem:[%s9889_s5 + $0x1d0] sm:$0xff] }
 0x1ee   :  { %v6294_v44 = vcombine.high %v443_v38, %v447_v39  ;;  %v6293_v50 = vcombine.low %v443_v38, %v447_v39  ;;  %v498_v36 = vld [vmem:[%s9889_s5 + $0x210] sm:$0xff]  ;;  %v499_v38 = vld [vmem:[%s9889_s5 + $0x218] sm:$0xff] }
 0x1ef   :  { %v502_v37 = vld [vmem:[%s9889_s5 + $0x230] sm:$0xff]  ;;  %v503_v39 = vld [vmem:[%s9889_s5 + $0x238] sm:$0xff] }
 0x1f0   :  { %2072 = vmatpush1.bf16.msra.mxu1 %v6487_v45  ;;  %2154 = vmatpush1.bf16.msra.mxu0 %v6489_v46  ;;  %v450_v45 = vld [vmem:[%s9889_s5 + $0x90] sm:$0xff] }
 0x1f1   :  { %2073 = vmatprep.subr.bf16.mxu1 %v6496_v47  ;;  %2155 = vmatprep.subr.bf16.mxu0 %v6498_v48  ;;  %v454_v46 = vld [vmem:[%s9889_s5 + $0xb0] sm:$0xff]  ;;  %v451_v47 = vld [vmem:[%s9889_s5 + $0x98] sm:$0xff] }
 0x1f2   :  { %v455_v48 = vld [vmem:[%s9889_s5 + $0xb8] sm:$0xff]  ;;  %v6300_v51 = vcombine.high %v450_v45, %v454_v46 }
 0x1f3   :  { %v6302_v52 = vcombine.high %v451_v47, %v455_v48  ;;  %v6301_v62 = vcombine.low %v451_v47, %v455_v48  ;;  %v507_v47 = vld [vmem:[%s9889_s5 + $0x258] sm:$0xff] }
 0x1f4   :  { %2074 = vmatpush1.bf16.msra.mxu1 %v6495_v53  ;;  %2156 = vmatpush1.bf16.msra.mxu0 %v6497_v54  ;;  %v458_v53 = vld [vmem:[%s9889_s5 + $0xd0] sm:$0xff]  ;;  %v511_v48 = vld [vmem:[%s9889_s5 + $0x278] sm:$0xff] }
 0x1f5   :  { %2075 = vmatprep.subr.bf16.mxu1 %v6504_v55  ;;  %2157 = vmatprep.subr.bf16.mxu0 %v6506_v56  ;;  %v462_v54 = vld [vmem:[%s9889_s5 + $0xf0] sm:$0xff]  ;;  %v459_v55 = vld [vmem:[%s9889_s5 + $0xd8] sm:$0xff]  ;;  %v6299_v56 = vcombine.low %v450_v45, %v454_v46 }
 0x1f6   :  { %v6308_v63 = vcombine.high %v458_v53, %v462_v54  ;;  %v506_v45 = vld [vmem:[%s9889_s5 + $0x250] sm:$0xff] }
 0x1f7   :  { %v510_v46 = vld [vmem:[%s9889_s5 + $0x270] sm:$0xff] }
 0x1f8   :  { %2076 = vmatpush1.bf16.msra.mxu1 %v6503_v3  ;;  %2158 = vmatpush1.bf16.msra.mxu0 %v6505_v4  ;;  %v470_v3 = vld [vmem:[%s9889_s5 + $0x130] sm:$0xff]  ;;  %v467_v4 = vld [vmem:[%s9889_s5 + $0x118] sm:$0xff] }
 0x1f9   :  { %2077 = vmatprep.subr.bf16.mxu1 %v6512_v6  ;;  %2159 = vmatprep.subr.bf16.mxu0 %v6514_v7  ;;  %v471_v6 = vld [vmem:[%s9889_s5 + $0x138] sm:$0xff]  ;;  %v6307_v7 = vcombine.low %v458_v53, %v462_v54  ;;  %v6316_v9 = vcombine.high %v466_v1, %v470_v3  ;;  %v514_v53 = vld [vmem:[%s9889_s5 + $0x290] sm:$0xff] }
 0x1fa   :  { %v6318_v10 = vcombine.high %v467_v4, %v471_v6  ;;  %v518_v54 = vld [vmem:[%s9889_s5 + $0x2b0] sm:$0xff] }
 0x1fc   :  { %2078 = vmatpush1.bf16.msra.mxu1 %v6511_v12  ;;  %2160 = vmatpush1.bf16.msra.mxu0 %v6513_v13  ;;  %v478_v12 = vld [vmem:[%s9889_s5 + $0x170] sm:$0xff]  ;;  %v475_v13 = vld [vmem:[%s9889_s5 + $0x158] sm:$0xff] }
 0x1fd   :  { %2079 = vmatprep.subr.bf16.mxu1 %v6520_v15  ;;  %2161 = vmatprep.subr.bf16.mxu0 %v6522_v16  ;;  %v6315_v15 = vcombine.low %v466_v1, %v470_v3  ;;  %v6317_v16 = vcombine.low %v467_v4, %v471_v6  ;;  %v6324_v17 = vcombine.high %v474_v11, %v478_v12  ;;  %v522_v1 = vld [vmem:[%s9889_s5 + $0x2d0] sm:$0xff]  ;;  %v523_v4 = vld [vmem:[%s9889_s5 + $0x2d8] sm:$0xff] }
 0x1fe   :  { %v6326_v18 = vcombine.high %v475_v13, %v479_v14  ;;  %v6323_v24 = vcombine.low %v474_v11, %v478_v12  ;;  %v526_v3 = vld [vmem:[%s9889_s5 + $0x2f0] sm:$0xff]  ;;  %v527_v6 = vld [vmem:[%s9889_s5 + $0x2f8] sm:$0xff] }
 0x1ff   :  { %v530_v11 = vld [vmem:[%s9889_s5 + $0x310] sm:$0xff] }
 0x200   :  { %2080 = vmatpush1.bf16.msra.mxu1 %v6519_v22  ;;  %2162 = vmatpush1.bf16.msra.mxu0 %v6521_v23  ;;  %v483_v22 = vld [vmem:[%s9889_s5 + $0x198] sm:$0xff]  ;;  %v534_v12 = vld [vmem:[%s9889_s5 + $0x330] sm:$0xff] }
 0x201   :  { %2081 = vmatprep.subr.bf16.mxu1 %v6528_v25  ;;  %2163 = vmatprep.subr.bf16.mxu0 %v6530_v26  ;;  %v487_v23 = vld [vmem:[%s9889_s5 + $0x1b8] sm:$0xff]  ;;  %v6325_v25 = vcombine.low %v475_v13, %v479_v14  ;;  %v6332_v26 = vcombine.high %v482_v21, %v486_v59 }
 0x202   :  { %v6334_v28 = vcombine.high %v483_v22, %v487_v23  ;;  %v6333_v33 = vcombine.low %v483_v22, %v487_v23  ;;  %v531_v13 = vld [vmem:[%s9889_s5 + $0x318] sm:$0xff] }
 0x203   :  { %v535_v14 = vld [vmem:[%s9889_s5 + $0x338] sm:$0xff] }
 0x204   :  { %2082 = vmatpush1.bf16.msra.mxu1 %v6527_v31  ;;  %2164 = vmatpush1.bf16.msra.mxu0 %v6529_v32  ;;  %v495_v31 = vld [vmem:[%s9889_s5 + $0x1f8] sm:$0xff]  ;;  %v6331_v32 = vcombine.low %v482_v21, %v486_v59  ;;  %v538_v21 = vld [vmem:[%s9889_s5 + $0x350] sm:$0xff] }
 0x205   :  { %2174 = vmatprep.subr.bf16.mxu1 %v6284_v34  ;;  %2256 = vmatprep.subr.bf16.mxu0 %v6286_v35  ;;  %v6340_v34 = vcombine.high %v490_v29, %v494_v30  ;;  %v6342_v35 = vcombine.high %v491_v2, %v495_v31  ;;  %v542_v59 = vld [vmem:[%s9889_s5 + $0x370] sm:$0xff]  ;;  %v539_v22 = vld [vmem:[%s9889_s5 + $0x358] sm:$0xff] }
 0x206   :  { %v543_v23 = vld [vmem:[%s9889_s5 + $0x378] sm:$0xff] }
 0x207   :  { %2084 = vmatmul.mubr.bf16.vlgmr.msra.gmra.mrb[4].mxu1 %v7830_v41  ;;  %2166 = vmatmul.mubr.bf16.vlgmr.msra.gmra.mrb[8].mxu0 %v7830_v41 }
 0x208   :  { %2175 = vmatpush1.bf16.msra.mxu1 %v6283_v40  ;;  %2206 = vmatprep.mubr.bf16.mxu1 %v7620_v19  ;;  %v6339_v40 = vcombine.low %v490_v29, %v494_v30  ;;  %v546_v29 = vld [vmem:[%s9889_s5 + $0x390] sm:$0xff] }
 0x209   :  { %2257 = vmatpush1.bf16.msra.mxu0 %v6285_v42  ;;  %2288 = vmatprep.mubr.bf16.mxu0 %v7620_v19  ;;  %v463_v19 = vld [vmem:[%s9889_s5 + $0xf8] sm:$0xff]  ;;  %v6341_v42 = vcombine.low %v491_v2, %v495_v31  ;;  %v550_v30 = vld [vmem:[%s9889_s5 + $0x3b0] sm:$0xff] }
 0x20a   :  { %2176 = vmatprep.subr.bf16.mxu1 %v6292_v43  ;;  %2258 = vmatprep.subr.bf16.mxu0 %v6294_v44  ;;  %v6310_v0 = vcombine.high %v459_v55, %v463_v19  ;;  %v6309_v8 = vcombine.low %v459_v55, %v463_v19  ;;  %v6348_v43 = vcombine.high %v498_v36, %v502_v37  ;;  %v515_v55 = vld [vmem:[%s9889_s5 + $0x298] sm:$0xff] }
 0x20b   :  { %v6350_v44 = vcombine.high %v499_v38, %v503_v39  ;;  %v519_v19 = vld [vmem:[%s9889_s5 + $0x2b8] sm:$0xff] }
 0x20c   :  { %2177 = vmatpush1.bf16.msra.mxu1 %v6291_v49  ;;  %v6347_v49 = vcombine.low %v498_v36, %v502_v37  ;;  %v547_v2 = vld [vmem:[%s9889_s5 + $0x398] sm:$0xff]  ;;  %v554_v36 = vld [vmem:[%s9889_s5 + $0x3d0] sm:$0xff] }
 0x20d   :  { %2259 = vmatpush1.bf16.msra.mxu0 %v6293_v50  ;;  %2178 = vmatprep.subr.bf16.mxu1 %v6300_v51  ;;  %v6349_v50 = vcombine.low %v499_v38, %v503_v39  ;;  %v6356_v51 = vcombine.high %v506_v45, %v510_v46  ;;  %v551_v31 = vld [vmem:[%s9889_s5 + $0x3b8] sm:$0xff]  ;;  %v558_v37 = vld [vmem:[%s9889_s5 + $0x3f0] sm:$0xff] }
 0x20e   :  { %2260 = vmatprep.subr.bf16.mxu0 %v6302_v52  ;;  %v6358_v52 = vcombine.high %v507_v47, %v511_v48  ;;  %v555_v38 = vld [vmem:[%s9889_s5 + $0x3d8] sm:$0xff] }
 0x20f   :  { %v559_v39 = vld [vmem:[%s9889_s5 + $0x3f8] sm:$0xff] }
 0x210   :  { %2179 = vmatpush1.bf16.msra.mxu1 %v6299_v56  ;;  %v6355_v56 = vcombine.low %v506_v45, %v510_v46  ;;  %v562_v45 = vld [vmem:[%s9889_s5 + $0x410] sm:$0xff] }
 0x211   :  { %2261 = vmatpush1.bf16.msra.mxu0 %v6301_v62  ;;  %2180 = vmatprep.subr.bf16.mxu1 %v6308_v63  ;;  %v6357_v62 = vcombine.low %v507_v47, %v511_v48  ;;  %v6364_v63 = vcombine.high %v514_v53, %v518_v54  ;;  %v566_v46 = vld [vmem:[%s9889_s5 + $0x430] sm:$0xff]  ;;  %v563_v47 = vld [vmem:[%s9889_s5 + $0x418] sm:$0xff] }
 0x212   :  { %2262 = vmatprep.subr.bf16.mxu0 %v6310_v0  ;;  %v6366_v0 = vcombine.high %v515_v55, %v519_v19  ;;  %v567_v48 = vld [vmem:[%s9889_s5 + $0x438] sm:$0xff] }
 0x214   :  { %2181 = vmatpush1.bf16.msra.mxu1 %v6307_v7  ;;  %v6363_v7 = vcombine.low %v514_v53, %v518_v54  ;;  %v570_v53 = vld [vmem:[%s9889_s5 + $0x450] sm:$0xff] }
 0x215   :  { %2263 = vmatpush1.bf16.msra.mxu0 %v6309_v8  ;;  %2182 = vmatprep.subr.bf16.mxu1 %v6316_v9  ;;  %v6365_v8 = vcombine.low %v515_v55, %v519_v19  ;;  %v6372_v9 = vcombine.high %v522_v1, %v526_v3  ;;  %v574_v54 = vld [vmem:[%s9889_s5 + $0x470] sm:$0xff]  ;;  %v6411_v55 = vcombine.low %v562_v45, %v566_v46  ;;  %v571_v19 = vld [vmem:[%s9889_s5 + $0x458] sm:$0xff] }
 0x216   :  { %2264 = vmatprep.subr.bf16.mxu0 %v6318_v10  ;;  %v6374_v10 = vcombine.high %v523_v4, %v527_v6 }
 0x218   :  { %2183 = vmatpush1.bf16.msra.mxu1 %v6315_v15  ;;  %v6371_v15 = vcombine.low %v522_v1, %v526_v3  ;;  %v582_v1 = vld [vmem:[%s9889_s5 + $0x4b0] sm:$0xff] }
 0x219   :  { %2265 = vmatpush1.bf16.msra.mxu0 %v6317_v16  ;;  %2184 = vmatprep.subr.bf16.mxu1 %v6324_v17  ;;  %v6373_v16 = vcombine.low %v523_v4, %v527_v6  ;;  %v6380_v17 = vcombine.high %v530_v11, %v534_v12  ;;  %v579_v4 = vld [vmem:[%s9889_s5 + $0x498] sm:$0xff] }
 0x21a   :  { %2266 = vmatprep.subr.bf16.mxu0 %v6326_v18  ;;  %v6382_v18 = vcombine.high %v531_v13, %v535_v14  ;;  %v583_v6 = vld [vmem:[%s9889_s5 + $0x4b8] sm:$0xff] }
 0x21c   :  { %2185 = vmatpush1.bf16.msra.mxu1 %v6323_v24  ;;  %v6379_v24 = vcombine.low %v530_v11, %v534_v12  ;;  %v586_v11 = vld [vmem:[%s9889_s5 + $0x4d0] sm:$0xff] }
 0x21d   :  { %2267 = vmatpush1.bf16.msra.mxu0 %v6325_v25  ;;  %2186 = vmatprep.subr.bf16.mxu1 %v6332_v26  ;;  %v6381_v25 = vcombine.low %v531_v13, %v535_v14  ;;  %v6388_v26 = vcombine.high %v538_v21, %v542_v59  ;;  %v590_v12 = vld [vmem:[%s9889_s5 + $0x4f0] sm:$0xff]  ;;  %v591_v13 = vld [vmem:[%s9889_s5 + $0x4f8] sm:$0xff]  ;;  %v6429_v14 = vcombine.low %v579_v4, %v583_v6 }
 0x21e   :  { %2268 = vmatprep.subr.bf16.mxu0 %v6334_v28  ;;  %v6390_v28 = vcombine.high %v539_v22, %v543_v23 }
 0x220   :  { %2187 = vmatpush1.bf16.msra.mxu1 %v6331_v32  ;;  %v6387_v32 = vcombine.low %v538_v21, %v542_v59  ;;  %v595_v21 = vld [vmem:[%s9889_s5 + $0x518] sm:$0xff] }
 0x221   :  { %2269 = vmatpush1.bf16.msra.mxu0 %v6333_v33  ;;  %2188 = vmatprep.subr.bf16.mxu1 %v6340_v34  ;;  %v6389_v33 = vcombine.low %v539_v22, %v543_v23  ;;  %v6396_v34 = vcombine.high %v546_v29, %v550_v30  ;;  %v599_v59 = vld [vmem:[%s9889_s5 + $0x538] sm:$0xff]  ;;  %v6435_v22 = vcombine.low %v586_v11, %v590_v12 }
 0x222   :  { %2270 = vmatprep.subr.bf16.mxu0 %v6342_v35  ;;  %v6398_v35 = vcombine.high %v547_v2, %v551_v31 }
 0x224   :  { %2189 = vmatpush1.bf16.msra.mxu1 %v6339_v40  ;;  %v6395_v40 = vcombine.low %v546_v29, %v550_v30  ;;  %v603_v29 = vld [vmem:[%s9889_s5 + $0x558] sm:$0xff] }
 0x225   :  { %2271 = vmatpush1.bf16.msra.mxu0 %v6341_v42  ;;  %2190 = vmatprep.subr.bf16.mxu1 %v6348_v43  ;;  %v6397_v42 = vcombine.low %v547_v2, %v551_v31  ;;  %v6404_v43 = vcombine.high %v554_v36, %v558_v37  ;;  %v607_v30 = vld [vmem:[%s9889_s5 + $0x578] sm:$0xff]  ;;  %v6445_v31 = vcombine.low %v595_v21, %v599_v59 }
 0x226   :  { %2272 = vmatprep.subr.bf16.mxu0 %v6350_v44  ;;  %v6406_v44 = vcombine.high %v555_v38, %v559_v39 }
 0x228   :  { %2191 = vmatpush1.bf16.msra.mxu1 %v6347_v49  ;;  %v6403_v49 = vcombine.low %v554_v36, %v558_v37  ;;  %v611_v36 = vld [vmem:[%s9889_s5 + $0x598] sm:$0xff] }
 0x229   :  { %2273 = vmatpush1.bf16.msra.mxu0 %v6349_v50  ;;  %2192 = vmatprep.subr.bf16.mxu1 %v6356_v51  ;;  %v6405_v50 = vcombine.low %v555_v38, %v559_v39  ;;  %v6412_v51 = vcombine.high %v562_v45, %v566_v46  ;;  %v615_v37 = vld [vmem:[%s9889_s5 + $0x5b8] sm:$0xff]  ;;  %v6453_v39 = vcombine.low %v603_v29, %v607_v30 }
 0x22a   :  { %2274 = vmatprep.subr.bf16.mxu0 %v6358_v52  ;;  %v6414_v52 = vcombine.high %v563_v47, %v567_v48  ;;  %v619_v45 = vld [vmem:[%s9889_s5 + $0x5d8] sm:$0xff] }
 0x22b   :  { %v623_v46 = vld [vmem:[%s9889_s5 + $0x5f8] sm:$0xff] }
 0x22c   :  { %2193 = vmatpush1.bf16.msra.mxu1 %v6355_v56  ;;  %v575_v56 = vld [vmem:[%s9889_s5 + $0x478] sm:$0xff] }
 0x22d   :  { %2275 = vmatpush1.bf16.msra.mxu0 %v6357_v62  ;;  %2194 = vmatprep.subr.bf16.mxu1 %v6364_v63  ;;  %v6413_v62 = vcombine.low %v563_v47, %v567_v48  ;;  %v6420_v63 = vcombine.high %v570_v53, %v574_v54  ;;  %v6422_v3 = vcombine.high %v571_v19, %v575_v56 }
 0x22e   :  { %2276 = vmatprep.subr.bf16.mxu0 %v6366_v0  ;;  %v578_v0 = vld [vmem:[%s9889_s5 + $0x490] sm:$0xff]  ;;  %v6461_v48 = vcombine.low %v611_v36, %v615_v37 }
 0x230   :  { %2195 = vmatpush1.bf16.msra.mxu1 %v6363_v7  ;;  %v6419_v7 = vcombine.low %v570_v53, %v574_v54  ;;  %v627_v53 = vld [vmem:[%s9889_s5 + $0x618] sm:$0xff] }
 0x231   :  { %2277 = vmatpush1.bf16.msra.mxu0 %v6365_v8  ;;  %2196 = vmatprep.subr.bf16.mxu1 %v6372_v9  ;;  %v6421_v8 = vcombine.low %v571_v19, %v575_v56  ;;  %v6428_v9 = vcombine.high %v578_v0, %v582_v1  ;;  %v631_v54 = vld [vmem:[%s9889_s5 + $0x638] sm:$0xff]  ;;  %v6469_v19 = vcombine.low %v619_v45, %v623_v46 }
 0x232   :  { %2278 = vmatprep.subr.bf16.mxu0 %v6374_v10  ;;  %v6430_v10 = vcombine.high %v579_v4, %v583_v6  ;;  %v6477_v6 = vcombine.low %v627_v53, %v631_v54 }
 0x234   :  { %2197 = vmatpush1.bf16.msra.mxu1 %v6371_v15  ;;  %v6436_v15 = vcombine.high %v586_v11, %v590_v12  ;;  %v643_v11 = vld [vmem:[%s9889_s5 + $0x698] sm:$0xff] }
 0x235   :  { %2279 = vmatpush1.bf16.msra.mxu0 %v6373_v16  ;;  %2198 = vmatprep.subr.bf16.mxu1 %v6380_v17  ;;  %v594_v17 = vld [vmem:[%s9889_s5 + $0x510] sm:$0xff]  ;;  %v647_v12 = vld [vmem:[%s9889_s5 + $0x6b8] sm:$0xff] }
 0x236   :  { %2280 = vmatprep.subr.bf16.mxu0 %v6382_v18  ;;  %v598_v18 = vld [vmem:[%s9889_s5 + $0x530] sm:$0xff] }
 0x237   :  { %v6443_v2 = vcombine.low %v594_v17, %v598_v18 }
 0x238   :  { %2199 = vmatpush1.bf16.msra.mxu1 %v6379_v24  ;;  %v6444_v24 = vcombine.high %v594_v17, %v598_v18  ;;  %v651_v17 = vld [vmem:[%s9889_s5 + $0x6d8] sm:$0xff] }
 0x239   :  { %2281 = vmatpush1.bf16.msra.mxu0 %v6381_v25  ;;  %2200 = vmatprep.subr.bf16.mxu1 %v6388_v26  ;;  %v6446_v25 = vcombine.high %v595_v21, %v599_v59  ;;  %v602_v26 = vld [vmem:[%s9889_s5 + $0x550] sm:$0xff]  ;;  %v655_v18 = vld [vmem:[%s9889_s5 + $0x6f8] sm:$0xff]  ;;  %v6493_v59 = vcombine.low %v643_v11, %v647_v12 }
 0x23a   :  { %2282 = vmatprep.subr.bf16.mxu0 %v6390_v28  ;;  %v606_v28 = vld [vmem:[%s9889_s5 + $0x570] sm:$0xff] }
 0x23b   :  { %v6451_v38 = vcombine.low %v602_v26, %v606_v28 }
 0x23c   :  { %2201 = vmatpush1.bf16.msra.mxu1 %v6387_v32  ;;  %v6452_v32 = vcombine.high %v602_v26, %v606_v28  ;;  %v659_v26 = vld [vmem:[%s9889_s5 + $0x718] sm:$0xff] }
 0x23d   :  { %2283 = vmatpush1.bf16.msra.mxu0 %v6389_v33  ;;  %2202 = vmatprep.subr.bf16.mxu1 %v6396_v34  ;;  %v6454_v33 = vcombine.high %v603_v29, %v607_v30  ;;  %v610_v34 = vld [vmem:[%s9889_s5 + $0x590] sm:$0xff]  ;;  %v663_v28 = vld [vmem:[%s9889_s5 + $0x738] sm:$0xff]  ;;  %v6501_v30 = vcombine.low %v651_v17, %v655_v18 }
 0x23e   :  { %2284 = vmatprep.subr.bf16.mxu0 %v6398_v35  ;;  %v614_v35 = vld [vmem:[%s9889_s5 + $0x5b0] sm:$0xff] }
 0x23f   :  { %v6459_v47 = vcombine.low %v610_v34, %v614_v35 }
 0x240   :  { %2203 = vmatpush1.bf16.msra.mxu1 %v6395_v40  ;;  %v6460_v40 = vcombine.high %v610_v34, %v614_v35  ;;  %v667_v34 = vld [vmem:[%s9889_s5 + $0x758] sm:$0xff] }
 0x241   :  { %2285 = vmatpush1.bf16.msra.mxu0 %v6397_v42  ;;  %2204 = vmatprep.subr.bf16.mxu1 %v6404_v43  ;;  %v6462_v42 = vcombine.high %v611_v36, %v615_v37  ;;  %v618_v43 = vld [vmem:[%s9889_s5 + $0x5d0] sm:$0xff]  ;;  %v671_v35 = vld [vmem:[%s9889_s5 + $0x778] sm:$0xff]  ;;  %v6509_v37 = vcombine.low %v659_v26, %v663_v28 }
 0x242   :  { %2286 = vmatprep.subr.bf16.mxu0 %v6406_v44  ;;  %v622_v44 = vld [vmem:[%s9889_s5 + $0x5f0] sm:$0xff] }
 0x244   :  { %2205 = vmatpush1.bf16.msra.mxu1 %v6403_v49  ;;  %v6468_v49 = vcombine.high %v618_v43, %v622_v44 }
 0x245   :  { %2287 = vmatpush1.bf16.msra.mxu0 %v6405_v50  ;;  %2215 = vmatprep.subr.bf16.mxu1 %v6412_v51  ;;  %v6470_v50 = vcombine.high %v619_v45, %v623_v46  ;;  %v626_v51 = vld [vmem:[%s9889_s5 + $0x610] sm:$0xff]  ;;  %v6517_v46 = vcombine.low %v667_v34, %v671_v35 }
 0x246   :  { %2297 = vmatprep.subr.bf16.mxu0 %v6414_v52  ;;  %v630_v52 = vld [vmem:[%s9889_s5 + $0x630] sm:$0xff] }
 0x247   :  { %2207 = vmatmul.mubr.bf16.vlgmr.msra.gmra.mrb[8].mxu1 %v7622_v20  ;;  %v6476_v56 = vcombine.high %v626_v51, %v630_v52  ;;  %v6475_v4 = vcombine.low %v626_v51, %v630_v52  ;;  %v683_v51 = vld [vmem:[%s9889_s5 + $0x7d8] sm:$0xff] }
 0x248   :  { %2289 = vmatmul.mubr.bf16.vlgmr.msra.gmra.mrb[12].mxu0 %v7622_v20  ;;  %2216 = vmatpush1.bf16.msra.mxu1 %v6411_v55  ;;  %v587_v20 = vld [vmem:[%s9889_s5 + $0x4d8] sm:$0xff]  ;;  %v6467_v55 = vcombine.low %v618_v43, %v622_v44 }
 0x249   :  { %2247 = vmatprep.mubr.bf16.mxu1 %v7638_v27  ;;  %2298 = vmatpush1.bf16.msra.mxu0 %v6413_v62  ;;  %v6438_v16 = vcombine.high %v587_v20, %v591_v13  ;;  %v6437_v23 = vcombine.low %v587_v20, %v591_v13  ;;  %v6478_v62 = vcombine.high %v627_v53, %v631_v54  ;;  %v675_v43 = vld [vmem:[%s9889_s5 + $0x798] sm:$0xff] }
 0x24a   :  { %2329 = vmatprep.mubr.bf16.mxu0 %v7638_v27  ;;  %2217 = vmatprep.subr.bf16.mxu1 %v6420_v63  ;;  %v6427_v27 = vcombine.low %v578_v0, %v582_v1  ;;  %v634_v63 = vld [vmem:[%s9889_s5 + $0x650] sm:$0xff]  ;;  %v635_v1 = vld [vmem:[%s9889_s5 + $0x658] sm:$0xff] }
 0x24b   :  { %2299 = vmatprep.subr.bf16.mxu0 %v6422_v3  ;;  %v638_v0 = vld [vmem:[%s9889_s5 + $0x670] sm:$0xff]  ;;  %v639_v3 = vld [vmem:[%s9889_s5 + $0x678] sm:$0xff] }
 0x24c   :  { %2218 = vmatpush1.bf16.msra.mxu1 %v6419_v7  ;;  %v6484_v7 = vcombine.high %v634_v63, %v638_v0  ;;  %v6483_v20 = vcombine.low %v634_v63, %v638_v0  ;;  %v6485_v13 = vcombine.low %v635_v1, %v639_v3  ;;  %v679_v44 = vld [vmem:[%s9889_s5 + $0x7b8] sm:$0xff]  ;;  %v2355_v63 = vld [vmem:[%s9892_s7 + $0x8] sm:$0xff] }
 0x24d   :  { %2300 = vmatpush1.bf16.msra.mxu0 %v6421_v8  ;;  %2219 = vmatprep.subr.bf16.mxu1 %v6428_v9  ;;  %v6486_v8 = vcombine.high %v635_v1, %v639_v3  ;;  %v642_v9 = vld [vmem:[%s9889_s5 + $0x690] sm:$0xff]  ;;  %v687_v52 = vld [vmem:[%s9889_s5 + $0x7f8] sm:$0xff]  ;;  %v6525_v54 = vcombine.low %v675_v43, %v679_v44  ;;  %v2359_v0 = vld [vmem:[%s9892_s7 + $0x28] sm:$0xff] }
 0x24e   :  { %2301 = vmatprep.subr.bf16.mxu0 %v6430_v10  ;;  %v646_v10 = vld [vmem:[%s9889_s5 + $0x6b0] sm:$0xff]  ;;  %v6533_v3 = vcombine.low %v683_v51, %v687_v52 }
 0x24f   :  { %v6491_v21 = vcombine.low %v642_v9, %v646_v10 }
 0x250   :  { %2220 = vmatpush1.bf16.msra.mxu1 %v6427_v27  ;;  %v6492_v27 = vcombine.high %v642_v9, %v646_v10  ;;  %v2363_v9 = vld [vmem:[%s9892_s7 + $0x48] sm:$0xff] }
 0x251   :  { %2302 = vmatpush1.bf16.msra.mxu0 %v6429_v14  ;;  %2221 = vmatprep.subr.bf16.mxu1 %v6436_v15  ;;  %v6494_v14 = vcombine.high %v643_v11, %v647_v12  ;;  %v650_v15 = vld [vmem:[%s9889_s5 + $0x6d0] sm:$0xff]  ;;  %v2367_v10 = vld [vmem:[%s9892_s7 + $0x68] sm:$0xff]  ;;  %v6537_v12 = vcombine.low %v2355_v63, %v2359_v0 }
 0x252   :  { %2303 = vmatprep.subr.bf16.mxu0 %v6438_v16  ;;  %v654_v16 = vld [vmem:[%s9889_s5 + $0x6f0] sm:$0xff] }
 0x253   :  { %v6499_v29 = vcombine.low %v650_v15, %v654_v16 }
 0x254   :  { %2222 = vmatpush1.bf16.msra.mxu1 %v6435_v22  ;;  %v6500_v22 = vcombine.high %v650_v15, %v654_v16  ;;  %v2371_v15 = vld [vmem:[%s9892_s7 + $0x88] sm:$0xff] }
 0x255   :  { %2304 = vmatpush1.bf16.msra.mxu0 %v6437_v23  ;;  %2223 = vmatprep.subr.bf16.mxu1 %v6444_v24  ;;  %v6502_v23 = vcombine.high %v651_v17, %v655_v18  ;;  %v658_v24 = vld [vmem:[%s9889_s5 + $0x710] sm:$0xff]  ;;  %v2375_v16 = vld [vmem:[%s9892_s7 + $0xa8] sm:$0xff]  ;;  %v6545_v18 = vcombine.low %v2363_v9, %v2367_v10 }
 0x256   :  { %2305 = vmatprep.subr.bf16.mxu0 %v6446_v25  ;;  %v662_v25 = vld [vmem:[%s9889_s5 + $0x730] sm:$0xff] }
 0x257   :  { %v6507_v36 = vcombine.low %v658_v24, %v662_v25 }
 0x258   :  { %2224 = vmatpush1.bf16.msra.mxu1 %v6443_v2  ;;  %v6508_v2 = vcombine.high %v658_v24, %v662_v25  ;;  %v2383_v24 = vld [vmem:[%s9892_s7 + $0xe8] sm:$0xff] }
 0x259   :  { %2306 = vmatpush1.bf16.msra.mxu0 %v6445_v31  ;;  %2225 = vmatprep.subr.bf16.mxu1 %v6452_v32  ;;  %v6510_v31 = vcombine.high %v659_v26, %v663_v28  ;;  %v666_v32 = vld [vmem:[%s9889_s5 + $0x750] sm:$0xff]  ;;  %v6553_v26 = vcombine.low %v2371_v15, %v2375_v16 }
 0x25a   :  { %2307 = vmatprep.subr.bf16.mxu0 %v6454_v33  ;;  %v670_v33 = vld [vmem:[%s9889_s5 + $0x770] sm:$0xff] }
 0x25b   :  { %v6515_v45 = vcombine.low %v666_v32, %v670_v33 }
 0x25c   :  { %2226 = vmatpush1.bf16.msra.mxu1 %v6451_v38  ;;  %v6516_v38 = vcombine.high %v666_v32, %v670_v33  ;;  %v2391_v32 = vld [vmem:[%s9892_s7 + $0x128] sm:$0xff] }
 0x25d   :  { %2308 = vmatpush1.bf16.msra.mxu0 %v6453_v39  ;;  %2227 = vmatprep.subr.bf16.mxu1 %v6460_v40  ;;  %v6518_v39 = vcombine.high %v667_v34, %v671_v35  ;;  %v674_v40 = vld [vmem:[%s9889_s5 + $0x790] sm:$0xff] }
 0x25e   :  { %2309 = vmatprep.subr.bf16.mxu0 %v6462_v42  ;;  %v678_v42 = vld [vmem:[%s9889_s5 + $0x7b0] sm:$0xff] }
 0x25f   :  { %v6523_v53 = vcombine.low %v674_v40, %v678_v42 }
 0x260   :  { %2228 = vmatpush1.bf16.msra.mxu1 %v6459_v47  ;;  %v6524_v47 = vcombine.high %v674_v40, %v678_v42  ;;  %v2399_v40 = vld [vmem:[%s9892_s7 + $0x168] sm:$0xff] }
 0x261   :  { %2310 = vmatpush1.bf16.msra.mxu0 %v6461_v48  ;;  %2229 = vmatprep.subr.bf16.mxu1 %v6468_v49  ;;  %v6526_v48 = vcombine.high %v675_v43, %v679_v44  ;;  %v682_v49 = vld [vmem:[%s9889_s5 + $0x7d0] sm:$0xff] }
 0x262   :  { %2311 = vmatprep.subr.bf16.mxu0 %v6470_v50  ;;  %v686_v50 = vld [vmem:[%s9889_s5 + $0x7f0] sm:$0xff] }
 0x263   :  { %v6531_v1 = vcombine.low %v682_v49, %v686_v50 }
 0x264   :  { %2230 = vmatpush1.bf16.msra.mxu1 %v6467_v55  ;;  %v6532_v55 = vcombine.high %v682_v49, %v686_v50  ;;  %v2407_v49 = vld [vmem:[%s9892_s7 + $0x1a8] sm:$0xff] }
 0x265   :  { %2312 = vmatpush1.bf16.msra.mxu0 %v6469_v19  ;;  %2231 = vmatprep.subr.bf16.mxu1 %v6476_v56  ;;  %v6534_v19 = vcombine.high %v683_v51, %v687_v52  ;;  %v2354_v56 = vld [vmem:[%s9892_s7] sm:$0xff] }
 0x266   :  { %2313 = vmatprep.subr.bf16.mxu0 %v6478_v62  ;;  %v2358_v62 = vld [vmem:[%s9892_s7 + $0x20] sm:$0xff] }
 0x267   :  { %v6535_v11 = vcombine.low %v2354_v56, %v2358_v62 }
 0x268   :  { %2232 = vmatpush1.bf16.msra.mxu1 %v6475_v4  ;;  %v6536_v4 = vcombine.high %v2354_v56, %v2358_v62  ;;  %v2415_v56 = vld [vmem:[%s9892_s7 + $0x1e8] sm:$0xff] }
 0x269   :  { %2314 = vmatpush1.bf16.msra.mxu0 %v6477_v6  ;;  %2233 = vmatprep.subr.bf16.mxu1 %v6484_v7  ;;  %v6538_v6 = vcombine.high %v2355_v63, %v2359_v0  ;;  %v2362_v7 = vld [vmem:[%s9892_s7 + $0x40] sm:$0xff] }
 0x26a   :  { %2315 = vmatprep.subr.bf16.mxu0 %v6486_v8  ;;  %v2366_v8 = vld [vmem:[%s9892_s7 + $0x60] sm:$0xff] }
 0x26b   :  { %v6543_v17 = vcombine.low %v2362_v7, %v2366_v8 }
 0x26c   :  { %2234 = vmatpush1.bf16.msra.mxu1 %v6483_v20  ;;  %v6544_v20 = vcombine.high %v2362_v7, %v2366_v8  ;;  %v2423_v7 = vld [vmem:[%s9892_s7 + $0x228] sm:$0xff] }
 0x26d   :  { %2316 = vmatpush1.bf16.msra.mxu0 %v6485_v13  ;;  %2235 = vmatprep.subr.bf16.mxu1 %v6492_v27  ;;  %v6546_v13 = vcombine.high %v2363_v9, %v2367_v10  ;;  %v2370_v27 = vld [vmem:[%s9892_s7 + $0x80] sm:$0xff] }
 0x26e   :  { %2317 = vmatprep.subr.bf16.mxu0 %v6494_v14  ;;  %v2374_v14 = vld [vmem:[%s9892_s7 + $0xa0] sm:$0xff] }
 0x26f   :  { %v6551_v25 = vcombine.low %v2370_v27, %v2374_v14 }
 0x270   :  { %2236 = vmatpush1.bf16.msra.mxu1 %v6491_v21  ;;  %v6552_v21 = vcombine.high %v2370_v27, %v2374_v14  ;;  %v2431_v27 = vld [vmem:[%s9892_s7 + $0x268] sm:$0xff] }
 0x271   :  { %2318 = vmatpush1.bf16.msra.mxu0 %v6493_v59  ;;  %2237 = vmatprep.subr.bf16.mxu1 %v6500_v22  ;;  %v6554_v59 = vcombine.high %v2371_v15, %v2375_v16  ;;  %v2378_v22 = vld [vmem:[%s9892_s7 + $0xc0] sm:$0xff] }
 0x272   :  { %2319 = vmatprep.subr.bf16.mxu0 %v6502_v23  ;;  %v2382_v23 = vld [vmem:[%s9892_s7 + $0xe0] sm:$0xff] }
 0x273   :  { %v6560_v28 = vcombine.high %v2378_v22, %v2382_v23  ;;  %v6559_v33 = vcombine.low %v2378_v22, %v2382_v23  ;;  %v2439_v22 = vld [vmem:[%s9892_s7 + $0x2a8] sm:$0xff] }
 0x274   :  { %2238 = vmatpush1.bf16.msra.mxu1 %v6499_v29 }
 0x275   :  { %2320 = vmatpush1.bf16.msra.mxu0 %v6501_v30  ;;  %2239 = vmatprep.subr.bf16.mxu1 %v6508_v2  ;;  %v2386_v30 = vld [vmem:[%s9892_s7 + $0x100] sm:$0xff] }
 0x276   :  { %2321 = vmatprep.subr.bf16.mxu0 %v6510_v31  ;;  %v2390_v2 = vld [vmem:[%s9892_s7 + $0x120] sm:$0xff]  ;;  %v2387_v31 = vld [vmem:[%s9892_s7 + $0x108] sm:$0xff] }
 0x277   :  { %v6568_v35 = vcombine.high %v2386_v30, %v2390_v2  ;;  %v6567_v42 = vcombine.low %v2386_v30, %v2390_v2  ;;  %v6569_v43 = vcombine.low %v2387_v31, %v2391_v32  ;;  %v2447_v30 = vld [vmem:[%s9892_s7 + $0x2e8] sm:$0xff] }
 0x278   :  { %2240 = vmatpush1.bf16.msra.mxu1 %v6507_v36  ;;  %v6570_v36 = vcombine.high %v2387_v31, %v2391_v32 }
 0x279   :  { %2322 = vmatpush1.bf16.msra.mxu0 %v6509_v37  ;;  %2241 = vmatprep.subr.bf16.mxu1 %v6516_v38  ;;  %v2394_v37 = vld [vmem:[%s9892_s7 + $0x140] sm:$0xff] }
 0x27a   :  { %2323 = vmatprep.subr.bf16.mxu0 %v6518_v39  ;;  %v2398_v38 = vld [vmem:[%s9892_s7 + $0x160] sm:$0xff]  ;;  %v2395_v39 = vld [vmem:[%s9892_s7 + $0x148] sm:$0xff] }
 0x27b   :  { %v6576_v44 = vcombine.high %v2394_v37, %v2398_v38  ;;  %v6575_v50 = vcombine.low %v2394_v37, %v2398_v38  ;;  %v6577_v51 = vcombine.low %v2395_v39, %v2399_v40  ;;  %v2455_v37 = vld [vmem:[%s9892_s7 + $0x328] sm:$0xff] }
 0x27c   :  { %2242 = vmatpush1.bf16.msra.mxu1 %v6515_v45  ;;  %v6578_v45 = vcombine.high %v2395_v39, %v2399_v40 }
 0x27d   :  { %2324 = vmatpush1.bf16.msra.mxu0 %v6517_v46  ;;  %2243 = vmatprep.subr.bf16.mxu1 %v6524_v47  ;;  %v2402_v46 = vld [vmem:[%s9892_s7 + $0x180] sm:$0xff] }
 0x27e   :  { %2325 = vmatprep.subr.bf16.mxu0 %v6526_v48  ;;  %v2406_v47 = vld [vmem:[%s9892_s7 + $0x1a0] sm:$0xff]  ;;  %v2403_v48 = vld [vmem:[%s9892_s7 + $0x188] sm:$0xff] }
 0x27f   :  { %v6584_v52 = vcombine.high %v2402_v46, %v2406_v47  ;;  %v6583_v62 = vcombine.low %v2402_v46, %v2406_v47  ;;  %v6585_v63 = vcombine.low %v2403_v48, %v2407_v49  ;;  %v2463_v46 = vld [vmem:[%s9892_s7 + $0x368] sm:$0xff] }
 0x280   :  { %2244 = vmatpush1.bf16.msra.mxu1 %v6523_v53  ;;  %v6586_v53 = vcombine.high %v2403_v48, %v2407_v49 }
 0x281   :  { %2326 = vmatpush1.bf16.msra.mxu0 %v6525_v54  ;;  %2245 = vmatprep.subr.bf16.mxu1 %v6532_v55  ;;  %v2410_v54 = vld [vmem:[%s9892_s7 + $0x1c0] sm:$0xff] }
 0x282   :  { %2327 = vmatprep.subr.bf16.mxu0 %v6534_v19  ;;  %v2414_v55 = vld [vmem:[%s9892_s7 + $0x1e0] sm:$0xff]  ;;  %v2411_v19 = vld [vmem:[%s9892_s7 + $0x1c8] sm:$0xff] }
 0x283   :  { %v6592_v0 = vcombine.high %v2410_v54, %v2414_v55  ;;  %v6591_v8 = vcombine.low %v2410_v54, %v2414_v55  ;;  %v6593_v9 = vcombine.low %v2411_v19, %v2415_v56  ;;  %v2471_v54 = vld [vmem:[%s9892_s7 + $0x3a8] sm:$0xff] }
 0x284   :  { %2246 = vmatpush1.bf16.msra.mxu1 %v6531_v1  ;;  %v6594_v1 = vcombine.high %v2411_v19, %v2415_v56 }
 0x285   :  { %2328 = vmatpush1.bf16.msra.mxu0 %v6533_v3  ;;  %5468 = vmatprep.subr.bf16.mxu1 %v6536_v4  ;;  %v2418_v3 = vld [vmem:[%s9892_s7 + $0x200] sm:$0xff] }
 0x286   :  { %5632 = vmatprep.subr.bf16.mxu0 %v6538_v6  ;;  %v2422_v4 = vld [vmem:[%s9892_s7 + $0x220] sm:$0xff]  ;;  %v2419_v6 = vld [vmem:[%s9892_s7 + $0x208] sm:$0xff] }
 0x287   :  { %2248 = vmatmul.mubr.bf16.vlgmr.msra.gmra.mrb[8].mxu1 %v7830_v41  ;;  %v6600_v10 = vcombine.high %v2418_v3, %v2422_v4  ;;  %v6599_v14 = vcombine.low %v2418_v3, %v2422_v4  ;;  %v6601_v15 = vcombine.low %v2419_v6, %v2423_v7  ;;  %v2479_v3 = vld [vmem:[%s9892_s7 + $0x3e8] sm:$0xff] }
 0x288   :  { %2330 = vmatmul.mubr.bf16.vlgmr.msra.gmra.mrb[12].mxu0 %v7830_v41  ;;  %5469 = vmatpush1.bf16.msra.mxu1 %v6535_v11  ;;  %v2379_v41 = vld [vmem:[%s9892_s7 + $0xc8] sm:$0xff]  ;;  %v6602_v11 = vcombine.high %v2419_v6, %v2423_v7 }
 0x289   :  { %5633 = vmatpush1.bf16.msra.mxu0 %v6537_v12  ;;  %5470 = vmatprep.subr.bf16.mxu1 %v6544_v20  ;;  %v6562_v29 = vcombine.high %v2379_v41, %v2383_v24  ;;  %v6561_v34 = vcombine.low %v2379_v41, %v2383_v24  ;;  %v2426_v12 = vld [vmem:[%s9892_s7 + $0x240] sm:$0xff] }
 0x28a   :  { %5634 = vmatprep.subr.bf16.mxu0 %v6546_v13  ;;  %v2430_v20 = vld [vmem:[%s9892_s7 + $0x260] sm:$0xff]  ;;  %v2427_v13 = vld [vmem:[%s9892_s7 + $0x248] sm:$0xff] }
 0x28b   :  { %v6608_v16 = vcombine.high %v2426_v12, %v2430_v20  ;;  %v6607_v23 = vcombine.low %v2426_v12, %v2430_v20  ;;  %v6609_v41 = vcombine.low %v2427_v13, %v2431_v27  ;;  %v2487_v12 = vld [vmem:[%s9892_s7 + $0x428] sm:$0xff] }
 0x28c   :  { %5471 = vmatpush1.bf16.msra.mxu1 %v6543_v17  ;;  %v6610_v17 = vcombine.high %v2427_v13, %v2431_v27 }
 0x28d   :  { %5635 = vmatpush1.bf16.msra.mxu0 %v6545_v18  ;;  %5472 = vmatprep.subr.bf16.mxu1 %v6552_v21  ;;  %v2434_v18 = vld [vmem:[%s9892_s7 + $0x280] sm:$0xff] }
 0x28e   :  { %5636 = vmatprep.subr.bf16.mxu0 %v6554_v59  ;;  %v2438_v21 = vld [vmem:[%s9892_s7 + $0x2a0] sm:$0xff]  ;;  %v2435_v59 = vld [vmem:[%s9892_s7 + $0x288] sm:$0xff] }
 0x28f   :  { %v6616_v24 = vcombine.high %v2434_v18, %v2438_v21  ;;  %v6615_v2 = vcombine.low %v2434_v18, %v2438_v21  ;;  %v6617_v31 = vcombine.low %v2435_v59, %v2439_v22 }
 0x290   :  { %5473 = vmatpush1.bf16.msra.mxu1 %v6551_v25  ;;  %v6618_v25 = vcombine.high %v2435_v59, %v2439_v22 }
 0x291   :  { %5637 = vmatpush1.bf16.msra.mxu0 %v6553_v26  ;;  %5474 = vmatprep.subr.bf16.mxu1 %v6560_v28  ;;  %v2442_v26 = vld [vmem:[%s9892_s7 + $0x2c0] sm:$0xff] }
 0x292   :  { %5638 = vmatprep.subr.bf16.mxu0 %v6562_v29  ;;  %v2446_v28 = vld [vmem:[%s9892_s7 + $0x2e0] sm:$0xff]  ;;  %v2443_v29 = vld [vmem:[%s9892_s7 + $0x2c8] sm:$0xff] }
 0x293   :  { %v6624_v32 = vcombine.high %v2442_v26, %v2446_v28  ;;  %v6623_v38 = vcombine.low %v2442_v26, %v2446_v28  ;;  %v6625_v39 = vcombine.low %v2443_v29, %v2447_v30 }
 0x294   :  { %5475 = vmatpush1.bf16.msra.mxu1 %v6559_v33  ;;  %v6626_v33 = vcombine.high %v2443_v29, %v2447_v30 }
 0x295   :  { %5639 = vmatpush1.bf16.msra.mxu0 %v6561_v34  ;;  %5476 = vmatprep.subr.bf16.mxu1 %v6568_v35  ;;  %v2450_v34 = vld [vmem:[%s9892_s7 + $0x300] sm:$0xff] }
 0x296   :  { %5640 = vmatprep.subr.bf16.mxu0 %v6570_v36  ;;  %v2454_v35 = vld [vmem:[%s9892_s7 + $0x320] sm:$0xff]  ;;  %v2451_v36 = vld [vmem:[%s9892_s7 + $0x308] sm:$0xff] }
 0x297   :  { %v6632_v40 = vcombine.high %v2450_v34, %v2454_v35  ;;  %v6631_v47 = vcombine.low %v2450_v34, %v2454_v35  ;;  %v6633_v48 = vcombine.low %v2451_v36, %v2455_v37  ;;  %v2494_v34 = vld [vmem:[%s9892_s7 + $0x460] sm:$0xff]  ;;  %v2491_v35 = vld [vmem:[%s9892_s7 + $0x448] sm:$0xff] }
 0x298   :  { %5477 = vmatpush1.bf16.msra.mxu1 %v6567_v42  ;;  %v6634_v42 = vcombine.high %v2451_v36, %v2455_v37  ;;  %v2495_v36 = vld [vmem:[%s9892_s7 + $0x468] sm:$0xff] }
 0x299   :  { %5641 = vmatpush1.bf16.msra.mxu0 %v6569_v43  ;;  %5478 = vmatprep.subr.bf16.mxu1 %v6576_v44  ;;  %v2458_v43 = vld [vmem:[%s9892_s7 + $0x340] sm:$0xff] }
 0x29a   :  { %5642 = vmatprep.subr.bf16.mxu0 %v6578_v45  ;;  %v2462_v44 = vld [vmem:[%s9892_s7 + $0x360] sm:$0xff]  ;;  %v2459_v45 = vld [vmem:[%s9892_s7 + $0x348] sm:$0xff] }
 0x29b   :  { %v6640_v49 = vcombine.high %v2458_v43, %v2462_v44  ;;  %v6639_v55 = vcombine.low %v2458_v43, %v2462_v44  ;;  %v6641_v19 = vcombine.low %v2459_v45, %v2463_v46  ;;  %v6674_v44 = vcombine.high %v2491_v35, %v2495_v36 }
 0x29c   :  { %5479 = vmatpush1.bf16.msra.mxu1 %v6575_v50  ;;  %v6642_v50 = vcombine.high %v2459_v45, %v2463_v46  ;;  %v2502_v45 = vld [vmem:[%s9892_s7 + $0x4a0] sm:$0xff]  ;;  %v2499_v46 = vld [vmem:[%s9892_s7 + $0x488] sm:$0xff] }
 0x29d   :  { %5643 = vmatpush1.bf16.msra.mxu0 %v6577_v51  ;;  %5480 = vmatprep.subr.bf16.mxu1 %v6584_v52  ;;  %v2466_v51 = vld [vmem:[%s9892_s7 + $0x380] sm:$0xff] }
 0x29e   :  { %5644 = vmatprep.subr.bf16.mxu0 %v6586_v53  ;;  %v2470_v52 = vld [vmem:[%s9892_s7 + $0x3a0] sm:$0xff]  ;;  %v2467_v53 = vld [vmem:[%s9892_s7 + $0x388] sm:$0xff] }
 0x29f   :  { %v6648_v56 = vcombine.high %v2466_v51, %v2470_v52  ;;  %v6647_v4 = vcombine.low %v2466_v51, %v2470_v52  ;;  %v6649_v6 = vcombine.low %v2467_v53, %v2471_v54 }
 0x2a0   :  { %5481 = vmatpush1.bf16.msra.mxu1 %v6583_v62  ;;  %v6650_v62 = vcombine.high %v2467_v53, %v2471_v54  ;;  %v2506_v53 = vld [vmem:[%s9892_s7 + $0x4c0] sm:$0xff] }
 0x2a1   :  { %5645 = vmatpush1.bf16.msra.mxu0 %v6585_v63  ;;  %5482 = vmatprep.subr.bf16.mxu1 %v6592_v0  ;;  %v2474_v63 = vld [vmem:[%s9892_s7 + $0x3c0] sm:$0xff] }
 0x2a2   :  { %5646 = vmatprep.subr.bf16.mxu0 %v6594_v1  ;;  %v2478_v0 = vld [vmem:[%s9892_s7 + $0x3e0] sm:$0xff]  ;;  %v2475_v1 = vld [vmem:[%s9892_s7 + $0x3c8] sm:$0xff] }
 0x2a3   :  { %v6656_v7 = vcombine.high %v2474_v63, %v2478_v0  ;;  %v6655_v20 = vcombine.low %v2474_v63, %v2478_v0  ;;  %v6657_v13 = vcombine.low %v2475_v1, %v2479_v3  ;;  %v2510_v54 = vld [vmem:[%s9892_s7 + $0x4e0] sm:$0xff] }
 0x2a4   :  { %5483 = vmatpush1.bf16.msra.mxu1 %v6591_v8  ;;  %v6658_v8 = vcombine.high %v2475_v1, %v2479_v3  ;;  %v6688_v63 = vcombine.high %v2506_v53, %v2510_v54  ;;  %v2514_v1 = vld [vmem:[%s9892_s7 + $0x500] sm:$0xff] }
 0x2a5   :  { %5647 = vmatpush1.bf16.msra.mxu0 %v6593_v9  ;;  %5484 = vmatprep.subr.bf16.mxu1 %v6600_v10  ;;  %v2482_v9 = vld [vmem:[%s9892_s7 + $0x400] sm:$0xff] }
 0x2a6   :  { %5648 = vmatprep.subr.bf16.mxu0 %v6602_v11  ;;  %v2486_v10 = vld [vmem:[%s9892_s7 + $0x420] sm:$0xff]  ;;  %v2483_v11 = vld [vmem:[%s9892_s7 + $0x408] sm:$0xff] }
 0x2a7   :  { %v6664_v27 = vcombine.high %v2482_v9, %v2486_v10  ;;  %v2518_v3 = vld [vmem:[%s9892_s7 + $0x520] sm:$0xff] }
 0x2a8   :  { %5485 = vmatpush1.bf16.msra.mxu1 %v6599_v14  ;;  %v6666_v14 = vcombine.high %v2483_v11, %v2487_v12 }
 0x2a9   :  { %5649 = vmatpush1.bf16.msra.mxu0 %v6601_v15  ;;  %5486 = vmatprep.subr.bf16.mxu1 %v6608_v16  ;;  %v8409_v15 = vld [vmem:[%s9893_s6] sm:$0xff] }
 0x2aa   :  { %5650 = vmatprep.subr.bf16.mxu0 %v6610_v17  ;;  %v693_v16 = vrot.slane %v8409_v15, %v7587_v58  ;;  %v697_v17 = vrot.slane %v8409_v15, %v7595_v60  ;;  %v705_v18 = vrot.slane %v8409_v15, %v7598_v61 }
 0x2ac   :  { %5487 = vmatpush1.bf16.msra.mxu1 %v6607_v23 }
 0x2ad   :  { %5651 = vmatpush1.bf16.msra.mxu0 %v6609_v41  ;;  %5488 = vmatprep.subr.bf16.mxu1 %v6616_v24 }
 0x2ae   :  { %5652 = vmatprep.subr.bf16.mxu0 %v6618_v25 }
 0x2b0   :  { %5489 = vmatpush1.bf16.msra.mxu1 %v6615_v2 }
 0x2b1   :  { %5653 = vmatpush1.bf16.msra.mxu0 %v6617_v31  ;;  %5490 = vmatprep.subr.bf16.mxu1 %v6624_v32  ;;  %v2490_v32 = vld [vmem:[%s9892_s7 + $0x440] sm:$0xff] }
 0x2b2   :  { %5654 = vmatprep.subr.bf16.mxu0 %v6626_v33  ;;  %v6672_v43 = vcombine.high %v2490_v32, %v2494_v34 }
 0x2b4   :  { %5491 = vmatpush1.bf16.msra.mxu1 %v6623_v38  ;;  %v6663_v38 = vcombine.low %v2482_v9, %v2486_v10  ;;  %v6696_v9 = vcombine.high %v2514_v1, %v2518_v3 }
 0x2b5   :  { %5655 = vmatpush1.bf16.msra.mxu0 %v6625_v39  ;;  %5492 = vmatprep.subr.bf16.mxu1 %v6632_v40  ;;  %v6665_v39 = vcombine.low %v2483_v11, %v2487_v12  ;;  %v2522_v11 = vld [vmem:[%s9892_s7 + $0x540] sm:$0xff] }
 0x2b6   :  { %5656 = vmatprep.subr.bf16.mxu0 %v6634_v42  ;;  %v2498_v42 = vld [vmem:[%s9892_s7 + $0x480] sm:$0xff] }
 0x2b7   :  { %v6680_v51 = vcombine.high %v2498_v42, %v2502_v45  ;;  %v2526_v12 = vld [vmem:[%s9892_s7 + $0x560] sm:$0xff] }
 0x2b8   :  { %5493 = vmatpush1.bf16.msra.mxu1 %v6631_v47  ;;  %v2503_v47 = vld [vmem:[%s9892_s7 + $0x4a8] sm:$0xff] }
 0x2b9   :  { %5657 = vmatpush1.bf16.msra.mxu0 %v6633_v48  ;;  %5494 = vmatprep.subr.bf16.mxu1 %v6640_v49  ;;  %v6671_v49 = vcombine.low %v2490_v32, %v2494_v34  ;;  %v6682_v52 = vcombine.high %v2499_v46, %v2503_v47 }
 0x2ba   :  { %5658 = vmatprep.subr.bf16.mxu0 %v6642_v50  ;;  %v6673_v50 = vcombine.low %v2491_v35, %v2495_v36  ;;  %v2546_v35 = vld [vmem:[%s9892_s7 + $0x600] sm:$0xff] }
 0x2bb   :  { %v2550_v36 = vld [vmem:[%s9892_s7 + $0x620] sm:$0xff] }
 0x2bc   :  { %5495 = vmatpush1.bf16.msra.mxu1 %v6639_v55  ;;  %v2507_v55 = vld [vmem:[%s9892_s7 + $0x4c8] sm:$0xff] }
 0x2bd   :  { %5659 = vmatpush1.bf16.msra.mxu0 %v6641_v19  ;;  %5496 = vmatprep.subr.bf16.mxu1 %v6648_v56  ;;  %v2511_v19 = vld [vmem:[%s9892_s7 + $0x4e8] sm:$0xff]  ;;  %v6679_v56 = vcombine.low %v2498_v42, %v2502_v45 }
 0x2be   :  { %5660 = vmatprep.subr.bf16.mxu0 %v6650_v62  ;;  %v6681_v62 = vcombine.low %v2499_v46, %v2503_v47  ;;  %v6690_v0 = vcombine.high %v2507_v55, %v2511_v19  ;;  %v2554_v46 = vld [vmem:[%s9892_s7 + $0x640] sm:$0xff] }
 0x2bf   :  { %v2558_v47 = vld [vmem:[%s9892_s7 + $0x660] sm:$0xff] }
 0x2c0   :  { %5497 = vmatpush1.bf16.msra.mxu1 %v6647_v4  ;;  %v2515_v4 = vld [vmem:[%s9892_s7 + $0x508] sm:$0xff] }
 0x2c1   :  { %5661 = vmatpush1.bf16.msra.mxu0 %v6649_v6  ;;  %5498 = vmatprep.subr.bf16.mxu1 %v6656_v7  ;;  %v2519_v6 = vld [vmem:[%s9892_s7 + $0x528] sm:$0xff]  ;;  %v6687_v7 = vcombine.low %v2506_v53, %v2510_v54  ;;  %v6736_v53 = vcombine.high %v2554_v46, %v2558_v47 }
 0x2c2   :  { %5662 = vmatprep.subr.bf16.mxu0 %v6658_v8  ;;  %v6689_v8 = vcombine.low %v2507_v55, %v2511_v19  ;;  %v6698_v10 = vcombine.high %v2515_v4, %v2519_v6  ;;  %v2562_v55 = vld [vmem:[%s9892_s7 + $0x680] sm:$0xff] }
 0x2c3   :  { %v2566_v19 = vld [vmem:[%s9892_s7 + $0x6a0] sm:$0xff] }
 0x2c4   :  { %5499 = vmatpush1.bf16.msra.mxu1 %v6655_v20  ;;  %v2523_v20 = vld [vmem:[%s9892_s7 + $0x548] sm:$0xff] }
 0x2c5   :  { %5663 = vmatpush1.bf16.msra.mxu0 %v6657_v13  ;;  %5509 = vmatprep.subr.bf16.mxu1 %v6664_v27  ;;  %v2527_v13 = vld [vmem:[%s9892_s7 + $0x568] sm:$0xff]  ;;  %v6695_v27 = vcombine.low %v2514_v1, %v2518_v3  ;;  %v6744_v1 = vcombine.high %v2562_v55, %v2566_v19 }
 0x2c6   :  { %5673 = vmatprep.subr.bf16.mxu0 %v6666_v14  ;;  %v6697_v14 = vcombine.low %v2515_v4, %v2519_v6  ;;  %v2570_v4 = vld [vmem:[%s9892_s7 + $0x6c0] sm:$0xff] }
 0x2c7   :  { %v2574_v6 = vld [vmem:[%s9892_s7 + $0x6e0] sm:$0xff] }
 0x2da   :  { %v2085_v21 = vpop.f32.mrb[4].mxu1  ;;  %v8417_v59 = vpop.f32.mrb[8].mxu0 }
 0x2db   :  { %v7065_v22 = vadd.f32 %v2085_v21, %v693_v16  ;;  %v2087_v23 = vpop.f32.mrb[5].mxu1  ;;  %v2169_v41 = vpop.f32.mrb[9].mxu0  ;;  %v6704_v16 = vcombine.high %v2522_v11, %v2526_v12  ;;  %v2534_v21 = vld [vmem:[%s9892_s7 + $0x5a0] sm:$0xff] }
 0x2dc   :  { %v7066_v24 = vadd.f32 %v2087_v23, %v697_v17  ;;  %v7068_v25 = vadd.f32 %v2169_v41, %v705_v18  ;;  %v2089_v26 = vpop.f32.mrb[6].mxu1  ;;  %v2171_v28 = vpop.f32.mrb[10].mxu0  ;;  %v6706_v17 = vcombine.high %v2523_v20, %v2527_v13  ;;  %v2530_v18 = vld [vmem:[%s9892_s7 + $0x580] sm:$0xff]  ;;  %v2535_v23 = vld [vmem:[%s9892_s7 + $0x5a8] sm:$0xff]  ;;  %v6703_v41 = vcombine.low %v2522_v11, %v2526_v12 }
 0x2dd   :  { %v2338_v29 = vmax.f32 %v7065_v22, 0.0  ;;  %v2090_v30 = vpop.f32.mrb[7].mxu1  ;;  %v2172_v2 = vpop.f32.mrb[11].mxu0  ;;  %v2531_v22 = vld [vmem:[%s9892_s7 + $0x588] sm:$0xff]  ;;  %v2538_v28 = vld [vmem:[%s9892_s7 + $0x5c0] sm:$0xff]  ;;  %v6752_v11 = vcombine.high %v2570_v4, %v2574_v6 }
 0x2de   :  { %v2339_v31 = vmax.f32 %v7066_v24, 0.0  ;;  %v2341_v33 = vmax.f32 %v7068_v25, 0.0  ;;  %v6705_v24 = vcombine.low %v2523_v20, %v2527_v13  ;;  %v6712_v25 = vcombine.high %v2530_v18, %v2534_v21  ;;  %v2539_v30 = vld [vmem:[%s9892_s7 + $0x5c8] sm:$0xff]  ;;  %v2578_v20 = vld [vmem:[%s9892_s7 + $0x700] sm:$0xff] }
 0x2df   :  { %v8433_v40 = vpack.c.bf16 %v2338_v29, %v2338_v29  ;;  %v6714_v26 = vcombine.high %v2531_v22, %v2535_v23  ;;  %v2542_v29 = vld [vmem:[%s9892_s7 + $0x5e0] sm:$0xff]  ;;  %v2543_v2 = vld [vmem:[%s9892_s7 + $0x5e8] sm:$0xff]  ;;  %v6713_v32 = vcombine.low %v2531_v22, %v2535_v23 }
 0x2e0   :  { %v8431_v37 = vpack.c.bf16 %v2339_v31, %v2339_v31  ;;  %v8449_v48 = vpack.c.bf16 %v2341_v33, %v2341_v33  ;;  %v6711_v31 = vcombine.low %v2530_v18, %v2534_v21  ;;  %v6720_v33 = vcombine.high %v2538_v28, %v2542_v29  ;;  %v2582_v13 = vld [vmem:[%s9892_s7 + $0x720] sm:$0xff] }
 0x2e1   :  { %v6722_v34 = vcombine.high %v2539_v30, %v2543_v2  ;;  %v6719_v42 = vcombine.low %v2538_v28, %v2542_v29  ;;  %v6760_v18 = vcombine.high %v2578_v20, %v2582_v13  ;;  %v2586_v22 = vld [vmem:[%s9892_s7 + $0x740] sm:$0xff] }
 0x2e2   :  { %5500 = vmatprep.mubr.bf16.mxu1 %v8431_v37  ;;  %5664 = vmatprep.mubr.bf16.mxu0 %v8431_v37  ;;  %v2590_v23 = vld [vmem:[%s9892_s7 + $0x760] sm:$0xff] }
 0x2e3   :  { %5501 = vmatmul.mubr.bf16.vlgmr.msra.gmra.mrb[12].mxu1 %v8433_v40  ;;  %5665 = vmatmul.mubr.bf16.vlgmr.msra.gmra.mrb[16].mxu0 %v8433_v40  ;;  %v6768_v28 = vcombine.high %v2586_v22, %v2590_v23 }
 0x2e4   :  { %5510 = vmatpush1.bf16.msra.mxu1 %v6663_v38  ;;  %5674 = vmatpush1.bf16.msra.mxu0 %v6665_v39  ;;  %v2547_v38 = vld [vmem:[%s9892_s7 + $0x608] sm:$0xff] }
 0x2e5   :  { %5541 = vmatprep.mubr.bf16.mxu1 %v8449_v48  ;;  %5705 = vmatprep.mubr.bf16.mxu0 %v8449_v48  ;;  %v2551_v39 = vld [vmem:[%s9892_s7 + $0x628] sm:$0xff] }
 0x2e6   :  { %5511 = vmatprep.subr.bf16.mxu1 %v6672_v43  ;;  %5675 = vmatprep.subr.bf16.mxu0 %v6674_v44  ;;  %v6721_v43 = vcombine.low %v2539_v30, %v2543_v2  ;;  %v6728_v44 = vcombine.high %v2546_v35, %v2550_v36  ;;  %v6730_v45 = vcombine.high %v2547_v38, %v2551_v39  ;;  %v2594_v30 = vld [vmem:[%s9892_s7 + $0x780] sm:$0xff] }
 0x2e7   :  { %v2598_v2 = vld [vmem:[%s9892_s7 + $0x7a0] sm:$0xff] }
 0x2e8   :  { %5512 = vmatpush1.bf16.msra.mxu1 %v6671_v49  ;;  %5676 = vmatpush1.bf16.msra.mxu0 %v6673_v50  ;;  %v2555_v49 = vld [vmem:[%s9892_s7 + $0x648] sm:$0xff] }
 0x2e9   :  { %5513 = vmatprep.subr.bf16.mxu1 %v6680_v51  ;;  %5677 = vmatprep.subr.bf16.mxu0 %v6682_v52  ;;  %v2559_v50 = vld [vmem:[%s9892_s7 + $0x668] sm:$0xff]  ;;  %v6727_v51 = vcombine.low %v2546_v35, %v2550_v36  ;;  %v6729_v52 = vcombine.low %v2547_v38, %v2551_v39  ;;  %v701_v35 = vrot.slane %v8409_v15, %v7777_v5  ;;  %v2602_v39 = vld [vmem:[%s9892_s7 + $0x7c0] sm:$0xff] }
 0x2ea   :  { %v6738_v54 = vcombine.high %v2555_v49, %v2559_v50  ;;  %v6776_v36 = vcombine.high %v2594_v30, %v2598_v2 }
 0x2ec   :  { %5514 = vmatpush1.bf16.msra.mxu1 %v6679_v56  ;;  %5678 = vmatpush1.bf16.msra.mxu0 %v6681_v62  ;;  %v2563_v56 = vld [vmem:[%s9892_s7 + $0x688] sm:$0xff] }
 0x2ed   :  { %5515 = vmatprep.subr.bf16.mxu1 %v6688_v63  ;;  %5679 = vmatprep.subr.bf16.mxu0 %v6690_v0  ;;  %v2567_v62 = vld [vmem:[%s9892_s7 + $0x6a8] sm:$0xff]  ;;  %v6735_v63 = vcombine.low %v2554_v46, %v2558_v47  ;;  %v6737_v0 = vcombine.low %v2555_v49, %v2559_v50  ;;  %v7067_v47 = vadd.f32 %v8417_v59, %v701_v35  ;;  %v2654_v35 = vld [vmem:[%s9892_s7 + $0x960] sm:$0xff] }
 0x2ee   :  { %v6746_v3 = vcombine.high %v2563_v56, %v2567_v62  ;;  %v2615_v59 = vld [vmem:[%s9892_s7 + $0x828] sm:$0xff] }
 0x2f0   :  { %5516 = vmatpush1.bf16.msra.mxu1 %v6687_v7  ;;  %5680 = vmatpush1.bf16.msra.mxu0 %v6689_v8  ;;  %v2571_v7 = vld [vmem:[%s9892_s7 + $0x6c8] sm:$0xff] }
 0x2f1   :  { %5517 = vmatprep.subr.bf16.mxu1 %v6696_v9  ;;  %5681 = vmatprep.subr.bf16.mxu0 %v6698_v10  ;;  %v2575_v8 = vld [vmem:[%s9892_s7 + $0x6e8] sm:$0xff]  ;;  %v6743_v9 = vcombine.low %v2562_v55, %v2566_v19  ;;  %v6745_v10 = vcombine.low %v2563_v56, %v2567_v62  ;;  %v2340_v19 = vmax.f32 %v7067_v47, 0.0 }
 0x2f2   :  { %v6754_v12 = vcombine.high %v2571_v7, %v2575_v8  ;;  %v2659_v47 = vld [vmem:[%s9892_s7 + $0x988] sm:$0xff] }
 0x2f4   :  { %5518 = vmatpush1.bf16.msra.mxu1 %v6695_v27  ;;  %5682 = vmatpush1.bf16.msra.mxu0 %v6697_v14  ;;  %v2579_v27 = vld [vmem:[%s9892_s7 + $0x708] sm:$0xff] }
 0x2f5   :  { %5519 = vmatprep.subr.bf16.mxu1 %v6704_v16  ;;  %5683 = vmatprep.subr.bf16.mxu0 %v6706_v17  ;;  %v2583_v14 = vld [vmem:[%s9892_s7 + $0x728] sm:$0xff]  ;;  %v6751_v16 = vcombine.low %v2570_v4, %v2574_v6  ;;  %v6753_v17 = vcombine.low %v2571_v7, %v2575_v8  ;;  %v8638_v7 = vpack.c.bf16 %v2340_v19, %v2340_v19 }
 0x2f6   :  { %v6762_v21 = vcombine.high %v2579_v27, %v2583_v14  ;;  %v2671_v19 = vld [vmem:[%s9892_s7 + $0x9e8] sm:$0xff] }
 0x2f8   :  { %5520 = vmatpush1.bf16.msra.mxu1 %v6703_v41  ;;  %5684 = vmatpush1.bf16.msra.mxu0 %v6705_v24  ;;  %v2587_v41 = vld [vmem:[%s9892_s7 + $0x748] sm:$0xff] }
 0x2f9   :  { %5521 = vmatprep.subr.bf16.mxu1 %v6712_v25  ;;  %5685 = vmatprep.subr.bf16.mxu0 %v6714_v26  ;;  %v2591_v24 = vld [vmem:[%s9892_s7 + $0x768] sm:$0xff]  ;;  %v6759_v25 = vcombine.low %v2578_v20, %v2582_v13  ;;  %v6761_v26 = vcombine.low %v2579_v27, %v2583_v14 }
 0x2fa   :  { %v6770_v29 = vcombine.high %v2587_v41, %v2591_v24  ;;  %v2631_v20 = vld [vmem:[%s9892_s7 + $0x8a8] sm:$0xff] }
 0x2fc   :  { %5522 = vmatpush1.bf16.msra.mxu1 %v6711_v31  ;;  %5686 = vmatpush1.bf16.msra.mxu0 %v6713_v32  ;;  %v2595_v31 = vld [vmem:[%s9892_s7 + $0x788] sm:$0xff] }
 0x2fd   :  { %5523 = vmatprep.subr.bf16.mxu1 %v6720_v33  ;;  %5687 = vmatprep.subr.bf16.mxu0 %v6722_v34  ;;  %v2599_v32 = vld [vmem:[%s9892_s7 + $0x7a8] sm:$0xff]  ;;  %v6767_v33 = vcombine.low %v2586_v22, %v2590_v23  ;;  %v6769_v34 = vcombine.low %v2587_v41, %v2591_v24 }
 0x2fe   :  { %v6778_v38 = vcombine.high %v2595_v31, %v2599_v32  ;;  %v6777_v46 = vcombine.low %v2595_v31, %v2599_v32  ;;  %v2639_v22 = vld [vmem:[%s9892_s7 + $0x8e8] sm:$0xff] }
 0x300   :  { %5524 = vmatpush1.bf16.msra.mxu1 %v6719_v42  ;;  %5688 = vmatpush1.bf16.msra.mxu0 %v6721_v43  ;;  %v2606_v42 = vld [vmem:[%s9892_s7 + $0x7e0] sm:$0xff]  ;;  %v2603_v43 = vld [vmem:[%s9892_s7 + $0x7c8] sm:$0xff] }
 0x301   :  { %5525 = vmatprep.subr.bf16.mxu1 %v6728_v44  ;;  %5689 = vmatprep.subr.bf16.mxu0 %v6730_v45  ;;  %v2607_v44 = vld [vmem:[%s9892_s7 + $0x7e8] sm:$0xff]  ;;  %v6775_v45 = vcombine.low %v2594_v30, %v2598_v2  ;;  %v6784_v49 = vcombine.high %v2602_v39, %v2606_v42 }
 0x302   :  { %v6786_v50 = vcombine.high %v2603_v43, %v2607_v44  ;;  %v6785_v55 = vcombine.low %v2603_v43, %v2607_v44  ;;  %v2647_v30 = vld [vmem:[%s9892_s7 + $0x928] sm:$0xff] }
 0x304   :  { %5526 = vmatpush1.bf16.msra.mxu1 %v6727_v51  ;;  %5690 = vmatpush1.bf16.msra.mxu0 %v6729_v52  ;;  %v2610_v51 = vld [vmem:[%s9892_s7 + $0x800] sm:$0xff] }
 0x305   :  { %5527 = vmatprep.subr.bf16.mxu1 %v6736_v53  ;;  %5691 = vmatprep.subr.bf16.mxu0 %v6738_v54  ;;  %v2614_v52 = vld [vmem:[%s9892_s7 + $0x820] sm:$0xff]  ;;  %v2611_v53 = vld [vmem:[%s9892_s7 + $0x808] sm:$0xff]  ;;  %v6783_v54 = vcombine.low %v2602_v39, %v2606_v42 }
 0x306   :  { %v6792_v56 = vcombine.high %v2610_v51, %v2614_v52  ;;  %v6794_v62 = vcombine.high %v2611_v53, %v2615_v59  ;;  %v6791_v4 = vcombine.low %v2610_v51, %v2614_v52  ;;  %v6793_v6 = vcombine.low %v2611_v53, %v2615_v59  ;;  %v2666_v59 = vld [vmem:[%s9892_s7 + $0x9c0] sm:$0xff] }
 0x308   :  { %5528 = vmatpush1.bf16.msra.mxu1 %v6735_v63  ;;  %5692 = vmatpush1.bf16.msra.mxu0 %v6737_v0  ;;  %v2618_v63 = vld [vmem:[%s9892_s7 + $0x840] sm:$0xff] }
 0x309   :  { %5529 = vmatprep.subr.bf16.mxu1 %v6744_v1  ;;  %5693 = vmatprep.subr.bf16.mxu0 %v6746_v3  ;;  %v2622_v0 = vld [vmem:[%s9892_s7 + $0x860] sm:$0xff]  ;;  %v2619_v1 = vld [vmem:[%s9892_s7 + $0x848] sm:$0xff] }
 0x30a   :  { %v2623_v3 = vld [vmem:[%s9892_s7 + $0x868] sm:$0xff]  ;;  %v6800_v8 = vcombine.high %v2618_v63, %v2622_v0  ;;  %v6799_v13 = vcombine.low %v2618_v63, %v2622_v0 }
 0x30b   :  { %v6801_v27 = vcombine.low %v2619_v1, %v2623_v3 }
 0x30c   :  { %5530 = vmatpush1.bf16.msra.mxu1 %v6743_v9  ;;  %5694 = vmatpush1.bf16.msra.mxu0 %v6745_v10  ;;  %v6802_v9 = vcombine.high %v2619_v1, %v2623_v3  ;;  %v2626_v10 = vld [vmem:[%s9892_s7 + $0x880] sm:$0xff] }
 0x30d   :  { %5531 = vmatprep.subr.bf16.mxu1 %v6752_v11  ;;  %5695 = vmatprep.subr.bf16.mxu0 %v6754_v12  ;;  %v2630_v11 = vld [vmem:[%s9892_s7 + $0x8a0] sm:$0xff]  ;;  %v2627_v12 = vld [vmem:[%s9892_s7 + $0x888] sm:$0xff] }
 0x30e   :  { %v6808_v14 = vcombine.high %v2626_v10, %v2630_v11  ;;  %v6807_v23 = vcombine.low %v2626_v10, %v2630_v11  ;;  %v6809_v41 = vcombine.low %v2627_v12, %v2631_v20  ;;  %v2674_v1 = vld [vmem:[%s9892_s7 + $0xa00] sm:$0xff] }
 0x30f   :  { %v2678_v3 = vld [vmem:[%s9892_s7 + $0xa20] sm:$0xff] }
 0x310   :  { %5532 = vmatpush1.bf16.msra.mxu1 %v6751_v16  ;;  %5696 = vmatpush1.bf16.msra.mxu0 %v6753_v17  ;;  %v6810_v16 = vcombine.high %v2627_v12, %v2631_v20  ;;  %v2634_v17 = vld [vmem:[%s9892_s7 + $0x8c0] sm:$0xff]  ;;  %v6856_v10 = vcombine.high %v2674_v1, %v2678_v3 }
 0x311   :  { %5533 = vmatprep.subr.bf16.mxu1 %v6760_v18  ;;  %5697 = vmatprep.subr.bf16.mxu0 %v6762_v21  ;;  %v2638_v18 = vld [vmem:[%s9892_s7 + $0x8e0] sm:$0xff]  ;;  %v2635_v21 = vld [vmem:[%s9892_s7 + $0x8c8] sm:$0xff] }
 0x312   :  { %v6816_v24 = vcombine.high %v2634_v17, %v2638_v18  ;;  %v6815_v2 = vcombine.low %v2634_v17, %v2638_v18  ;;  %v6817_v31 = vcombine.low %v2635_v21, %v2639_v22  ;;  %v2682_v12 = vld [vmem:[%s9892_s7 + $0xa40] sm:$0xff] }
 0x313   :  { %v2686_v20 = vld [vmem:[%s9892_s7 + $0xa60] sm:$0xff] }
 0x314   :  { %5534 = vmatpush1.bf16.msra.mxu1 %v6759_v25  ;;  %5698 = vmatpush1.bf16.msra.mxu0 %v6761_v26  ;;  %v6818_v25 = vcombine.high %v2635_v21, %v2639_v22  ;;  %v2642_v26 = vld [vmem:[%s9892_s7 + $0x900] sm:$0xff]  ;;  %v6864_v17 = vcombine.high %v2682_v12, %v2686_v20 }
 0x315   :  { %5535 = vmatprep.subr.bf16.mxu1 %v6768_v28  ;;  %5699 = vmatprep.subr.bf16.mxu0 %v6770_v29  ;;  %v2646_v28 = vld [vmem:[%s9892_s7 + $0x920] sm:$0xff]  ;;  %v2643_v29 = vld [vmem:[%s9892_s7 + $0x908] sm:$0xff] }
 0x316   :  { %v6824_v32 = vcombine.high %v2642_v26, %v2646_v28  ;;  %v6823_v39 = vcombine.low %v2642_v26, %v2646_v28  ;;  %v6825_v42 = vcombine.low %v2643_v29, %v2647_v30  ;;  %v2690_v21 = vld [vmem:[%s9892_s7 + $0xa80] sm:$0xff] }
 0x317   :  { %v2694_v22 = vld [vmem:[%s9892_s7 + $0xaa0] sm:$0xff] }
 0x318   :  { %5536 = vmatpush1.bf16.msra.mxu1 %v6767_v33  ;;  %5700 = vmatpush1.bf16.msra.mxu0 %v6769_v34  ;;  %v6826_v33 = vcombine.high %v2643_v29, %v2647_v30  ;;  %v2650_v34 = vld [vmem:[%s9892_s7 + $0x940] sm:$0xff]  ;;  %v6872_v26 = vcombine.high %v2690_v21, %v2694_v22 }
 0x319   :  { %5537 = vmatprep.subr.bf16.mxu1 %v6776_v36  ;;  %5701 = vmatprep.subr.bf16.mxu0 %v6778_v38  ;;  %v2651_v36 = vld [vmem:[%s9892_s7 + $0x948] sm:$0xff]  ;;  %v6832_v43 = vcombine.high %v2650_v34, %v2654_v35  ;;  %v2698_v29 = vld [vmem:[%s9892_s7 + $0xac0] sm:$0xff] }
 0x31a   :  { %v2655_v38 = vld [vmem:[%s9892_s7 + $0x968] sm:$0xff]  ;;  %v2702_v30 = vld [vmem:[%s9892_s7 + $0xae0] sm:$0xff] }
 0x31b   :  { %v6834_v44 = vcombine.high %v2651_v36, %v2655_v38  ;;  %v6833_v51 = vcombine.low %v2651_v36, %v2655_v38  ;;  %v2706_v36 = vld [vmem:[%s9892_s7 + $0xb00] sm:$0xff] }
 0x31c   :  { %5538 = vmatpush1.bf16.msra.mxu1 %v6775_v45  ;;  %5702 = vmatpush1.bf16.msra.mxu0 %v6777_v46  ;;  %v2658_v45 = vld [vmem:[%s9892_s7 + $0x980] sm:$0xff] }
 0x31d   :  { %5539 = vmatprep.subr.bf16.mxu1 %v6784_v49  ;;  %5703 = vmatprep.subr.bf16.mxu0 %v6786_v50  ;;  %v2662_v46 = vld [vmem:[%s9892_s7 + $0x9a0] sm:$0xff]  ;;  %v2663_v49 = vld [vmem:[%s9892_s7 + $0x9a8] sm:$0xff]  ;;  %v6831_v50 = vcombine.low %v2650_v34, %v2654_v35  ;;  %v6880_v34 = vcombine.high %v2698_v29, %v2702_v30 }
 0x31e   :  { %v6840_v52 = vcombine.high %v2658_v45, %v2662_v46  ;;  %v6842_v53 = vcombine.high %v2659_v47, %v2663_v49  ;;  %v2710_v38 = vld [vmem:[%s9892_s7 + $0xb20] sm:$0xff] }
 0x320   :  { %5540 = vmatpush1.bf16.msra.mxu1 %v6783_v54  ;;  %5704 = vmatpush1.bf16.msra.mxu0 %v6785_v55  ;;  %v2670_v54 = vld [vmem:[%s9892_s7 + $0x9e0] sm:$0xff]  ;;  %v2667_v55 = vld [vmem:[%s9892_s7 + $0x9c8] sm:$0xff] }
 0x321   :  { %5550 = vmatprep.subr.bf16.mxu1 %v6792_v56  ;;  %5714 = vmatprep.subr.bf16.mxu0 %v6794_v62  ;;  %v6839_v56 = vcombine.low %v2658_v45, %v2662_v46  ;;  %v6841_v62 = vcombine.low %v2659_v47, %v2663_v49  ;;  %v6848_v63 = vcombine.high %v2666_v59, %v2670_v54  ;;  %v2714_v47 = vld [vmem:[%s9892_s7 + $0xb40] sm:$0xff] }
 0x322   :  { %v6850_v0 = vcombine.high %v2667_v55, %v2671_v19  ;;  %v6888_v45 = vcombine.high %v2706_v36, %v2710_v38  ;;  %v2718_v49 = vld [vmem:[%s9892_s7 + $0xb60] sm:$0xff] }
 0x323   :  { %5542 = vmatmul.mubr.bf16.vlgmr.msra.gmra.mrb[12].mxu1 %v8638_v7  ;;  %5706 = vmatmul.mubr.bf16.vlgmr.msra.gmra.mrb[16].mxu0 %v8638_v7 }
 0x324   :  { %5551 = vmatpush1.bf16.msra.mxu1 %v6791_v4  ;;  %5715 = vmatpush1.bf16.msra.mxu0 %v6793_v6  ;;  %v2675_v4 = vld [vmem:[%s9892_s7 + $0xa08] sm:$0xff] }
 0x325   :  { %5552 = vmatprep.subr.bf16.mxu1 %v6800_v8  ;;  %5716 = vmatprep.subr.bf16.mxu0 %v6802_v9  ;;  %v2679_v6 = vld [vmem:[%s9892_s7 + $0xa28] sm:$0xff]  ;;  %v6847_v8 = vcombine.low %v2666_v59, %v2670_v54  ;;  %v6849_v9 = vcombine.low %v2667_v55, %v2671_v19  ;;  %v6896_v59 = vcombine.high %v2714_v47, %v2718_v49  ;;  %v2722_v55 = vld [vmem:[%s9892_s7 + $0xb80] sm:$0xff] }
 0x326   :  { %v6858_v11 = vcombine.high %v2675_v4, %v2679_v6  ;;  %v2726_v19 = vld [vmem:[%s9892_s7 + $0xba0] sm:$0xff] }
 0x328   :  { %5553 = vmatpush1.bf16.msra.mxu1 %v6799_v13  ;;  %5717 = vmatpush1.bf16.msra.mxu0 %v6801_v27  ;;  %v2683_v13 = vld [vmem:[%s9892_s7 + $0xa48] sm:$0xff] }
 0x329   :  { %5554 = vmatprep.subr.bf16.mxu1 %v6808_v14  ;;  %5718 = vmatprep.subr.bf16.mxu0 %v6810_v16  ;;  %v2687_v27 = vld [vmem:[%s9892_s7 + $0xa68] sm:$0xff]  ;;  %v6855_v14 = vcombine.low %v2674_v1, %v2678_v3  ;;  %v6857_v16 = vcombine.low %v2675_v4, %v2679_v6  ;;  %v712_v3 = vsub.s32 5, %v7584_v57  ;;  %v6904_v4 = vcombine.high %v2722_v55, %v2726_v19 }
 0x32a   :  { %v6866_v18 = vcombine.high %v2683_v13, %v2687_v27 }
 0x32c   :  { %5555 = vmatpush1.bf16.msra.mxu1 %v6807_v23  ;;  %5719 = vmatpush1.bf16.msra.mxu0 %v6809_v41  ;;  %v2691_v23 = vld [vmem:[%s9892_s7 + $0xa88] sm:$0xff] }
 0x32d   :  { %5556 = vmatprep.subr.bf16.mxu1 %v6816_v24  ;;  %5720 = vmatprep.subr.bf16.mxu0 %v6818_v25  ;;  %v2695_v41 = vld [vmem:[%s9892_s7 + $0xaa8] sm:$0xff]  ;;  %v6863_v24 = vcombine.low %v2682_v12, %v2686_v20  ;;  %v6865_v25 = vcombine.low %v2683_v13, %v2687_v27  ;;  %v6903_v13 = vcombine.low %v2722_v55, %v2726_v19  ;;  %v2758_v55 = vld [vmem:[%s9892_s7 + $0xca0] sm:$0xff] }
 0x32e   :  { %v6874_v28 = vcombine.high %v2691_v23, %v2695_v41  ;;  %v2735_v12 = vld [vmem:[%s9892_s7 + $0xbe8] sm:$0xff] }
 0x32f   :  { %v2755_v19 = vld [vmem:[%s9892_s7 + $0xc88] sm:$0xff] }
 0x330   :  { %5557 = vmatpush1.bf16.msra.mxu1 %v6815_v2  ;;  %5721 = vmatpush1.bf16.msra.mxu0 %v6817_v31  ;;  %v2699_v2 = vld [vmem:[%s9892_s7 + $0xac8] sm:$0xff] }
 0x331   :  { %5558 = vmatprep.subr.bf16.mxu1 %v6824_v32  ;;  %5722 = vmatprep.subr.bf16.mxu0 %v6826_v33  ;;  %v2703_v31 = vld [vmem:[%s9892_s7 + $0xae8] sm:$0xff]  ;;  %v6871_v32 = vcombine.low %v2690_v21, %v2694_v22  ;;  %v6873_v33 = vcombine.low %v2691_v23, %v2695_v41  ;;  %v2738_v21 = vld [vmem:[%s9892_s7 + $0xc00] sm:$0xff] }
 0x332   :  { %v6882_v35 = vcombine.high %v2699_v2, %v2703_v31  ;;  %v2742_v23 = vld [vmem:[%s9892_s7 + $0xc20] sm:$0xff]  ;;  %v2739_v41 = vld [vmem:[%s9892_s7 + $0xc08] sm:$0xff] }
 0x334   :  { %5559 = vmatpush1.bf16.msra.mxu1 %v6823_v39  ;;  %5723 = vmatpush1.bf16.msra.mxu0 %v6825_v42  ;;  %v2707_v39 = vld [vmem:[%s9892_s7 + $0xb08] sm:$0xff] }
 0x335   :  { %5560 = vmatprep.subr.bf16.mxu1 %v6832_v43  ;;  %5724 = vmatprep.subr.bf16.mxu0 %v6834_v44  ;;  %v2711_v42 = vld [vmem:[%s9892_s7 + $0xb28] sm:$0xff]  ;;  %v6879_v43 = vcombine.low %v2698_v29, %v2702_v30  ;;  %v6881_v44 = vcombine.low %v2699_v2, %v2703_v31 }
 0x336   :  { %v6890_v46 = vcombine.high %v2707_v39, %v2711_v42 }
 0x338   :  { %5561 = vmatpush1.bf16.msra.mxu1 %v6831_v50  ;;  %5725 = vmatpush1.bf16.msra.mxu0 %v6833_v51  ;;  %v2715_v50 = vld [vmem:[%s9892_s7 + $0xb48] sm:$0xff] }
 0x339   :  { %5562 = vmatprep.subr.bf16.mxu1 %v6840_v52  ;;  %5726 = vmatprep.subr.bf16.mxu0 %v6842_v53  ;;  %v2719_v51 = vld [vmem:[%s9892_s7 + $0xb68] sm:$0xff]  ;;  %v6887_v52 = vcombine.low %v2706_v36, %v2710_v38  ;;  %v6889_v53 = vcombine.low %v2707_v39, %v2711_v42  ;;  %v6920_v36 = vcombine.high %v2738_v21, %v2742_v23 }
 0x33a   :  { %v6898_v54 = vcombine.high %v2715_v50, %v2719_v51  ;;  %v6897_v1 = vcombine.low %v2715_v50, %v2719_v51  ;;  %v6919_v50 = vcombine.low %v2738_v21, %v2742_v23  ;;  %v2775_v21 = vld [vmem:[%s9892_s7 + $0xd28] sm:$0xff] }
 0x33c   :  { %5563 = vmatpush1.bf16.msra.mxu1 %v6839_v56  ;;  %5727 = vmatpush1.bf16.msra.mxu0 %v6841_v62  ;;  %v2723_v56 = vld [vmem:[%s9892_s7 + $0xb88] sm:$0xff] }
 0x33d   :  { %5564 = vmatprep.subr.bf16.mxu1 %v6848_v63  ;;  %5728 = vmatprep.subr.bf16.mxu0 %v6850_v0  ;;  %v2727_v62 = vld [vmem:[%s9892_s7 + $0xba8] sm:$0xff]  ;;  %v8799_v63 = vsub.s32 4, %v7584_v57  ;;  %v6895_v0 = vcombine.low %v2714_v47, %v2718_v49 }
 0x33e   :  { %v6906_v6 = vcombine.high %v2723_v56, %v2727_v62  ;;  %v6905_v27 = vcombine.low %v2723_v56, %v2727_v62  ;;  %v2751_v47 = vld [vmem:[%s9892_s7 + $0xc68] sm:$0xff] }
 0x33f   :  { %v709_v20 = vrot.slane %v8409_v15, %v8799_v63  ;;  %v2759_v56 = vld [vmem:[%s9892_s7 + $0xca8] sm:$0xff] }
 0x340   :  { %5565 = vmatpush1.bf16.msra.mxu1 %v6847_v8  ;;  %5729 = vmatpush1.bf16.msra.mxu0 %v6849_v9  ;;  %v720_v8 = vsub.s32 7, %v7584_v57  ;;  %v2730_v9 = vld [vmem:[%s9892_s7 + $0xbc0] sm:$0xff] }
 0x341   :  { %5566 = vmatprep.subr.bf16.mxu1 %v6856_v10  ;;  %5730 = vmatprep.subr.bf16.mxu0 %v6858_v11  ;;  %v2734_v10 = vld [vmem:[%s9892_s7 + $0xbe0] sm:$0xff]  ;;  %v2731_v11 = vld [vmem:[%s9892_s7 + $0xbc8] sm:$0xff] }
 0x342   :  { %v6911_v2 = vcombine.low %v2730_v9, %v2734_v10  ;;  %v6913_v31 = vcombine.low %v2731_v11, %v2735_v12 }
 0x344   :  { %5567 = vmatpush1.bf16.msra.mxu1 %v6855_v14  ;;  %5731 = vmatpush1.bf16.msra.mxu0 %v6857_v16  ;;  %v713_v14 = vrot.slane %v8409_v15, %v712_v3  ;;  %v721_v16 = vrot.slane %v8409_v15, %v720_v8 }
 0x345   :  { %5568 = vmatprep.subr.bf16.mxu1 %v6864_v17  ;;  %5732 = vmatprep.subr.bf16.mxu0 %v6866_v18  ;;  %v6912_v17 = vcombine.high %v2730_v9, %v2734_v10  ;;  %v6914_v18 = vcombine.high %v2731_v11, %v2735_v12  ;;  %v2762_v9 = vld [vmem:[%s9892_s7 + $0xcc0] sm:$0xff]  ;;  %v2763_v11 = vld [vmem:[%s9892_s7 + $0xcc8] sm:$0xff] }
 0x346   :  { %v2766_v10 = vld [vmem:[%s9892_s7 + $0xce0] sm:$0xff]  ;;  %v2767_v12 = vld [vmem:[%s9892_s7 + $0xce8] sm:$0xff] }
 0x347   :  { %v6945_v23 = vcombine.low %v2763_v11, %v2767_v12 }
 0x348   :  { %5569 = vmatpush1.bf16.msra.mxu1 %v6863_v24  ;;  %5733 = vmatpush1.bf16.msra.mxu0 %v6865_v25  ;;  %v2743_v24 = vld [vmem:[%s9892_s7 + $0xc28] sm:$0xff] }
 0x349   :  { %5570 = vmatprep.subr.bf16.mxu1 %v6872_v26  ;;  %5734 = vmatprep.subr.bf16.mxu0 %v6874_v28  ;;  %v6922_v38 = vcombine.high %v2739_v41, %v2743_v24  ;;  %v6921_v51 = vcombine.low %v2739_v41, %v2743_v24 }
 0x34c   :  { %5571 = vmatpush1.bf16.msra.mxu1 %v6871_v32  ;;  %5735 = vmatpush1.bf16.msra.mxu0 %v6873_v33 }
 0x34d   :  { %5572 = vmatprep.subr.bf16.mxu1 %v6880_v34  ;;  %5736 = vmatprep.subr.bf16.mxu0 %v6882_v35 }
 0x350   :  { %5573 = vmatpush1.bf16.msra.mxu1 %v6879_v43  ;;  %5737 = vmatpush1.bf16.msra.mxu0 %v6881_v44  ;;  %v2746_v43 = vld [vmem:[%s9892_s7 + $0xc40] sm:$0xff] }
 0x351   :  { %5574 = vmatprep.subr.bf16.mxu1 %v6888_v45  ;;  %5738 = vmatprep.subr.bf16.mxu0 %v6890_v46  ;;  %v2750_v45 = vld [vmem:[%s9892_s7 + $0xc60] sm:$0xff]  ;;  %v2747_v46 = vld [vmem:[%s9892_s7 + $0xc48] sm:$0xff] }
 0x354   :  { %5575 = vmatpush1.bf16.msra.mxu1 %v6887_v52  ;;  %5739 = vmatpush1.bf16.msra.mxu0 %v6889_v53  ;;  %v2754_v53 = vld [vmem:[%s9892_s7 + $0xc80] sm:$0xff] }
 0x355   :  { %5576 = vmatprep.subr.bf16.mxu1 %v6896_v59  ;;  %5740 = vmatprep.subr.bf16.mxu0 %v6898_v54  ;;  %v6928_v59 = vcombine.high %v2746_v43, %v2750_v45  ;;  %v6930_v54 = vcombine.high %v2747_v46, %v2751_v47 }
 0x358   :  { %5577 = vmatpush1.bf16.msra.mxu1 %v6895_v0  ;;  %5741 = vmatpush1.bf16.msra.mxu0 %v6897_v1  ;;  %v6927_v0 = vcombine.low %v2746_v43, %v2750_v45  ;;  %v6929_v1 = vcombine.low %v2747_v46, %v2751_v47  ;;  %v2798_v45 = vld [vmem:[%s9892_s7 + $0xde0] sm:$0xff]  ;;  %v2795_v46 = vld [vmem:[%s9892_s7 + $0xdc8] sm:$0xff] }
 0x359   :  { %5578 = vmatprep.subr.bf16.mxu1 %v6904_v4  ;;  %5742 = vmatprep.subr.bf16.mxu0 %v6906_v6  ;;  %v6936_v4 = vcombine.high %v2754_v53, %v2758_v55  ;;  %v6938_v6 = vcombine.high %v2755_v19, %v2759_v56  ;;  %v2799_v47 = vld [vmem:[%s9892_s7 + $0xde8] sm:$0xff] }
 0x35a   :  { %v2249_v22 = vpop.f32.mrb[8].mxu1 }
 0x35b   :  { %v7069_v15 = vadd.f32 %v2249_v22, %v709_v20  ;;  %v8835_v25 = vpop.f32.mrb[12].mxu0  ;;  %v2251_v26 = vpop.f32.mrb[9].mxu1  ;;  %v6935_v20 = vcombine.low %v2754_v53, %v2758_v55  ;;  %v6943_v22 = vcombine.low %v2762_v9, %v2766_v10  ;;  %v2806_v55 = vld [vmem:[%s9892_s7 + $0xe20] sm:$0xff] }
 0x35c   :  { %v7070_v28 = vadd.f32 %v2251_v26, %v713_v14  ;;  %v2333_v29 = vpop.f32.mrb[13].mxu0  ;;  %5579 = vmatpush1.bf16.msra.mxu1 %v6903_v13  ;;  %5743 = vmatpush1.bf16.msra.mxu0 %v6905_v27  ;;  %v2253_v30 = vpop.f32.mrb[10].mxu1  ;;  %v6937_v13 = vcombine.low %v2755_v19, %v2759_v56  ;;  %v6944_v27 = vcombine.high %v2762_v9, %v2766_v10  ;;  %v2782_v26 = vld [vmem:[%s9892_s7 + $0xd60] sm:$0xff]  ;;  %v2803_v19 = vld [vmem:[%s9892_s7 + $0xe08] sm:$0xff] }
 0x35d   :  { %v2342_v32 = vmax.f32 %v7069_v15, 0.0  ;;  %v7072_v33 = vadd.f32 %v2333_v29, %v721_v16  ;;  %v2335_v34 = vpop.f32.mrb[14].mxu0  ;;  %v2254_v35 = vpop.f32.mrb[11].mxu1  ;;  %5580 = vmatprep.subr.bf16.mxu1 %v6912_v17  ;;  %5744 = vmatprep.subr.bf16.mxu0 %v6914_v18  ;;  %v6946_v14 = vcombine.high %v2763_v11, %v2767_v12  ;;  %v2770_v16 = vld [vmem:[%s9892_s7 + $0xd00] sm:$0xff]  ;;  %v2771_v18 = vld [vmem:[%s9892_s7 + $0xd08] sm:$0xff] }
 0x35e   :  { %v2343_v39 = vmax.f32 %v7070_v28, 0.0  ;;  %v2336_v42 = vpop.f32.mrb[15].mxu0  ;;  %v2774_v17 = vld [vmem:[%s9892_s7 + $0xd20] sm:$0xff]  ;;  %v6954_v24 = vcombine.high %v2771_v18, %v2775_v21  ;;  %v2779_v28 = vld [vmem:[%s9892_s7 + $0xd48] sm:$0xff] }
 0x35f   :  { %v2345_v44 = vmax.f32 %v7072_v33, 0.0  ;;  %v8851_v52 = vpack.c.bf16 %v2342_v32, %v2342_v32  ;;  %v6952_v41 = vcombine.high %v2770_v16, %v2774_v17  ;;  %v2778_v15 = vld [vmem:[%s9892_s7 + $0xd40] sm:$0xff]  ;;  %v2783_v29 = vld [vmem:[%s9892_s7 + $0xd68] sm:$0xff]  ;;  %v6951_v30 = vcombine.low %v2770_v16, %v2774_v17 }
 0x360   :  { %v8849_v49 = vpack.c.bf16 %v2343_v39, %v2343_v39  ;;  %5581 = vmatpush1.bf16.msra.mxu1 %v6911_v2  ;;  %5745 = vmatpush1.bf16.msra.mxu0 %v6913_v31  ;;  %v6953_v2 = vcombine.low %v2771_v18, %v2775_v21  ;;  %v6960_v31 = vcombine.high %v2778_v15, %v2782_v26  ;;  %v2786_v33 = vld [vmem:[%s9892_s7 + $0xd80] sm:$0xff]  ;;  %v2787_v35 = vld [vmem:[%s9892_s7 + $0xd88] sm:$0xff] }
 0x361   :  { %5591 = vmatprep.subr.bf16.mxu1 %v6920_v36  ;;  %5755 = vmatprep.subr.bf16.mxu0 %v6922_v38  ;;  %v8867_v62 = vpack.c.bf16 %v2345_v44, %v2345_v44  ;;  %v6962_v32 = vcombine.high %v2779_v28, %v2783_v29  ;;  %v2790_v34 = vld [vmem:[%s9892_s7 + $0xda0] sm:$0xff]  ;;  %v2791_v36 = vld [vmem:[%s9892_s7 + $0xda8] sm:$0xff]  ;;  %v6959_v38 = vcombine.low %v2778_v15, %v2782_v26 }
 0x362   :  { %5582 = vmatprep.mubr.bf16.mxu1 %v8849_v49  ;;  %5746 = vmatprep.mubr.bf16.mxu0 %v8849_v49  ;;  %v6961_v39 = vcombine.low %v2779_v28, %v2783_v29  ;;  %v6968_v42 = vcombine.high %v2786_v33, %v2790_v34  ;;  %v6970_v43 = vcombine.high %v2787_v35, %v2791_v36  ;;  %v2794_v44 = vld [vmem:[%s9892_s7 + $0xdc0] sm:$0xff]  ;;  %v2807_v56 = vld [vmem:[%s9892_s7 + $0xe28] sm:$0xff] }
 0x363   :  { %5583 = vmatmul.mubr.bf16.vlgmr.msra.gmra.mrb[12].mxu1 %v8851_v52  ;;  %5747 = vmatmul.mubr.bf16.vlgmr.msra.gmra.mrb[16].mxu0 %v8851_v52  ;;  %v6976_v53 = vcombine.high %v2794_v44, %v2798_v45  ;;  %v2810_v9 = vld [vmem:[%s9892_s7 + $0xe40] sm:$0xff]  ;;  %v2811_v11 = vld [vmem:[%s9892_s7 + $0xe48] sm:$0xff] }
 0x364   :  { %5592 = vmatpush1.bf16.msra.mxu1 %v6919_v50  ;;  %5756 = vmatpush1.bf16.msra.mxu0 %v6921_v51  ;;  %v6967_v50 = vcombine.low %v2786_v33, %v2790_v34  ;;  %v6969_v51 = vcombine.low %v2787_v35, %v2791_v36  ;;  %v2814_v10 = vld [vmem:[%s9892_s7 + $0xe60] sm:$0xff]  ;;  %v2815_v12 = vld [vmem:[%s9892_s7 + $0xe68] sm:$0xff] }
 0x365   :  { %5623 = vmatprep.mubr.bf16.mxu1 %v8867_v62  ;;  %5787 = vmatprep.mubr.bf16.mxu0 %v8867_v62  ;;  %v2818_v16 = vld [vmem:[%s9892_s7 + $0xe80] sm:$0xff]  ;;  %v2819_v18 = vld [vmem:[%s9892_s7 + $0xe88] sm:$0xff] }
 0x366   :  { %5593 = vmatprep.subr.bf16.mxu1 %v6928_v59  ;;  %5757 = vmatprep.subr.bf16.mxu0 %v6930_v54  ;;  %v6978_v59 = vcombine.high %v2795_v46, %v2799_v47  ;;  %v2802_v54 = vld [vmem:[%s9892_s7 + $0xe00] sm:$0xff]  ;;  %v2823_v21 = vld [vmem:[%s9892_s7 + $0xea8] sm:$0xff] }
 0x367   :  { %v2822_v17 = vld [vmem:[%s9892_s7 + $0xea0] sm:$0xff]  ;;  %v2827_v28 = vld [vmem:[%s9892_s7 + $0xec8] sm:$0xff] }
 0x368   :  { %5594 = vmatpush1.bf16.msra.mxu1 %v6927_v0  ;;  %5758 = vmatpush1.bf16.msra.mxu0 %v6929_v1  ;;  %v6975_v0 = vcombine.low %v2794_v44, %v2798_v45  ;;  %v6977_v1 = vcombine.low %v2795_v46, %v2799_v47  ;;  %v2826_v15 = vld [vmem:[%s9892_s7 + $0xec0] sm:$0xff]  ;;  %v2831_v29 = vld [vmem:[%s9892_s7 + $0xee8] sm:$0xff] }
 0x369   :  { %5595 = vmatprep.subr.bf16.mxu1 %v6936_v4  ;;  %5759 = vmatprep.subr.bf16.mxu0 %v6938_v6  ;;  %v6984_v4 = vcombine.high %v2802_v54, %v2806_v55  ;;  %v6986_v6 = vcombine.high %v2803_v19, %v2807_v56  ;;  %v2830_v26 = vld [vmem:[%s9892_s7 + $0xee0] sm:$0xff]  ;;  %v2835_v35 = vld [vmem:[%s9892_s7 + $0xf08] sm:$0xff] }
 0x36a   :  { %v2834_v33 = vld [vmem:[%s9892_s7 + $0xf00] sm:$0xff]  ;;  %v2839_v36 = vld [vmem:[%s9892_s7 + $0xf28] sm:$0xff] }
 0x36b   :  { %v2838_v34 = vld [vmem:[%s9892_s7 + $0xf20] sm:$0xff]  ;;  %v2843_v46 = vld [vmem:[%s9892_s7 + $0xf48] sm:$0xff] }
 0x36c   :  { %5596 = vmatpush1.bf16.msra.mxu1 %v6935_v20  ;;  %5760 = vmatpush1.bf16.msra.mxu0 %v6937_v13  ;;  %v6983_v20 = vcombine.low %v2802_v54, %v2806_v55  ;;  %v6985_v13 = vcombine.low %v2803_v19, %v2807_v56  ;;  %v2842_v44 = vld [vmem:[%s9892_s7 + $0xf40] sm:$0xff]  ;;  %v2847_v47 = vld [vmem:[%s9892_s7 + $0xf68] sm:$0xff] }
 0x36d   :  { %5597 = vmatprep.subr.bf16.mxu1 %v6944_v27  ;;  %5761 = vmatprep.subr.bf16.mxu0 %v6946_v14  ;;  %v6992_v27 = vcombine.high %v2810_v9, %v2814_v10  ;;  %v6994_v14 = vcombine.high %v2811_v11, %v2815_v12  ;;  %v2846_v45 = vld [vmem:[%s9892_s7 + $0xf60] sm:$0xff]  ;;  %v7026_v54 = vcombine.high %v2843_v46, %v2847_v47  ;;  %v2851_v56 = vld [vmem:[%s9892_s7 + $0xf88] sm:$0xff] }
 0x36e   :  { %v2850_v55 = vld [vmem:[%s9892_s7 + $0xf80] sm:$0xff] }
 0x36f   :  { %v2854_v19 = vld [vmem:[%s9892_s7 + $0xfa0] sm:$0xff] }
 0x370   :  { %5598 = vmatpush1.bf16.msra.mxu1 %v6943_v22  ;;  %5762 = vmatpush1.bf16.msra.mxu0 %v6945_v23  ;;  %v6991_v22 = vcombine.low %v2810_v9, %v2814_v10  ;;  %v6993_v23 = vcombine.low %v2811_v11, %v2815_v12  ;;  %v7032_v10 = vcombine.high %v2850_v55, %v2854_v19  ;;  %v2858_v12 = vld [vmem:[%s9892_s7 + $0xfc0] sm:$0xff] }
 0x371   :  { %5599 = vmatprep.subr.bf16.mxu1 %v6952_v41  ;;  %5763 = vmatprep.subr.bf16.mxu0 %v6954_v24  ;;  %v7000_v41 = vcombine.high %v2818_v16, %v2822_v17  ;;  %v7002_v24 = vcombine.high %v2819_v18, %v2823_v21 }
 0x374   :  { %5600 = vmatpush1.bf16.msra.mxu1 %v6951_v30  ;;  %5764 = vmatpush1.bf16.msra.mxu0 %v6953_v2  ;;  %v6999_v30 = vcombine.low %v2818_v16, %v2822_v17  ;;  %v7001_v2 = vcombine.low %v2819_v18, %v2823_v21 }
 0x375   :  { %5601 = vmatprep.subr.bf16.mxu1 %v6960_v31  ;;  %5765 = vmatprep.subr.bf16.mxu0 %v6962_v32  ;;  %v7008_v31 = vcombine.high %v2826_v15, %v2830_v26  ;;  %v7010_v32 = vcombine.high %v2827_v28, %v2831_v29 }
 0x378   :  { %5602 = vmatpush1.bf16.msra.mxu1 %v6959_v38  ;;  %5766 = vmatpush1.bf16.msra.mxu0 %v6961_v39  ;;  %v7007_v38 = vcombine.low %v2826_v15, %v2830_v26  ;;  %v7009_v39 = vcombine.low %v2827_v28, %v2831_v29 }
 0x379   :  { %5603 = vmatprep.subr.bf16.mxu1 %v6968_v42  ;;  %5767 = vmatprep.subr.bf16.mxu0 %v6970_v43  ;;  %v7016_v42 = vcombine.high %v2834_v33, %v2838_v34  ;;  %v7018_v43 = vcombine.high %v2835_v35, %v2839_v36 }
 0x37c   :  { %5604 = vmatpush1.bf16.msra.mxu1 %v6967_v50  ;;  %5768 = vmatpush1.bf16.msra.mxu0 %v6969_v51  ;;  %v7015_v50 = vcombine.low %v2834_v33, %v2838_v34  ;;  %v7017_v51 = vcombine.low %v2835_v35, %v2839_v36 }
 0x37d   :  { %5605 = vmatprep.subr.bf16.mxu1 %v6976_v53  ;;  %5769 = vmatprep.subr.bf16.mxu0 %v6978_v59  ;;  %v9006_v53 = vsub.s32 6, %v7584_v57  ;;  %v7024_v59 = vcombine.high %v2842_v44, %v2846_v45 }
 0x380   :  { %5606 = vmatpush1.bf16.msra.mxu1 %v6975_v0  ;;  %5770 = vmatpush1.bf16.msra.mxu0 %v6977_v1  ;;  %v2855_v0 = vld [vmem:[%s9892_s7 + $0xfa8] sm:$0xff]  ;;  %v7023_v1 = vcombine.low %v2842_v44, %v2846_v45  ;;  %v2377_v44 = vld [vmem:[%s9892_s7 + $0xb8] sm:$0xff] }
 0x381   :  { %5607 = vmatprep.subr.bf16.mxu1 %v6984_v4  ;;  %5771 = vmatprep.subr.bf16.mxu0 %v6986_v6  ;;  %v7025_v4 = vcombine.low %v2843_v46, %v2847_v47  ;;  %v7202_v6 = vld [vmem:[%s9893_s6] sm:$0xff]  ;;  %v7034_v11 = vcombine.high %v2851_v56, %v2855_v0  ;;  %v7033_v16 = vcombine.low %v2851_v56, %v2855_v0 }
 0x382   :  { %v717_v9 = vrot.slane %v7202_v6, %v9006_v53  ;;  %v2389_v6 = vld [vmem:[%s9892_s7 + $0x118] sm:$0xff] }
 0x384   :  { %5608 = vmatpush1.bf16.msra.mxu1 %v6983_v20  ;;  %5772 = vmatpush1.bf16.msra.mxu0 %v6985_v13  ;;  %v2862_v20 = vld [vmem:[%s9892_s7 + $0xfe0] sm:$0xff]  ;;  %v2859_v13 = vld [vmem:[%s9892_s7 + $0xfc8] sm:$0xff]  ;;  %v7071_v17 = vadd.f32 %v8835_v25, %v717_v9  ;;  %v2361_v25 = vld [vmem:[%s9892_s7 + $0x38] sm:$0xff] }
 0x385   :  { %5609 = vmatprep.subr.bf16.mxu1 %v6992_v27  ;;  %5773 = vmatprep.subr.bf16.mxu0 %v6994_v14  ;;  %v2863_v27 = vld [vmem:[%s9892_s7 + $0xfe8] sm:$0xff]  ;;  %v7031_v14 = vcombine.low %v2850_v55, %v2854_v19  ;;  %v7040_v18 = vcombine.high %v2858_v12, %v2862_v20  ;;  %v2393_v9 = vld [vmem:[%s9892_s7 + $0x138] sm:$0xff] }
 0x386   :  { %v7042_v21 = vcombine.high %v2859_v13, %v2863_v27  ;;  %v7041_v15 = vcombine.low %v2859_v13, %v2863_v27  ;;  %v2344_v26 = vmax.f32 %v7071_v17, 0.0  ;;  %v2396_v13 = vld [vmem:[%s9892_s7 + $0x150] sm:$0xff] }
 0x387   :  { %v2400_v27 = vld [vmem:[%s9892_s7 + $0x170] sm:$0xff] }
 0x388   :  { %5610 = vmatpush1.bf16.msra.mxu1 %v6991_v22  ;;  %5774 = vmatpush1.bf16.msra.mxu0 %v6993_v23  ;;  %v2356_v22 = vld [vmem:[%s9892_s7 + $0x10] sm:$0xff]  ;;  %v9061_v34 = vpack.c.bf16 %v2344_v26, %v2344_v26 }
 0x389   :  { %5611 = vmatprep.subr.bf16.mxu1 %v7000_v41  ;;  %5775 = vmatprep.subr.bf16.mxu0 %v7002_v24  ;;  %v2360_v23 = vld [vmem:[%s9892_s7 + $0x30] sm:$0xff]  ;;  %v2357_v41 = vld [vmem:[%s9892_s7 + $0x18] sm:$0xff]  ;;  %v7039_v24 = vcombine.low %v2858_v12, %v2862_v20  ;;  %v6574_v20 = vcombine.high %v2389_v6, %v2393_v9 }
 0x38a   :  { %v6540_v28 = vcombine.high %v2356_v22, %v2360_v23  ;;  %v6542_v29 = vcombine.high %v2357_v41, %v2361_v25  ;;  %v6539_v33 = vcombine.low %v2356_v22, %v2360_v23  ;;  %v6541_v35 = vcombine.low %v2357_v41, %v2361_v25  ;;  %v2404_v23 = vld [vmem:[%s9892_s7 + $0x190] sm:$0xff]  ;;  %v2405_v25 = vld [vmem:[%s9892_s7 + $0x198] sm:$0xff] }
 0x38b   :  { %v2408_v41 = vld [vmem:[%s9892_s7 + $0x1b0] sm:$0xff] }
 0x38c   :  { %5612 = vmatpush1.bf16.msra.mxu1 %v6999_v30  ;;  %5776 = vmatpush1.bf16.msra.mxu0 %v7001_v2  ;;  %v2364_v30 = vld [vmem:[%s9892_s7 + $0x50] sm:$0xff] }
 0x38d   :  { %5613 = vmatprep.subr.bf16.mxu1 %v7008_v31  ;;  %5777 = vmatprep.subr.bf16.mxu0 %v7010_v32  ;;  %v2368_v2 = vld [vmem:[%s9892_s7 + $0x70] sm:$0xff]  ;;  %v2365_v31 = vld [vmem:[%s9892_s7 + $0x58] sm:$0xff] }
 0x38e   :  { %v2369_v32 = vld [vmem:[%s9892_s7 + $0x78] sm:$0xff]  ;;  %v6548_v36 = vcombine.high %v2364_v30, %v2368_v2  ;;  %v6547_v45 = vcombine.low %v2364_v30, %v2368_v2  ;;  %v2412_v30 = vld [vmem:[%s9892_s7 + $0x1d0] sm:$0xff] }
 0x38f   :  { %v6549_v46 = vcombine.low %v2365_v31, %v2369_v32  ;;  %v2416_v2 = vld [vmem:[%s9892_s7 + $0x1f0] sm:$0xff] }
 0x390   :  { %5614 = vmatpush1.bf16.msra.mxu1 %v7007_v38  ;;  %5778 = vmatpush1.bf16.msra.mxu0 %v7009_v39  ;;  %v6550_v38 = vcombine.high %v2365_v31, %v2369_v32  ;;  %v2372_v39 = vld [vmem:[%s9892_s7 + $0x90] sm:$0xff]  ;;  %v2413_v31 = vld [vmem:[%s9892_s7 + $0x1d8] sm:$0xff] }
 0x391   :  { %5615 = vmatprep.subr.bf16.mxu1 %v7016_v42  ;;  %5779 = vmatprep.subr.bf16.mxu0 %v7018_v43  ;;  %v2376_v42 = vld [vmem:[%s9892_s7 + $0xb0] sm:$0xff]  ;;  %v2373_v43 = vld [vmem:[%s9892_s7 + $0x98] sm:$0xff] }
 0x392   :  { %v6556_v47 = vcombine.high %v2372_v39, %v2376_v42  ;;  %v6555_v55 = vcombine.low %v2372_v39, %v2376_v42  ;;  %v6557_v19 = vcombine.low %v2373_v43, %v2377_v44  ;;  %v2417_v32 = vld [vmem:[%s9892_s7 + $0x1f8] sm:$0xff]  ;;  %v2420_v39 = vld [vmem:[%s9892_s7 + $0x210] sm:$0xff] }
 0x393   :  { %v2424_v42 = vld [vmem:[%s9892_s7 + $0x230] sm:$0xff] }
 0x394   :  { %5616 = vmatpush1.bf16.msra.mxu1 %v7015_v50  ;;  %5780 = vmatpush1.bf16.msra.mxu0 %v7017_v51  ;;  %v6558_v50 = vcombine.high %v2373_v43, %v2377_v44  ;;  %v2380_v51 = vld [vmem:[%s9892_s7 + $0xd0] sm:$0xff]  ;;  %v2421_v43 = vld [vmem:[%s9892_s7 + $0x218] sm:$0xff] }
 0x395   :  { %5617 = vmatprep.subr.bf16.mxu1 %v7024_v59  ;;  %5781 = vmatprep.subr.bf16.mxu0 %v7026_v54  ;;  %v2384_v59 = vld [vmem:[%s9892_s7 + $0xf0] sm:$0xff]  ;;  %v2381_v54 = vld [vmem:[%s9892_s7 + $0xd8] sm:$0xff] }
 0x396   :  { %v6564_v56 = vcombine.high %v2380_v51, %v2384_v59  ;;  %v2425_v44 = vld [vmem:[%s9892_s7 + $0x238] sm:$0xff] }
 0x398   :  { %5618 = vmatpush1.bf16.msra.mxu1 %v7023_v1  ;;  %5782 = vmatpush1.bf16.msra.mxu0 %v7025_v4  ;;  %v2388_v1 = vld [vmem:[%s9892_s7 + $0x110] sm:$0xff] }
 0x399   :  { %5619 = vmatprep.subr.bf16.mxu1 %v7032_v10  ;;  %5783 = vmatprep.subr.bf16.mxu0 %v7034_v11  ;;  %v2392_v4 = vld [vmem:[%s9892_s7 + $0x130] sm:$0xff]  ;;  %v6563_v10 = vcombine.low %v2380_v51, %v2384_v59 }
 0x39a   :  { %v6572_v12 = vcombine.high %v2388_v1, %v2392_v4  ;;  %v6571_v17 = vcombine.low %v2388_v1, %v2392_v4  ;;  %v2428_v51 = vld [vmem:[%s9892_s7 + $0x250] sm:$0xff] }
 0x39b   :  { %v2432_v59 = vld [vmem:[%s9892_s7 + $0x270] sm:$0xff] }
 0x39c   :  { %5620 = vmatpush1.bf16.msra.mxu1 %v7031_v14  ;;  %5784 = vmatpush1.bf16.msra.mxu0 %v7033_v16  ;;  %v2397_v14 = vld [vmem:[%s9892_s7 + $0x158] sm:$0xff]  ;;  %v2436_v1 = vld [vmem:[%s9892_s7 + $0x290] sm:$0xff] }
 0x39d   :  { %5621 = vmatprep.subr.bf16.mxu1 %v7040_v18  ;;  %5785 = vmatprep.subr.bf16.mxu0 %v7042_v21  ;;  %v2401_v16 = vld [vmem:[%s9892_s7 + $0x178] sm:$0xff]  ;;  %v6573_v18 = vcombine.low %v2389_v6, %v2393_v9  ;;  %v6580_v21 = vcombine.high %v2396_v13, %v2400_v27  ;;  %v2440_v4 = vld [vmem:[%s9892_s7 + $0x2b0] sm:$0xff] }
 0x39e   :  { %v6582_v22 = vcombine.high %v2397_v14, %v2401_v16  ;;  %v6581_v26 = vcombine.low %v2397_v14, %v2401_v16  ;;  %v2437_v6 = vld [vmem:[%s9892_s7 + $0x298] sm:$0xff] }
 0x39f   :  { %v2441_v9 = vld [vmem:[%s9892_s7 + $0x2b8] sm:$0xff] }
 0x3a0   :  { %5622 = vmatpush1.bf16.msra.mxu1 %v7039_v24  ;;  %5786 = vmatpush1.bf16.msra.mxu0 %v7041_v15  ;;  %v2409_v24 = vld [vmem:[%s9892_s7 + $0x1b8] sm:$0xff]  ;;  %v6579_v15 = vcombine.low %v2396_v13, %v2400_v27  ;;  %v2444_v13 = vld [vmem:[%s9892_s7 + $0x2d0] sm:$0xff] }
 0x3a1   :  { %5796 = vmatprep.subr.bf16.mxu1 %v6540_v28  ;;  %5960 = vmatprep.subr.bf16.mxu0 %v6542_v29  ;;  %v6588_v28 = vcombine.high %v2404_v23, %v2408_v41  ;;  %v6590_v29 = vcombine.high %v2405_v25, %v2409_v24  ;;  %v2448_v27 = vld [vmem:[%s9892_s7 + $0x2f0] sm:$0xff]  ;;  %v2445_v14 = vld [vmem:[%s9892_s7 + $0x2d8] sm:$0xff] }
 0x3a2   :  { %v2449_v16 = vld [vmem:[%s9892_s7 + $0x2f8] sm:$0xff] }
 0x3a3   :  { %5624 = vmatmul.mubr.bf16.vlgmr.msra.gmra.mrb[12].mxu1 %v9061_v34  ;;  %5788 = vmatmul.mubr.bf16.vlgmr.msra.gmra.mrb[16].mxu0 %v9061_v34 }
 0x3a4   :  { %5797 = vmatpush1.bf16.msra.mxu1 %v6539_v33  ;;  %5828 = vmatprep.mubr.bf16.mxu1 %v8431_v37  ;;  %v6587_v33 = vcombine.low %v2404_v23, %v2408_v41  ;;  %v2452_v23 = vld [vmem:[%s9892_s7 + $0x310] sm:$0xff] }
 0x3a5   :  { %5961 = vmatpush1.bf16.msra.mxu0 %v6541_v35  ;;  %5992 = vmatprep.mubr.bf16.mxu0 %v8431_v37  ;;  %v2385_v37 = vld [vmem:[%s9892_s7 + $0xf8] sm:$0xff]  ;;  %v6589_v35 = vcombine.low %v2405_v25, %v2409_v24  ;;  %v2456_v41 = vld [vmem:[%s9892_s7 + $0x330] sm:$0xff] }
 0x3a6   :  { %5798 = vmatprep.subr.bf16.mxu1 %v6548_v36  ;;  %5962 = vmatprep.subr.bf16.mxu0 %v6550_v38  ;;  %v6566_v0 = vcombine.high %v2381_v54, %v2385_v37  ;;  %v6565_v11 = vcombine.low %v2381_v54, %v2385_v37  ;;  %v6596_v36 = vcombine.high %v2412_v30, %v2416_v2  ;;  %v2429_v54 = vld [vmem:[%s9892_s7 + $0x258] sm:$0xff] }
 0x3a7   :  { %v6598_v38 = vcombine.high %v2413_v31, %v2417_v32  ;;  %v2433_v37 = vld [vmem:[%s9892_s7 + $0x278] sm:$0xff] }
 0x3a8   :  { %5799 = vmatpush1.bf16.msra.mxu1 %v6547_v45  ;;  %v6595_v45 = vcombine.low %v2412_v30, %v2416_v2  ;;  %v2453_v25 = vld [vmem:[%s9892_s7 + $0x318] sm:$0xff]  ;;  %v2460_v30 = vld [vmem:[%s9892_s7 + $0x350] sm:$0xff] }
 0x3a9   :  { %5963 = vmatpush1.bf16.msra.mxu0 %v6549_v46  ;;  %5800 = vmatprep.subr.bf16.mxu1 %v6556_v47  ;;  %v6597_v46 = vcombine.low %v2413_v31, %v2417_v32  ;;  %v6604_v47 = vcombine.high %v2420_v39, %v2424_v42  ;;  %v2457_v24 = vld [vmem:[%s9892_s7 + $0x338] sm:$0xff]  ;;  %v2464_v2 = vld [vmem:[%s9892_s7 + $0x370] sm:$0xff] }
 0x3aa   :  { %5964 = vmatprep.subr.bf16.mxu0 %v6558_v50  ;;  %v6606_v50 = vcombine.high %v2421_v43, %v2425_v44  ;;  %v2461_v31 = vld [vmem:[%s9892_s7 + $0x358] sm:$0xff] }
 0x3ab   :  { %v2465_v32 = vld [vmem:[%s9892_s7 + $0x378] sm:$0xff] }
 0x3ac   :  { %5801 = vmatpush1.bf16.msra.mxu1 %v6555_v55  ;;  %v6603_v55 = vcombine.low %v2420_v39, %v2424_v42  ;;  %v2468_v39 = vld [vmem:[%s9892_s7 + $0x390] sm:$0xff] }
 0x3ad   :  { %5965 = vmatpush1.bf16.msra.mxu0 %v6557_v19  ;;  %5802 = vmatprep.subr.bf16.mxu1 %v6564_v56  ;;  %v6605_v19 = vcombine.low %v2421_v43, %v2425_v44  ;;  %v6612_v56 = vcombine.high %v2428_v51, %v2432_v59  ;;  %v2472_v42 = vld [vmem:[%s9892_s7 + $0x3b0] sm:$0xff]  ;;  %v2469_v43 = vld [vmem:[%s9892_s7 + $0x398] sm:$0xff] }
 0x3ae   :  { %5966 = vmatprep.subr.bf16.mxu0 %v6566_v0  ;;  %v6614_v0 = vcombine.high %v2429_v54, %v2433_v37  ;;  %v2473_v44 = vld [vmem:[%s9892_s7 + $0x3b8] sm:$0xff] }
 0x3b0   :  { %5803 = vmatpush1.bf16.msra.mxu1 %v6563_v10  ;;  %v6611_v10 = vcombine.low %v2428_v51, %v2432_v59  ;;  %v2476_v51 = vld [vmem:[%s9892_s7 + $0x3d0] sm:$0xff] }
 0x3b1   :  { %5967 = vmatpush1.bf16.msra.mxu0 %v6565_v11  ;;  %5804 = vmatprep.subr.bf16.mxu1 %v6572_v12  ;;  %v6613_v11 = vcombine.low %v2429_v54, %v2433_v37  ;;  %v6620_v12 = vcombine.high %v2436_v1, %v2440_v4  ;;  %v2480_v59 = vld [vmem:[%s9892_s7 + $0x3f0] sm:$0xff]  ;;  %v2477_v54 = vld [vmem:[%s9892_s7 + $0x3d8] sm:$0xff] }
 0x3b2   :  { %5968 = vmatprep.subr.bf16.mxu0 %v6574_v20  ;;  %v6622_v20 = vcombine.high %v2437_v6, %v2441_v9  ;;  %v2481_v37 = vld [vmem:[%s9892_s7 + $0x3f8] sm:$0xff] }
 0x3b4   :  { %5805 = vmatpush1.bf16.msra.mxu1 %v6571_v17  ;;  %v6619_v17 = vcombine.low %v2436_v1, %v2440_v4  ;;  %v2484_v1 = vld [vmem:[%s9892_s7 + $0x410] sm:$0xff] }
 0x3b5   :  { %5969 = vmatpush1.bf16.msra.mxu0 %v6573_v18  ;;  %5806 = vmatprep.subr.bf16.mxu1 %v6580_v21  ;;  %v6621_v18 = vcombine.low %v2437_v6, %v2441_v9  ;;  %v6628_v21 = vcombine.high %v2444_v13, %v2448_v27  ;;  %v2488_v4 = vld [vmem:[%s9892_s7 + $0x430] sm:$0xff]  ;;  %v2485_v6 = vld [vmem:[%s9892_s7 + $0x418] sm:$0xff] }
 0x3b6   :  { %5970 = vmatprep.subr.bf16.mxu0 %v6582_v22  ;;  %v6630_v22 = vcombine.high %v2445_v14, %v2449_v16  ;;  %v2489_v9 = vld [vmem:[%s9892_s7 + $0x438] sm:$0xff] }
 0x3b8   :  { %5807 = vmatpush1.bf16.msra.mxu1 %v6579_v15  ;;  %v6627_v15 = vcombine.low %v2444_v13, %v2448_v27  ;;  %v2492_v13 = vld [vmem:[%s9892_s7 + $0x450] sm:$0xff] }
 0x3b9   :  { %5971 = vmatpush1.bf16.msra.mxu0 %v6581_v26  ;;  %5808 = vmatprep.subr.bf16.mxu1 %v6588_v28  ;;  %v6629_v26 = vcombine.low %v2445_v14, %v2449_v16  ;;  %v6636_v28 = vcombine.high %v2452_v23, %v2456_v41  ;;  %v2496_v27 = vld [vmem:[%s9892_s7 + $0x470] sm:$0xff]  ;;  %v6667_v14 = vcombine.low %v2484_v1, %v2488_v4  ;;  %v2493_v16 = vld [vmem:[%s9892_s7 + $0x458] sm:$0xff] }
 0x3ba   :  { %5972 = vmatprep.subr.bf16.mxu0 %v6590_v29  ;;  %v6638_v29 = vcombine.high %v2453_v25, %v2457_v24 }
 0x3bc   :  { %5809 = vmatpush1.bf16.msra.mxu1 %v6587_v33  ;;  %v6635_v33 = vcombine.low %v2452_v23, %v2456_v41  ;;  %v2504_v23 = vld [vmem:[%s9892_s7 + $0x4b0] sm:$0xff] }
 0x3bd   :  { %5973 = vmatpush1.bf16.msra.mxu0 %v6589_v35  ;;  %5810 = vmatprep.subr.bf16.mxu1 %v6596_v36  ;;  %v6637_v35 = vcombine.low %v2453_v25, %v2457_v24  ;;  %v6644_v36 = vcombine.high %v2460_v30, %v2464_v2  ;;  %v2501_v25 = vld [vmem:[%s9892_s7 + $0x498] sm:$0xff] }
 0x3be   :  { %5974 = vmatprep.subr.bf16.mxu0 %v6598_v38  ;;  %v6646_v38 = vcombine.high %v2461_v31, %v2465_v32  ;;  %v2505_v24 = vld [vmem:[%s9892_s7 + $0x4b8] sm:$0xff] }
 0x3c0   :  { %5811 = vmatpush1.bf16.msra.mxu1 %v6595_v45  ;;  %v6643_v45 = vcombine.low %v2460_v30, %v2464_v2  ;;  %v2508_v30 = vld [vmem:[%s9892_s7 + $0x4d0] sm:$0xff] }
 0x3c1   :  { %5975 = vmatpush1.bf16.msra.mxu0 %v6597_v46  ;;  %5812 = vmatprep.subr.bf16.mxu1 %v6604_v47  ;;  %v6645_v46 = vcombine.low %v2461_v31, %v2465_v32  ;;  %v6652_v47 = vcombine.high %v2468_v39, %v2472_v42  ;;  %v2512_v2 = vld [vmem:[%s9892_s7 + $0x4f0] sm:$0xff]  ;;  %v2513_v31 = vld [vmem:[%s9892_s7 + $0x4f8] sm:$0xff]  ;;  %v6685_v32 = vcombine.low %v2501_v25, %v2505_v24 }
 0x3c2   :  { %5976 = vmatprep.subr.bf16.mxu0 %v6606_v50  ;;  %v6654_v50 = vcombine.high %v2469_v43, %v2473_v44 }
 0x3c4   :  { %5813 = vmatpush1.bf16.msra.mxu1 %v6603_v55  ;;  %v6651_v55 = vcombine.low %v2468_v39, %v2472_v42  ;;  %v2517_v39 = vld [vmem:[%s9892_s7 + $0x518] sm:$0xff] }
 0x3c5   :  { %5977 = vmatpush1.bf16.msra.mxu0 %v6605_v19  ;;  %5814 = vmatprep.subr.bf16.mxu1 %v6612_v56  ;;  %v6653_v19 = vcombine.low %v2469_v43, %v2473_v44  ;;  %v6660_v56 = vcombine.high %v2476_v51, %v2480_v59  ;;  %v2521_v42 = vld [vmem:[%s9892_s7 + $0x538] sm:$0xff]  ;;  %v6691_v43 = vcombine.low %v2508_v30, %v2512_v2 }
 0x3c6   :  { %5978 = vmatprep.subr.bf16.mxu0 %v6614_v0  ;;  %v6662_v0 = vcombine.high %v2477_v54, %v2481_v37 }
 0x3c8   :  { %5815 = vmatpush1.bf16.msra.mxu1 %v6611_v10  ;;  %v6659_v10 = vcombine.low %v2476_v51, %v2480_v59  ;;  %v2525_v51 = vld [vmem:[%s9892_s7 + $0x558] sm:$0xff] }
 0x3c9   :  { %5979 = vmatpush1.bf16.msra.mxu0 %v6613_v11  ;;  %5816 = vmatprep.subr.bf16.mxu1 %v6620_v12  ;;  %v6661_v11 = vcombine.low %v2477_v54, %v2481_v37  ;;  %v6668_v12 = vcombine.high %v2484_v1, %v2488_v4  ;;  %v2529_v59 = vld [vmem:[%s9892_s7 + $0x578] sm:$0xff]  ;;  %v6701_v37 = vcombine.low %v2517_v39, %v2521_v42 }
 0x3ca   :  { %5980 = vmatprep.subr.bf16.mxu0 %v6622_v20  ;;  %v6670_v20 = vcombine.high %v2485_v6, %v2489_v9  ;;  %v2533_v1 = vld [vmem:[%s9892_s7 + $0x598] sm:$0xff] }
 0x3cb   :  { %v2537_v4 = vld [vmem:[%s9892_s7 + $0x5b8] sm:$0xff] }
 0x3cc   :  { %5817 = vmatpush1.bf16.msra.mxu1 %v6619_v17  ;;  %v2497_v17 = vld [vmem:[%s9892_s7 + $0x478] sm:$0xff] }
 0x3cd   :  { %5981 = vmatpush1.bf16.msra.mxu0 %v6621_v18  ;;  %5818 = vmatprep.subr.bf16.mxu1 %v6628_v21  ;;  %v6669_v18 = vcombine.low %v2485_v6, %v2489_v9  ;;  %v6676_v21 = vcombine.high %v2492_v13, %v2496_v27  ;;  %v6678_v41 = vcombine.high %v2493_v16, %v2497_v17 }
 0x3ce   :  { %5982 = vmatprep.subr.bf16.mxu0 %v6630_v22  ;;  %v2500_v22 = vld [vmem:[%s9892_s7 + $0x490] sm:$0xff]  ;;  %v6709_v9 = vcombine.low %v2525_v51, %v2529_v59 }
 0x3d0   :  { %5819 = vmatpush1.bf16.msra.mxu1 %v6627_v15  ;;  %v6675_v15 = vcombine.low %v2492_v13, %v2496_v27  ;;  %v2541_v13 = vld [vmem:[%s9892_s7 + $0x5d8] sm:$0xff] }
 0x3d1   :  { %5983 = vmatpush1.bf16.msra.mxu0 %v6629_v26  ;;  %5820 = vmatprep.subr.bf16.mxu1 %v6636_v28  ;;  %v6677_v26 = vcombine.low %v2493_v16, %v2497_v17  ;;  %v6684_v28 = vcombine.high %v2500_v22, %v2504_v23  ;;  %v2545_v27 = vld [vmem:[%s9892_s7 + $0x5f8] sm:$0xff]  ;;  %v6717_v16 = vcombine.low %v2533_v1, %v2537_v4 }
 0x3d2   :  { %5984 = vmatprep.subr.bf16.mxu0 %v6638_v29  ;;  %v6686_v29 = vcombine.high %v2501_v25, %v2505_v24  ;;  %v6725_v24 = vcombine.low %v2541_v13, %v2545_v27 }
 0x3d4   :  { %5821 = vmatpush1.bf16.msra.mxu1 %v6635_v33  ;;  %v6692_v33 = vcombine.high %v2508_v30, %v2512_v2  ;;  %v2557_v30 = vld [vmem:[%s9892_s7 + $0x658] sm:$0xff] }
 0x3d5   :  { %5985 = vmatpush1.bf16.msra.mxu0 %v6637_v35  ;;  %5822 = vmatprep.subr.bf16.mxu1 %v6644_v36  ;;  %v2516_v36 = vld [vmem:[%s9892_s7 + $0x510] sm:$0xff]  ;;  %v2561_v2 = vld [vmem:[%s9892_s7 + $0x678] sm:$0xff] }
 0x3d6   :  { %5986 = vmatprep.subr.bf16.mxu0 %v6646_v38  ;;  %v2520_v38 = vld [vmem:[%s9892_s7 + $0x530] sm:$0xff] }
 0x3d7   :  { %v6699_v54 = vcombine.low %v2516_v36, %v2520_v38 }
 0x3d8   :  { %5823 = vmatpush1.bf16.msra.mxu1 %v6643_v45  ;;  %v6700_v45 = vcombine.high %v2516_v36, %v2520_v38  ;;  %v2565_v36 = vld [vmem:[%s9892_s7 + $0x698] sm:$0xff] }
 0x3d9   :  { %5987 = vmatpush1.bf16.msra.mxu0 %v6645_v46  ;;  %5824 = vmatprep.subr.bf16.mxu1 %v6652_v47  ;;  %v6702_v46 = vcombine.high %v2517_v39, %v2521_v42  ;;  %v2524_v47 = vld [vmem:[%s9892_s7 + $0x550] sm:$0xff]  ;;  %v2569_v38 = vld [vmem:[%s9892_s7 + $0x6b8] sm:$0xff]  ;;  %v6741_v42 = vcombine.low %v2557_v30, %v2561_v2 }
 0x3da   :  { %5988 = vmatprep.subr.bf16.mxu0 %v6654_v50  ;;  %v2528_v50 = vld [vmem:[%s9892_s7 + $0x570] sm:$0xff] }
 0x3db   :  { %v6707_v6 = vcombine.low %v2524_v47, %v2528_v50 }
 0x3dc   :  { %5825 = vmatpush1.bf16.msra.mxu1 %v6651_v55  ;;  %v6708_v55 = vcombine.high %v2524_v47, %v2528_v50  ;;  %v2573_v47 = vld [vmem:[%s9892_s7 + $0x6d8] sm:$0xff] }
 0x3dd   :  { %5989 = vmatpush1.bf16.msra.mxu0 %v6653_v19  ;;  %5826 = vmatprep.subr.bf16.mxu1 %v6660_v56  ;;  %v6710_v19 = vcombine.high %v2525_v51, %v2529_v59  ;;  %v2532_v56 = vld [vmem:[%s9892_s7 + $0x590] sm:$0xff]  ;;  %v2577_v50 = vld [vmem:[%s9892_s7 + $0x6f8] sm:$0xff]  ;;  %v6749_v59 = vcombine.low %v2565_v36, %v2569_v38 }
 0x3de   :  { %5990 = vmatprep.subr.bf16.mxu0 %v6662_v0  ;;  %v2536_v0 = vld [vmem:[%s9892_s7 + $0x5b0] sm:$0xff] }
 0x3e0   :  { %5827 = vmatpush1.bf16.msra.mxu1 %v6659_v10  ;;  %v6716_v10 = vcombine.high %v2532_v56, %v2536_v0 }
 0x3e1   :  { %5991 = vmatpush1.bf16.msra.mxu0 %v6661_v11  ;;  %5837 = vmatprep.subr.bf16.mxu1 %v6668_v12  ;;  %v6718_v11 = vcombine.high %v2533_v1, %v2537_v4  ;;  %v2540_v12 = vld [vmem:[%s9892_s7 + $0x5d0] sm:$0xff]  ;;  %v6757_v4 = vcombine.low %v2573_v47, %v2577_v50 }
 0x3e2   :  { %6001 = vmatprep.subr.bf16.mxu0 %v6670_v20  ;;  %v2544_v20 = vld [vmem:[%s9892_s7 + $0x5f0] sm:$0xff] }
 0x3e3   :  { %5829 = vmatmul.mubr.bf16.vlgmr.msra.gmra.mrb[16].mxu1 %v8433_v40  ;;  %v6724_v17 = vcombine.high %v2540_v12, %v2544_v20  ;;  %v6723_v25 = vcombine.low %v2540_v12, %v2544_v20  ;;  %v2589_v12 = vld [vmem:[%s9892_s7 + $0x758] sm:$0xff] }
 0x3e4   :  { %5993 = vmatmul.mubr.bf16.vlgmr.msra.gmra.mrb[20].mxu0 %v8433_v40  ;;  %5838 = vmatpush1.bf16.msra.mxu1 %v6667_v14  ;;  %v2509_v40 = vld [vmem:[%s9892_s7 + $0x4d8] sm:$0xff]  ;;  %v6715_v14 = vcombine.low %v2532_v56, %v2536_v0 }
 0x3e5   :  { %5869 = vmatprep.mubr.bf16.mxu1 %v8449_v48  ;;  %6002 = vmatpush1.bf16.msra.mxu0 %v6669_v18  ;;  %v6694_v35 = vcombine.high %v2509_v40, %v2513_v31  ;;  %v6693_v44 = vcombine.low %v2509_v40, %v2513_v31  ;;  %v6726_v18 = vcombine.high %v2541_v13, %v2545_v27  ;;  %v2581_v56 = vld [vmem:[%s9892_s7 + $0x718] sm:$0xff] }
 0x3e6   :  { %6033 = vmatprep.mubr.bf16.mxu0 %v8449_v48  ;;  %5839 = vmatprep.subr.bf16.mxu1 %v6676_v21  ;;  %v6683_v48 = vcombine.low %v2500_v22, %v2504_v23  ;;  %v2548_v21 = vld [vmem:[%s9892_s7 + $0x610] sm:$0xff]  ;;  %v2549_v23 = vld [vmem:[%s9892_s7 + $0x618] sm:$0xff] }
 0x3e7   :  { %6003 = vmatprep.subr.bf16.mxu0 %v6678_v41  ;;  %v2552_v22 = vld [vmem:[%s9892_s7 + $0x630] sm:$0xff]  ;;  %v2553_v41 = vld [vmem:[%s9892_s7 + $0x638] sm:$0xff] }
 0x3e8   :  { %5840 = vmatpush1.bf16.msra.mxu1 %v6675_v15  ;;  %v6732_v15 = vcombine.high %v2548_v21, %v2552_v22  ;;  %v6731_v40 = vcombine.low %v2548_v21, %v2552_v22  ;;  %v6733_v31 = vcombine.low %v2549_v23, %v2553_v41  ;;  %v2585_v0 = vld [vmem:[%s9892_s7 + $0x738] sm:$0xff] }
 0x3e9   :  { %6004 = vmatpush1.bf16.msra.mxu0 %v6677_v26  ;;  %5841 = vmatprep.subr.bf16.mxu1 %v6684_v28  ;;  %v6734_v26 = vcombine.high %v2549_v23, %v2553_v41  ;;  %v2556_v28 = vld [vmem:[%s9892_s7 + $0x650] sm:$0xff]  ;;  %v2593_v20 = vld [vmem:[%s9892_s7 + $0x778] sm:$0xff]  ;;  %v6765_v27 = vcombine.low %v2581_v56, %v2585_v0 }
 0x3ea   :  { %6005 = vmatprep.subr.bf16.mxu0 %v6686_v29  ;;  %v2560_v29 = vld [vmem:[%s9892_s7 + $0x670] sm:$0xff]  ;;  %v2597_v21 = vld [vmem:[%s9892_s7 + $0x798] sm:$0xff]  ;;  %v6773_v41 = vcombine.low %v2589_v12, %v2593_v20 }
 0x3eb   :  { %v6739_v39 = vcombine.low %v2556_v28, %v2560_v29  ;;  %v2601_v22 = vld [vmem:[%s9892_s7 + $0x7b8] sm:$0xff] }
 0x3ec   :  { %5842 = vmatpush1.bf16.msra.mxu1 %v6683_v48  ;;  %v6740_v48 = vcombine.high %v2556_v28, %v2560_v29  ;;  %v2605_v28 = vld [vmem:[%s9892_s7 + $0x7d8] sm:$0xff] }
 0x3ed   :  { %6006 = vmatpush1.bf16.msra.mxu0 %v6685_v32  ;;  %5843 = vmatprep.subr.bf16.mxu1 %v6692_v33  ;;  %v6742_v32 = vcombine.high %v2557_v30, %v2561_v2  ;;  %v2564_v33 = vld [vmem:[%s9892_s7 + $0x690] sm:$0xff]  ;;  %v2609_v29 = vld [vmem:[%s9892_s7 + $0x7f8] sm:$0xff]  ;;  %v6781_v2 = vcombine.low %v2597_v21, %v2601_v22 }
 0x3ee   :  { %6007 = vmatprep.subr.bf16.mxu0 %v6694_v35  ;;  %v2568_v35 = vld [vmem:[%s9892_s7 + $0x6b0] sm:$0xff] }
 0x3ef   :  { %v6747_v51 = vcombine.low %v2564_v33, %v2568_v35 }
 0x3f0   :  { %5844 = vmatpush1.bf16.msra.mxu1 %v6691_v43  ;;  %v6748_v43 = vcombine.high %v2564_v33, %v2568_v35  ;;  %v2613_v33 = vld [vmem:[%s9892_s7 + $0x818] sm:$0xff] }
 0x3f1   :  { %6008 = vmatpush1.bf16.msra.mxu0 %v6693_v44  ;;  %5845 = vmatprep.subr.bf16.mxu1 %v6700_v45  ;;  %v6750_v44 = vcombine.high %v2565_v36, %v2569_v38  ;;  %v2572_v45 = vld [vmem:[%s9892_s7 + $0x6d0] sm:$0xff]  ;;  %v2617_v35 = vld [vmem:[%s9892_s7 + $0x838] sm:$0xff]  ;;  %v6789_v38 = vcombine.low %v2605_v28, %v2609_v29 }
 0x3f2   :  { %6009 = vmatprep.subr.bf16.mxu0 %v6702_v46  ;;  %v2576_v46 = vld [vmem:[%s9892_s7 + $0x6f0] sm:$0xff] }
 0x3f3   :  { %v6755_v1 = vcombine.low %v2572_v45, %v2576_v46 }
 0x3f4   :  { %5846 = vmatpush1.bf16.msra.mxu1 %v6699_v54  ;;  %v6756_v54 = vcombine.high %v2572_v45, %v2576_v46  ;;  %v2621_v46 = vld [vmem:[%s9892_s7 + $0x858] sm:$0xff] }
 0x3f5   :  { %6010 = vmatpush1.bf16.msra.mxu0 %v6701_v37  ;;  %5847 = vmatprep.subr.bf16.mxu1 %v6708_v55  ;;  %v6758_v37 = vcombine.high %v2573_v47, %v2577_v50  ;;  %v2580_v55 = vld [vmem:[%s9892_s7 + $0x710] sm:$0xff]  ;;  %v2625_v47 = vld [vmem:[%s9892_s7 + $0x878] sm:$0xff]  ;;  %v6797_v50 = vcombine.low %v2613_v33, %v2617_v35 }
 0x3f6   :  { %6011 = vmatprep.subr.bf16.mxu0 %v6710_v19  ;;  %v2584_v19 = vld [vmem:[%s9892_s7 + $0x730] sm:$0xff] }
 0x3f7   :  { %v6763_v13 = vcombine.low %v2580_v55, %v2584_v19 }
 0x3f8   :  { %5848 = vmatpush1.bf16.msra.mxu1 %v6707_v6  ;;  %v6764_v6 = vcombine.high %v2580_v55, %v2584_v19  ;;  %v2629_v55 = vld [vmem:[%s9892_s7 + $0x898] sm:$0xff] }
 0x3f9   :  { %6012 = vmatpush1.bf16.msra.mxu0 %v6709_v9  ;;  %5849 = vmatprep.subr.bf16.mxu1 %v6716_v10  ;;  %v6766_v9 = vcombine.high %v2581_v56, %v2585_v0  ;;  %v2588_v10 = vld [vmem:[%s9892_s7 + $0x750] sm:$0xff]  ;;  %v2633_v19 = vld [vmem:[%s9892_s7 + $0x8b8] sm:$0xff]  ;;  %v6805_v0 = vcombine.low %v2621_v46, %v2625_v47 }
 0x3fa   :  { %6013 = vmatprep.subr.bf16.mxu0 %v6718_v11  ;;  %v2592_v11 = vld [vmem:[%s9892_s7 + $0x770] sm:$0xff] }
 0x3fb   :  { %v6771_v23 = vcombine.low %v2588_v10, %v2592_v11 }
 0x3fc   :  { %5850 = vmatpush1.bf16.msra.mxu1 %v6715_v14  ;;  %v6772_v14 = vcombine.high %v2588_v10, %v2592_v11  ;;  %v2641_v10 = vld [vmem:[%s9892_s7 + $0x8f8] sm:$0xff]  ;;  %v6813_v11 = vcombine.low %v2629_v55, %v2633_v19 }
 0x3fd   :  { %6014 = vmatpush1.bf16.msra.mxu0 %v6717_v16  ;;  %5851 = vmatprep.subr.bf16.mxu1 %v6724_v17  ;;  %v6774_v16 = vcombine.high %v2589_v12, %v2593_v20  ;;  %v2596_v17 = vld [vmem:[%s9892_s7 + $0x790] sm:$0xff] }
 0x3fe   :  { %6015 = vmatprep.subr.bf16.mxu0 %v6726_v18  ;;  %v2600_v18 = vld [vmem:[%s9892_s7 + $0x7b0] sm:$0xff] }
 0x3ff   :  { %v6779_v30 = vcombine.low %v2596_v17, %v2600_v18 }
 0x400   :  { %5852 = vmatpush1.bf16.msra.mxu1 %v6723_v25  ;;  %v6780_v25 = vcombine.high %v2596_v17, %v2600_v18 }
 0x401   :  { %6016 = vmatpush1.bf16.msra.mxu0 %v6725_v24  ;;  %5853 = vmatprep.subr.bf16.mxu1 %v6732_v15  ;;  %v6782_v24 = vcombine.high %v2597_v21, %v2601_v22  ;;  %v2604_v15 = vld [vmem:[%s9892_s7 + $0x7d0] sm:$0xff] }
 0x402   :  { %6017 = vmatprep.subr.bf16.mxu0 %v6734_v26  ;;  %v2608_v26 = vld [vmem:[%s9892_s7 + $0x7f0] sm:$0xff] }
 0x403   :  { %v6787_v36 = vcombine.low %v2604_v15, %v2608_v26 }
 0x404   :  { %5854 = vmatpush1.bf16.msra.mxu1 %v6731_v40  ;;  %v6788_v40 = vcombine.high %v2604_v15, %v2608_v26 }
 0x405   :  { %6018 = vmatpush1.bf16.msra.mxu0 %v6733_v31  ;;  %5855 = vmatprep.subr.bf16.mxu1 %v6740_v48  ;;  %v6790_v31 = vcombine.high %v2605_v28, %v2609_v29  ;;  %v2612_v48 = vld [vmem:[%s9892_s7 + $0x810] sm:$0xff] }
 0x406   :  { %6019 = vmatprep.subr.bf16.mxu0 %v6742_v32  ;;  %v2616_v32 = vld [vmem:[%s9892_s7 + $0x830] sm:$0xff] }
 0x407   :  { %v6795_v45 = vcombine.low %v2612_v48, %v2616_v32 }
 0x408   :  { %5856 = vmatpush1.bf16.msra.mxu1 %v6739_v39  ;;  %v6796_v39 = vcombine.high %v2612_v48, %v2616_v32 }
 0x409   :  { %6020 = vmatpush1.bf16.msra.mxu0 %v6741_v42  ;;  %5857 = vmatprep.subr.bf16.mxu1 %v6748_v43  ;;  %v6798_v42 = vcombine.high %v2613_v33, %v2617_v35  ;;  %v2620_v43 = vld [vmem:[%s9892_s7 + $0x850] sm:$0xff] }
 0x40a   :  { %6021 = vmatprep.subr.bf16.mxu0 %v6750_v44  ;;  %v2624_v44 = vld [vmem:[%s9892_s7 + $0x870] sm:$0xff] }
 0x40b   :  { %v6803_v56 = vcombine.low %v2620_v43, %v2624_v44 }
 0x40c   :  { %5858 = vmatpush1.bf16.msra.mxu1 %v6747_v51  ;;  %v6804_v51 = vcombine.high %v2620_v43, %v2624_v44 }
 0x40d   :  { %6022 = vmatpush1.bf16.msra.mxu0 %v6749_v59  ;;  %5859 = vmatprep.subr.bf16.mxu1 %v6756_v54  ;;  %v2628_v59 = vld [vmem:[%s9892_s7 + $0x890] sm:$0xff] }
 0x40e   :  { %6023 = vmatprep.subr.bf16.mxu0 %v6758_v37  ;;  %v2632_v54 = vld [vmem:[%s9892_s7 + $0x8b0] sm:$0xff]  ;;  %v6806_v37 = vcombine.high %v2621_v46, %v2625_v47 }
 0x40f   :  { %v2676_v47 = vld [vmem:[%s9892_s7 + $0xa10] sm:$0xff] }
 0x410   :  { %5860 = vmatpush1.bf16.msra.mxu1 %v6755_v1  ;;  %v6812_v1 = vcombine.high %v2628_v59, %v2632_v54 }
 0x411   :  { %6024 = vmatpush1.bf16.msra.mxu0 %v6757_v4  ;;  %5861 = vmatprep.subr.bf16.mxu1 %v6764_v6  ;;  %v6814_v4 = vcombine.high %v2629_v55, %v2633_v19  ;;  %v2636_v6 = vld [vmem:[%s9892_s7 + $0x8d0] sm:$0xff] }
 0x412   :  { %6025 = vmatprep.subr.bf16.mxu0 %v6766_v9  ;;  %v2640_v9 = vld [vmem:[%s9892_s7 + $0x8f0] sm:$0xff] }
 0x413   :  { %v6820_v12 = vcombine.high %v2636_v6, %v2640_v9  ;;  %v6819_v17 = vcombine.low %v2636_v6, %v2640_v9 }
 0x414   :  { %5862 = vmatpush1.bf16.msra.mxu1 %v6763_v13  ;;  %v2644_v13 = vld [vmem:[%s9892_s7 + $0x910] sm:$0xff] }
 0x415   :  { %6026 = vmatpush1.bf16.msra.mxu0 %v6765_v27  ;;  %5863 = vmatprep.subr.bf16.mxu1 %v6772_v14  ;;  %v2648_v27 = vld [vmem:[%s9892_s7 + $0x930] sm:$0xff]  ;;  %v2645_v14 = vld [vmem:[%s9892_s7 + $0x918] sm:$0xff] }
 0x416   :  { %6027 = vmatprep.subr.bf16.mxu0 %v6774_v16  ;;  %v2649_v16 = vld [vmem:[%s9892_s7 + $0x938] sm:$0xff]  ;;  %v6828_v21 = vcombine.high %v2644_v13, %v2648_v27  ;;  %v6827_v15 = vcombine.low %v2644_v13, %v2648_v27 }
 0x417   :  { %v6830_v22 = vcombine.high %v2645_v14, %v2649_v16  ;;  %v6829_v26 = vcombine.low %v2645_v14, %v2649_v16 }
 0x418   :  { %5864 = vmatpush1.bf16.msra.mxu1 %v6771_v23  ;;  %v2652_v23 = vld [vmem:[%s9892_s7 + $0x950] sm:$0xff] }
 0x419   :  { %6028 = vmatpush1.bf16.msra.mxu0 %v6773_v41  ;;  %5865 = vmatprep.subr.bf16.mxu1 %v6780_v25  ;;  %v2656_v41 = vld [vmem:[%s9892_s7 + $0x970] sm:$0xff]  ;;  %v2653_v25 = vld [vmem:[%s9892_s7 + $0x958] sm:$0xff] }
 0x41a   :  { %6029 = vmatprep.subr.bf16.mxu0 %v6782_v24  ;;  %v2657_v24 = vld [vmem:[%s9892_s7 + $0x978] sm:$0xff]  ;;  %v6836_v28 = vcombine.high %v2652_v23, %v2656_v41  ;;  %v6835_v48 = vcombine.low %v2652_v23, %v2656_v41 }
 0x41b   :  { %v6838_v29 = vcombine.high %v2653_v25, %v2657_v24  ;;  %v6837_v32 = vcombine.low %v2653_v25, %v2657_v24 }
 0x41c   :  { %5866 = vmatpush1.bf16.msra.mxu1 %v6779_v30  ;;  %v2660_v30 = vld [vmem:[%s9892_s7 + $0x990] sm:$0xff] }
 0x41d   :  { %6030 = vmatpush1.bf16.msra.mxu0 %v6781_v2  ;;  %5867 = vmatprep.subr.bf16.mxu1 %v6788_v40  ;;  %v2664_v2 = vld [vmem:[%s9892_s7 + $0x9b0] sm:$0xff]  ;;  %v2661_v40 = vld [vmem:[%s9892_s7 + $0x998] sm:$0xff] }
 0x41e   :  { %6031 = vmatprep.subr.bf16.mxu0 %v6790_v31  ;;  %v2665_v31 = vld [vmem:[%s9892_s7 + $0x9b8] sm:$0xff]  ;;  %v6844_v33 = vcombine.high %v2660_v30, %v2664_v2  ;;  %v6843_v43 = vcombine.low %v2660_v30, %v2664_v2 }
 0x41f   :  { %v6846_v35 = vcombine.high %v2661_v40, %v2665_v31  ;;  %v6845_v44 = vcombine.low %v2661_v40, %v2665_v31 }
 0x420   :  { %5868 = vmatpush1.bf16.msra.mxu1 %v6787_v36  ;;  %v2668_v36 = vld [vmem:[%s9892_s7 + $0x9d0] sm:$0xff] }
 0x421   :  { %6032 = vmatpush1.bf16.msra.mxu0 %v6789_v38  ;;  %5878 = vmatprep.subr.bf16.mxu1 %v6796_v39  ;;  %v2672_v38 = vld [vmem:[%s9892_s7 + $0x9f0] sm:$0xff]  ;;  %v2669_v39 = vld [vmem:[%s9892_s7 + $0x9d8] sm:$0xff] }
 0x422   :  { %6042 = vmatprep.subr.bf16.mxu0 %v6798_v42  ;;  %v2673_v42 = vld [vmem:[%s9892_s7 + $0x9f8] sm:$0xff] }
 0x423   :  { %5870 = vmatmul.mubr.bf16.vlgmr.msra.gmra.mrb[16].mxu1 %v8638_v7  ;;  %v6854_v46 = vcombine.high %v2669_v39, %v2673_v42 }
 0x424   :  { %6034 = vmatmul.mubr.bf16.vlgmr.msra.gmra.mrb[20].mxu0 %v8638_v7  ;;  %5879 = vmatpush1.bf16.msra.mxu1 %v6795_v45  ;;  %v2637_v7 = vld [vmem:[%s9892_s7 + $0x8d8] sm:$0xff]  ;;  %v6852_v45 = vcombine.high %v2668_v36, %v2672_v38 }
 0x425   :  { %5910 = vmatprep.mubr.bf16.mxu1 %v8849_v49  ;;  %6043 = vmatpush1.bf16.msra.mxu0 %v6797_v50  ;;  %v6822_v20 = vcombine.high %v2637_v7, %v2641_v10  ;;  %v6821_v18 = vcombine.low %v2637_v7, %v2641_v10  ;;  %v2680_v50 = vld [vmem:[%s9892_s7 + $0xa30] sm:$0xff] }
 0x426   :  { %6074 = vmatprep.mubr.bf16.mxu0 %v8849_v49  ;;  %5880 = vmatprep.subr.bf16.mxu1 %v6804_v51  ;;  %v6811_v49 = vcombine.low %v2628_v59, %v2632_v54  ;;  %v2677_v51 = vld [vmem:[%s9892_s7 + $0xa18] sm:$0xff]  ;;  %v6851_v54 = vcombine.low %v2668_v36, %v2672_v38  ;;  %v6860_v55 = vcombine.high %v2676_v47, %v2680_v50 }
 0x427   :  { %6044 = vmatprep.subr.bf16.mxu0 %v6806_v37  ;;  %v2681_v59 = vld [vmem:[%s9892_s7 + $0xa38] sm:$0xff]  ;;  %v6853_v37 = vcombine.low %v2669_v39, %v2673_v42  ;;  %v6859_v6 = vcombine.low %v2676_v47, %v2680_v50 }
 0x428   :  { %5881 = vmatpush1.bf16.msra.mxu1 %v6803_v56  ;;  %v6862_v19 = vcombine.high %v2677_v51, %v2681_v59  ;;  %v2684_v56 = vld [vmem:[%s9892_s7 + $0xa50] sm:$0xff]  ;;  %v6861_v9 = vcombine.low %v2677_v51, %v2681_v59 }
 0x429   :  { %6045 = vmatpush1.bf16.msra.mxu0 %v6805_v0  ;;  %5882 = vmatprep.subr.bf16.mxu1 %v6812_v1  ;;  %v2688_v0 = vld [vmem:[%s9892_s7 + $0xa70] sm:$0xff]  ;;  %v2685_v1 = vld [vmem:[%s9892_s7 + $0xa58] sm:$0xff] }
 0x42a   :  { %6046 = vmatprep.subr.bf16.mxu0 %v6814_v4  ;;  %v2689_v4 = vld [vmem:[%s9892_s7 + $0xa78] sm:$0xff]  ;;  %v6868_v7 = vcombine.high %v2684_v56, %v2688_v0  ;;  %v6867_v13 = vcombine.low %v2684_v56, %v2688_v0 }
 0x42b   :  { %v6870_v10 = vcombine.high %v2685_v1, %v2689_v4  ;;  %v6869_v27 = vcombine.low %v2685_v1, %v2689_v4 }
 0x42c   :  { %5883 = vmatpush1.bf16.msra.mxu1 %v6811_v49  ;;  %v2692_v49 = vld [vmem:[%s9892_s7 + $0xa90] sm:$0xff] }
 0x42d   :  { %6047 = vmatpush1.bf16.msra.mxu0 %v6813_v11  ;;  %5884 = vmatprep.subr.bf16.mxu1 %v6820_v12  ;;  %v2696_v11 = vld [vmem:[%s9892_s7 + $0xab0] sm:$0xff]  ;;  %v2693_v12 = vld [vmem:[%s9892_s7 + $0xa98] sm:$0xff] }
 0x42e   :  { %6048 = vmatprep.subr.bf16.mxu0 %v6822_v20  ;;  %v2697_v20 = vld [vmem:[%s9892_s7 + $0xab8] sm:$0xff]  ;;  %v6876_v14 = vcombine.high %v2692_v49, %v2696_v11  ;;  %v6875_v23 = vcombine.low %v2692_v49, %v2696_v11 }
 0x42f   :  { %v6878_v16 = vcombine.high %v2693_v12, %v2697_v20  ;;  %v6877_v41 = vcombine.low %v2693_v12, %v2697_v20 }
 0x430   :  { %5885 = vmatpush1.bf16.msra.mxu1 %v6819_v17  ;;  %v2700_v17 = vld [vmem:[%s9892_s7 + $0xad0] sm:$0xff] }
 0x431   :  { %6049 = vmatpush1.bf16.msra.mxu0 %v6821_v18  ;;  %5886 = vmatprep.subr.bf16.mxu1 %v6828_v21  ;;  %v2704_v18 = vld [vmem:[%s9892_s7 + $0xaf0] sm:$0xff]  ;;  %v2701_v21 = vld [vmem:[%s9892_s7 + $0xad8] sm:$0xff] }
 0x432   :  { %6050 = vmatprep.subr.bf16.mxu0 %v6830_v22  ;;  %v2705_v22 = vld [vmem:[%s9892_s7 + $0xaf8] sm:$0xff]  ;;  %v6884_v25 = vcombine.high %v2700_v17, %v2704_v18  ;;  %v6883_v30 = vcombine.low %v2700_v17, %v2704_v18 }
 0x433   :  { %v6886_v24 = vcombine.high %v2701_v21, %v2705_v22  ;;  %v6885_v2 = vcombine.low %v2701_v21, %v2705_v22  ;;  %v2753_v17 = vld [vmem:[%s9892_s7 + $0xc78] sm:$0xff]  ;;  %v2756_v22 = vld [vmem:[%s9892_s7 + $0xc90] sm:$0xff] }
 0x434   :  { %5887 = vmatpush1.bf16.msra.mxu1 %v6827_v15  ;;  %v2708_v15 = vld [vmem:[%s9892_s7 + $0xb10] sm:$0xff] }
 0x435   :  { %6051 = vmatpush1.bf16.msra.mxu0 %v6829_v26  ;;  %5888 = vmatprep.subr.bf16.mxu1 %v6836_v28  ;;  %v2712_v26 = vld [vmem:[%s9892_s7 + $0xb30] sm:$0xff]  ;;  %v2709_v28 = vld [vmem:[%s9892_s7 + $0xb18] sm:$0xff] }
 0x436   :  { %6052 = vmatprep.subr.bf16.mxu0 %v6838_v29  ;;  %v2713_v29 = vld [vmem:[%s9892_s7 + $0xb38] sm:$0xff]  ;;  %v6892_v40 = vcombine.high %v2708_v15, %v2712_v26  ;;  %v6891_v36 = vcombine.low %v2708_v15, %v2712_v26 }
 0x437   :  { %v6894_v31 = vcombine.high %v2709_v28, %v2713_v29  ;;  %v6893_v38 = vcombine.low %v2709_v28, %v2713_v29 }
 0x438   :  { %5889 = vmatpush1.bf16.msra.mxu1 %v6835_v48  ;;  %v2716_v48 = vld [vmem:[%s9892_s7 + $0xb50] sm:$0xff] }
 0x439   :  { %6053 = vmatpush1.bf16.msra.mxu0 %v6837_v32  ;;  %5890 = vmatprep.subr.bf16.mxu1 %v6844_v33  ;;  %v2720_v32 = vld [vmem:[%s9892_s7 + $0xb70] sm:$0xff]  ;;  %v2717_v33 = vld [vmem:[%s9892_s7 + $0xb58] sm:$0xff] }
 0x43a   :  { %6054 = vmatprep.subr.bf16.mxu0 %v6846_v35  ;;  %v2721_v35 = vld [vmem:[%s9892_s7 + $0xb78] sm:$0xff]  ;;  %v6900_v39 = vcombine.high %v2716_v48, %v2720_v32  ;;  %v6899_v47 = vcombine.low %v2716_v48, %v2720_v32 }
 0x43b   :  { %v6902_v42 = vcombine.high %v2717_v33, %v2721_v35  ;;  %v6901_v50 = vcombine.low %v2717_v33, %v2721_v35  ;;  %v2772_v33 = vld [vmem:[%s9892_s7 + $0xd10] sm:$0xff] }
 0x43c   :  { %5891 = vmatpush1.bf16.msra.mxu1 %v6843_v43  ;;  %v2724_v43 = vld [vmem:[%s9892_s7 + $0xb90] sm:$0xff] }
 0x43d   :  { %6055 = vmatpush1.bf16.msra.mxu0 %v6845_v44  ;;  %5892 = vmatprep.subr.bf16.mxu1 %v6852_v45  ;;  %v2728_v44 = vld [vmem:[%s9892_s7 + $0xbb0] sm:$0xff]  ;;  %v2725_v45 = vld [vmem:[%s9892_s7 + $0xb98] sm:$0xff] }
 0x43e   :  { %6056 = vmatprep.subr.bf16.mxu0 %v6854_v46  ;;  %v2729_v46 = vld [vmem:[%s9892_s7 + $0xbb8] sm:$0xff]  ;;  %v6908_v51 = vcombine.high %v2724_v43, %v2728_v44  ;;  %v6907_v56 = vcombine.low %v2724_v43, %v2728_v44  ;;  %v2776_v35 = vld [vmem:[%s9892_s7 + $0xd30] sm:$0xff] }
 0x43f   :  { %v6910_v59 = vcombine.high %v2725_v45, %v2729_v46  ;;  %v6909_v0 = vcombine.low %v2725_v45, %v2729_v46  ;;  %v6956_v44 = vcombine.high %v2772_v33, %v2776_v35  ;;  %v2780_v46 = vld [vmem:[%s9892_s7 + $0xd50] sm:$0xff] }
 0x440   :  { %5893 = vmatpush1.bf16.msra.mxu1 %v6851_v54  ;;  %v2732_v54 = vld [vmem:[%s9892_s7 + $0xbd0] sm:$0xff] }
 0x441   :  { %6057 = vmatpush1.bf16.msra.mxu0 %v6853_v37  ;;  %5894 = vmatprep.subr.bf16.mxu1 %v6860_v55  ;;  %v2736_v37 = vld [vmem:[%s9892_s7 + $0xbf0] sm:$0xff]  ;;  %v2733_v55 = vld [vmem:[%s9892_s7 + $0xbd8] sm:$0xff] }
 0x442   :  { %6058 = vmatprep.subr.bf16.mxu0 %v6862_v19  ;;  %v2737_v19 = vld [vmem:[%s9892_s7 + $0xbf8] sm:$0xff]  ;;  %v6916_v1 = vcombine.high %v2732_v54, %v2736_v37  ;;  %v6915_v49 = vcombine.low %v2732_v54, %v2736_v37  ;;  %v6955_v54 = vcombine.low %v2772_v33, %v2776_v35  ;;  %v9714_v37 = vld [vmem:[%s9895_s8] sm:$0xff] }
 0x443   :  { %v6918_v4 = vcombine.high %v2733_v55, %v2737_v19  ;;  %v6917_v11 = vcombine.low %v2733_v55, %v2737_v19 }
 0x444   :  { %5895 = vmatpush1.bf16.msra.mxu1 %v6859_v6  ;;  %v2740_v6 = vld [vmem:[%s9892_s7 + $0xc10] sm:$0xff] }
 0x445   :  { %6059 = vmatpush1.bf16.msra.mxu0 %v6861_v9  ;;  %5896 = vmatprep.subr.bf16.mxu1 %v6868_v7  ;;  %v2744_v9 = vld [vmem:[%s9892_s7 + $0xc30] sm:$0xff]  ;;  %v2741_v7 = vld [vmem:[%s9892_s7 + $0xc18] sm:$0xff] }
 0x446   :  { %6060 = vmatprep.subr.bf16.mxu0 %v6870_v10  ;;  %v2745_v10 = vld [vmem:[%s9892_s7 + $0xc38] sm:$0xff]  ;;  %v6924_v12 = vcombine.high %v2740_v6, %v2744_v9 }
 0x447   :  { %v6926_v20 = vcombine.high %v2741_v7, %v2745_v10  ;;  %v6925_v18 = vcombine.low %v2741_v7, %v2745_v10  ;;  %v2789_v7 = vld [vmem:[%s9892_s7 + $0xd98] sm:$0xff] }
 0x448   :  { %5897 = vmatpush1.bf16.msra.mxu1 %v6867_v13  ;;  %v2748_v13 = vld [vmem:[%s9892_s7 + $0xc50] sm:$0xff]  ;;  %v2793_v10 = vld [vmem:[%s9892_s7 + $0xdb8] sm:$0xff] }
 0x449   :  { %6061 = vmatpush1.bf16.msra.mxu0 %v6869_v27  ;;  %5898 = vmatprep.subr.bf16.mxu1 %v6876_v14  ;;  %v2752_v27 = vld [vmem:[%s9892_s7 + $0xc70] sm:$0xff]  ;;  %v6923_v14 = vcombine.low %v2740_v6, %v2744_v9  ;;  %v2879_v9 = vrot.slane %v9714_v37, %v7777_v5 }
 0x44a   :  { %6062 = vmatprep.subr.bf16.mxu0 %v6878_v16  ;;  %v2749_v16 = vld [vmem:[%s9892_s7 + $0xc58] sm:$0xff]  ;;  %v6932_v21 = vcombine.high %v2748_v13, %v2752_v27  ;;  %v6931_v15 = vcombine.low %v2748_v13, %v2752_v27 }
 0x44b   :  { %v6933_v26 = vcombine.low %v2749_v16, %v2753_v17 }
 0x44c   :  { %5899 = vmatpush1.bf16.msra.mxu1 %v6875_v23  ;;  %v2760_v23 = vld [vmem:[%s9892_s7 + $0xcb0] sm:$0xff] }
 0x44d   :  { %6063 = vmatpush1.bf16.msra.mxu0 %v6877_v41  ;;  %5900 = vmatprep.subr.bf16.mxu1 %v6884_v25  ;;  %v6934_v41 = vcombine.high %v2749_v16, %v2753_v17  ;;  %v2757_v25 = vld [vmem:[%s9892_s7 + $0xc98] sm:$0xff]  ;;  %v6940_v28 = vcombine.high %v2756_v22, %v2760_v23 }
 0x44e   :  { %6064 = vmatprep.subr.bf16.mxu0 %v6886_v24  ;;  %v2761_v24 = vld [vmem:[%s9892_s7 + $0xcb8] sm:$0xff] }
 0x44f   :  { %v6942_v29 = vcombine.high %v2757_v25, %v2761_v24 }
 0x450   :  { %5901 = vmatpush1.bf16.msra.mxu1 %v6883_v30  ;;  %v2764_v30 = vld [vmem:[%s9892_s7 + $0xcd0] sm:$0xff] }
 0x451   :  { %6065 = vmatpush1.bf16.msra.mxu0 %v6885_v2  ;;  %5902 = vmatprep.subr.bf16.mxu1 %v6892_v40  ;;  %v2768_v2 = vld [vmem:[%s9892_s7 + $0xcf0] sm:$0xff]  ;;  %v2769_v40 = vld [vmem:[%s9892_s7 + $0xcf8] sm:$0xff] }
 0x452   :  { %6066 = vmatprep.subr.bf16.mxu0 %v6894_v31  ;;  %v6941_v31 = vcombine.low %v2757_v25, %v2761_v24  ;;  %v6948_v48 = vcombine.high %v2764_v30, %v2768_v2 }
 0x454   :  { %5903 = vmatpush1.bf16.msra.mxu1 %v6891_v36  ;;  %v2773_v36 = vld [vmem:[%s9892_s7 + $0xd18] sm:$0xff] }
 0x455   :  { %6067 = vmatpush1.bf16.msra.mxu0 %v6893_v38  ;;  %5904 = vmatprep.subr.bf16.mxu1 %v6900_v39  ;;  %v2777_v38 = vld [vmem:[%s9892_s7 + $0xd38] sm:$0xff]  ;;  %v6947_v39 = vcombine.low %v2764_v30, %v2768_v2 }
 0x456   :  { %6068 = vmatprep.subr.bf16.mxu0 %v6902_v42  ;;  %v9694_v42 = vld [vmem:[%s9894_s9] sm:$0xff]  ;;  %v6958_v45 = vcombine.high %v2773_v36, %v2777_v38  ;;  %v6957_v55 = vcombine.low %v2773_v36, %v2777_v38 }
 0x458   :  { %5905 = vmatpush1.bf16.msra.mxu1 %v6899_v47  ;;  %v2784_v47 = vld [vmem:[%s9892_s7 + $0xd70] sm:$0xff] }
 0x459   :  { %6069 = vmatpush1.bf16.msra.mxu0 %v6901_v50  ;;  %5906 = vmatprep.subr.bf16.mxu1 %v6908_v51  ;;  %v9703_v50 = vunpack.c.l.bf16 %v9694_v42  ;;  %v2781_v51 = vld [vmem:[%s9892_s7 + $0xd58] sm:$0xff]  ;;  %v6964_v19 = vcombine.high %v2780_v46, %v2784_v47 }
 0x45a   :  { %6070 = vmatprep.subr.bf16.mxu0 %v6910_v59  ;;  %v2785_v59 = vld [vmem:[%s9892_s7 + $0xd78] sm:$0xff] }
 0x45b   :  { %v6140_v6 = vrot.slane %v9703_v50, %v7587_v58  ;;  %v6965_v13 = vcombine.low %v2781_v51, %v2785_v59  ;;  %v6148_v17 = vrot.slane %v9703_v50, %v8799_v63  ;;  %v6152_v24 = vrot.slane %v9703_v50, %v9006_v53 }
 0x45c   :  { %5907 = vmatpush1.bf16.msra.mxu1 %v6907_v56  ;;  %v6966_v56 = vcombine.high %v2781_v51, %v2785_v59 }
 0x45d   :  { %6071 = vmatpush1.bf16.msra.mxu0 %v6909_v0  ;;  %5908 = vmatprep.subr.bf16.mxu1 %v6916_v1  ;;  %v2788_v0 = vld [vmem:[%s9892_s7 + $0xd90] sm:$0xff]  ;;  %v6188_v36 = vrot.slane %v6148_v17, %v7587_v58  ;;  %v6192_v59 = vrot.slane %v6152_v24, %v7587_v58  ;;  %v2821_v17 = vld [vmem:[%s9892_s7 + $0xe98] sm:$0xff] }
 0x45e   :  { %6072 = vmatprep.subr.bf16.mxu0 %v6918_v4  ;;  %v2792_v1 = vld [vmem:[%s9892_s7 + $0xdb0] sm:$0xff]  ;;  %v2871_v4 = vrot.slane %v9714_v37, %v7587_v58  ;;  %v2833_v24 = vld [vmem:[%s9892_s7 + $0xef8] sm:$0xff] }
 0x45f   :  { %v6972_v27 = vcombine.high %v2788_v0, %v2792_v1 }
 0x460   :  { %5909 = vmatpush1.bf16.msra.mxu1 %v6915_v49  ;;  %v2875_v49 = vrot.slane %v9714_v37, %v7595_v60  ;;  %v2796_v60 = vld [vmem:[%s9892_s7 + $0xdd0] sm:$0xff] }
 0x461   :  { %6073 = vmatpush1.bf16.msra.mxu0 %v6917_v11  ;;  %5919 = vmatprep.subr.bf16.mxu1 %v6924_v12  ;;  %v6144_v11 = vrot.slane %v9703_v50, %v7777_v5  ;;  %v2883_v12 = vrot.slane %v9714_v37, %v7598_v61  ;;  %v2800_v61 = vld [vmem:[%s9892_s7 + $0xdf0] sm:$0xff] }
 0x462   :  { %6083 = vmatprep.subr.bf16.mxu0 %v6926_v20  ;;  %v6963_v20 = vcombine.low %v2780_v46, %v2784_v47  ;;  %v6980_v33 = vcombine.high %v2796_v60, %v2800_v61  ;;  %v2805_v46 = vld [vmem:[%s9892_s7 + $0xe18] sm:$0xff] }
 0x463   :  { %5911 = vmatmul.mubr.bf16.vlgmr.msra.gmra.mrb[16].mxu1 %v8851_v52  ;;  %v2809_v47 = vld [vmem:[%s9892_s7 + $0xe38] sm:$0xff] }
 0x464   :  { %6075 = vmatmul.mubr.bf16.vlgmr.msra.gmra.mrb[20].mxu0 %v8851_v52  ;;  %5920 = vmatpush1.bf16.msra.mxu1 %v6923_v14  ;;  %v2765_v52 = vld [vmem:[%s9892_s7 + $0xcd8] sm:$0xff] }
 0x465   :  { %5951 = vmatprep.mubr.bf16.mxu1 %v8867_v62  ;;  %6084 = vmatpush1.bf16.msra.mxu0 %v6925_v18  ;;  %v6950_v32 = vcombine.high %v2765_v52, %v2769_v40  ;;  %v6949_v43 = vcombine.low %v2765_v52, %v2769_v40  ;;  %v6974_v18 = vcombine.high %v2789_v7, %v2793_v10 }
 0x466   :  { %6115 = vmatprep.mubr.bf16.mxu0 %v8867_v62  ;;  %5921 = vmatprep.subr.bf16.mxu1 %v6932_v21  ;;  %v6939_v62 = vcombine.low %v2756_v22, %v2760_v23  ;;  %v6180_v22 = vrot.slane %v6140_v6, %v7587_v58  ;;  %v6971_v40 = vcombine.low %v2788_v0, %v2792_v1  ;;  %v2816_v6 = vld [vmem:[%s9892_s7 + $0xe70] sm:$0xff] }
 0x467   :  { %6085 = vmatprep.subr.bf16.mxu0 %v6934_v41  ;;  %v6990_v1 = vcombine.high %v2805_v46, %v2809_v47 }
 0x468   :  { %5922 = vmatpush1.bf16.msra.mxu1 %v6931_v15  ;;  %v2797_v15 = vld [vmem:[%s9892_s7 + $0xdd8] sm:$0xff] }
 0x469   :  { %6086 = vmatpush1.bf16.msra.mxu0 %v6933_v26  ;;  %5923 = vmatprep.subr.bf16.mxu1 %v6940_v28  ;;  %v2801_v26 = vld [vmem:[%s9892_s7 + $0xdf8] sm:$0xff] }
 0x46a   :  { %6087 = vmatprep.subr.bf16.mxu0 %v6942_v29  ;;  %v6184_v29 = vrot.slane %v6144_v11, %v7587_v58 }
 0x46c   :  { %5924 = vmatpush1.bf16.msra.mxu1 %v6939_v62 }
 0x46d   :  { %6088 = vmatpush1.bf16.msra.mxu0 %v6941_v31  ;;  %5925 = vmatprep.subr.bf16.mxu1 %v6948_v48 }
 0x46e   :  { %6089 = vmatprep.subr.bf16.mxu0 %v6950_v32  ;;  %v6973_v32 = vcombine.low %v2789_v7, %v2793_v10  ;;  %v2817_v7 = vld [vmem:[%s9892_s7 + $0xe78] sm:$0xff] }
 0x470   :  { %5926 = vmatpush1.bf16.msra.mxu1 %v6947_v39  ;;  %v6982_v39 = vcombine.high %v2797_v15, %v2801_v26 }
 0x471   :  { %6090 = vmatpush1.bf16.msra.mxu0 %v6949_v43  ;;  %5927 = vmatprep.subr.bf16.mxu1 %v6956_v44  ;;  %v2804_v43 = vld [vmem:[%s9892_s7 + $0xe10] sm:$0xff] }
 0x472   :  { %6091 = vmatprep.subr.bf16.mxu0 %v6958_v45  ;;  %v2808_v44 = vld [vmem:[%s9892_s7 + $0xe30] sm:$0xff] }
 0x473   :  { %v6987_v11 = vcombine.low %v2804_v43, %v2808_v44 }
 0x474   :  { %5928 = vmatpush1.bf16.msra.mxu1 %v6955_v54  ;;  %v6979_v54 = vcombine.low %v2796_v60, %v2800_v61 }
 0x475   :  { %6092 = vmatpush1.bf16.msra.mxu0 %v6957_v55  ;;  %5929 = vmatprep.subr.bf16.mxu1 %v6964_v19  ;;  %v6981_v55 = vcombine.low %v2797_v15, %v2801_v26  ;;  %v6988_v19 = vcombine.high %v2804_v43, %v2808_v44 }
 0x476   :  { %v5625_v14 = vpop.f32.mrb[12].mxu1  ;;  %v5789_v16 = vpop.f32.mrb[16].mxu0  ;;  %6093 = vmatprep.subr.bf16.mxu0 %v6966_v56 }
 0x477   :  { %v7073_v21 = vadd.f32 %v5625_v14, %v2871_v4  ;;  %v7075_v23 = vadd.f32 %v5789_v16, %v2879_v9  ;;  %v5627_v41 = vpop.f32.mrb[13].mxu1  ;;  %v5791_v25 = vpop.f32.mrb[17].mxu0  ;;  %v2812_v4 = vld [vmem:[%s9892_s7 + $0xe50] sm:$0xff]  ;;  %v2813_v9 = vld [vmem:[%s9892_s7 + $0xe58] sm:$0xff] }
 0x478   :  { %v7074_v28 = vadd.f32 %v5627_v41, %v2875_v49  ;;  %v7076_v30 = vadd.f32 %v5791_v25, %v2883_v12  ;;  %v5629_v2 = vpop.f32.mrb[14].mxu1  ;;  %v5793_v52 = vpop.f32.mrb[18].mxu0  ;;  %5930 = vmatpush1.bf16.msra.mxu1 %v6963_v20  ;;  %v6989_v12 = vcombine.low %v2805_v46, %v2809_v47  ;;  %v6996_v20 = vcombine.high %v2812_v4, %v2816_v6  ;;  %v2820_v14 = vld [vmem:[%s9892_s7 + $0xe90] sm:$0xff]  ;;  %v2829_v25 = vld [vmem:[%s9892_s7 + $0xed8] sm:$0xff] }
 0x479   :  { %v6124_v62 = vmax.f32 %v7073_v21, 0.0  ;;  %6094 = vmatpush1.bf16.msra.mxu0 %v6965_v13  ;;  %v5630_v31 = vpop.f32.mrb[15].mxu1  ;;  %v5794_v48 = vpop.f32.mrb[19].mxu0  ;;  %5931 = vmatprep.subr.bf16.mxu1 %v6972_v27  ;;  %v6126_v35 = vmax.f32 %v7075_v23, 0.0  ;;  %v6998_v27 = vcombine.high %v2813_v9, %v2817_v7  ;;  %v2824_v16 = vld [vmem:[%s9892_s7 + $0xeb0] sm:$0xff]  ;;  %v6995_v60 = vcombine.low %v2812_v4, %v2816_v6  ;;  %v2837_v52 = vld [vmem:[%s9892_s7 + $0xf18] sm:$0xff] }
 0x47a   :  { %v6125_v38 = vmax.f32 %v7074_v28, 0.0  ;;  %6095 = vmatprep.subr.bf16.mxu0 %v6974_v18  ;;  %v6127_v51 = vmax.f32 %v7076_v30, 0.0  ;;  %v2825_v18 = vld [vmem:[%s9892_s7 + $0xeb8] sm:$0xff]  ;;  %v6997_v61 = vcombine.low %v2813_v9, %v2817_v7  ;;  %v7004_v21 = vcombine.high %v2820_v14, %v2824_v16  ;;  %v2828_v23 = vld [vmem:[%s9892_s7 + $0xed0] sm:$0xff] }
 0x47b   :  { %v6209_v45 = vmul.f32 %v6180_v22, %v6124_v62  ;;  %v6211_v56 = vmul.f32 %v6188_v36, %v6126_v35  ;;  %v7006_v22 = vcombine.high %v2821_v17, %v2825_v18  ;;  %v2832_v41 = vld [vmem:[%s9892_s7 + $0xef0] sm:$0xff]  ;;  %v7003_v15 = vcombine.low %v2820_v14, %v2824_v16  ;;  %v2845_v36 = vld [vmem:[%s9892_s7 + $0xf58] sm:$0xff] }
 0x47c   :  { %v6210_v50 = vmul.f32 %v6184_v29, %v6125_v38  ;;  %5932 = vmatpush1.bf16.msra.mxu1 %v6971_v40  ;;  %v6212_v10 = vmul.f32 %v6192_v59, %v6127_v51  ;;  %v7005_v26 = vcombine.low %v2821_v17, %v2825_v18  ;;  %v7012_v28 = vcombine.high %v2828_v23, %v2832_v41  ;;  %v2836_v30 = vld [vmem:[%s9892_s7 + $0xf10] sm:$0xff]  ;;  %v2841_v40 = vld [vmem:[%s9892_s7 + $0xf38] sm:$0xff] }
 0x47d   :  { %6096 = vmatpush1.bf16.msra.mxu0 %v6973_v32  ;;  %5933 = vmatprep.subr.bf16.mxu1 %v6980_v33  ;;  %v7014_v29 = vcombine.high %v2829_v25, %v2833_v24  ;;  %v2840_v2 = vld [vmem:[%s9892_s7 + $0xf30] sm:$0xff]  ;;  %v7011_v62 = vcombine.low %v2828_v23, %v2832_v41  ;;  %v7013_v31 = vcombine.low %v2829_v25, %v2833_v24  ;;  %v2849_v38 = vld [vmem:[%s9892_s7 + $0xf78] sm:$0xff] }
 0x47e   :  { %v6217_v0 = vadd.f32 %v6210_v50, %v6209_v45  ;;  %6097 = vmatprep.subr.bf16.mxu0 %v6982_v39  ;;  %v7020_v48 = vcombine.high %v2836_v30, %v2840_v2  ;;  %v7022_v32 = vcombine.high %v2837_v52, %v2841_v40  ;;  %v2844_v33 = vld [vmem:[%s9892_s7 + $0xf50] sm:$0xff]  ;;  %v7019_v39 = vcombine.low %v2836_v30, %v2840_v2  ;;  %v2853_v50 = vld [vmem:[%s9892_s7 + $0xf98] sm:$0xff] }
 0x47f   :  { %v2848_v35 = vld [vmem:[%s9892_s7 + $0xf70] sm:$0xff]  ;;  %v7021_v43 = vcombine.low %v2837_v52, %v2841_v40  ;;  %v7030_v45 = vcombine.high %v2845_v36, %v2849_v38  ;;  %v2857_v51 = vld [vmem:[%s9892_s7 + $0xfb8] sm:$0xff]  ;;  %v2895_v16 = vrot.slane %v9714_v37, %v9006_v53  ;;  %v2891_v17 = vrot.slane %v9714_v37, %v712_v3 }
 0x480   :  { %v6218_v49 = vadd.f32 %v6217_v0, %v6211_v56  ;;  %5934 = vmatpush1.bf16.msra.mxu1 %v6979_v54  ;;  %v7028_v44 = vcombine.high %v2844_v33, %v2848_v35  ;;  %v2852_v46 = vld [vmem:[%s9892_s7 + $0xf90] sm:$0xff]  ;;  %v7027_v59 = vcombine.low %v2844_v33, %v2848_v35  ;;  %v7029_v54 = vcombine.low %v2845_v36, %v2849_v38  ;;  %v2865_v4 = vld [vmem:[%s9892_s7 + $0xff8] sm:$0xff] }
 0x481   :  { %6098 = vmatpush1.bf16.msra.mxu0 %v6981_v55  ;;  %5935 = vmatprep.subr.bf16.mxu1 %v6988_v19  ;;  %v2856_v47 = vld [vmem:[%s9892_s7 + $0xfb0] sm:$0xff]  ;;  %v7038_v19 = vcombine.high %v2853_v50, %v2857_v51  ;;  %v7037_v9 = vcombine.low %v2853_v50, %v2857_v51  ;;  %v2899_v18 = vrot.slane %v9714_v37, %v720_v8 }
 0x482   :  { %v9784_v13 = vadd.f32 %v6218_v49, %v6212_v10  ;;  %6099 = vmatprep.subr.bf16.mxu0 %v6990_v1  ;;  %v7036_v55 = vcombine.high %v2852_v46, %v2856_v47  ;;  %v2860_v56 = vld [vmem:[%s9892_s7 + $0xfd0] sm:$0xff]  ;;  %v2861_v1 = vld [vmem:[%s9892_s7 + $0xfd8] sm:$0xff]  ;;  %v7035_v6 = vcombine.low %v2852_v46, %v2856_v47 }
 0x483   :  { %v2864_v0 = vld [vmem:[%s9892_s7 + $0xff0] sm:$0xff]  ;;  %v7046_v10 = vcombine.high %v2861_v1, %v2865_v4 }
 0x484   :  { %5936 = vmatpush1.bf16.msra.mxu1 %v6987_v11  ;;  %v7044_v7 = vcombine.high %v2860_v56, %v2864_v0  ;;  %v7043_v49 = vcombine.low %v2860_v56, %v2864_v0  ;;  %v7045_v11 = vcombine.low %v2861_v1, %v2865_v4 }
 0x485   :  { %6100 = vmatpush1.bf16.msra.mxu0 %v6989_v12  ;;  %5937 = vmatprep.subr.bf16.mxu1 %v6996_v20  ;;  %v16_v12 = vstv %s9896_s10  ;;  %v6134_v20 = vunpack.c.h.bf16 %v9694_v42 }
 0x486   :  { %6101 = vmatprep.subr.bf16.mxu0 %v6998_v27  ;;  %17 = vst [vmem:[#allocation2] sm:$0x1] %v16_v12  ;;  %v2887_v27 = vrot.slane %v9714_v37, %v8799_v63 }
 0x487   :  { %v6156_v14 = vrot.slane %v6134_v20, %v7587_v58  ;;  %v6168_v8 = vrot.slane %v6134_v20, %v9006_v53 }
 0x488   :  { %5938 = vmatpush1.bf16.msra.mxu1 %v6995_v60 }
 0x489   :  { %6102 = vmatpush1.bf16.msra.mxu0 %v6997_v61  ;;  %5939 = vmatprep.subr.bf16.mxu1 %v7004_v21  ;;  %v6196_v61 = vrot.slane %v6156_v14, %v7587_v58 }
 0x48a   :  { %6103 = vmatprep.subr.bf16.mxu0 %v7006_v22  ;;  %v6164_v22 = vrot.slane %v6134_v20, %v8799_v63 }
 0x48c   :  { %5940 = vmatpush1.bf16.msra.mxu1 %v7003_v15  ;;  %v6204_v52 = vrot.slane %v6164_v22, %v7587_v58 }
 0x48d   :  { %6104 = vmatpush1.bf16.msra.mxu0 %v7005_v26  ;;  %5941 = vmatprep.subr.bf16.mxu1 %v7012_v28  ;;  %v7047_v38 = vld [vmem:[#allocation2] ss:$0 sm:$0xff] }
 0x48e   :  { %6105 = vmatprep.subr.bf16.mxu0 %v7014_v29 }
 0x490   :  { %5942 = vmatpush1.bf16.msra.mxu1 %v7011_v62 }
 0x491   :  { %6106 = vmatpush1.bf16.msra.mxu0 %v7013_v31  ;;  %5943 = vmatprep.subr.bf16.mxu1 %v7020_v48  ;;  %v6208_v31 = vrot.slane %v6168_v8, %v7587_v58 }
 0x492   :  { %6107 = vmatprep.subr.bf16.mxu0 %v7022_v32 }
 0x494   :  { %5944 = vmatpush1.bf16.msra.mxu1 %v7019_v39 }
 0x495   :  { %6108 = vmatpush1.bf16.msra.mxu0 %v7021_v43  ;;  %5945 = vmatprep.subr.bf16.mxu1 %v7028_v44 }
 0x496   :  { %6109 = vmatprep.subr.bf16.mxu0 %v7030_v45 }
 0x498   :  { %5946 = vmatpush1.bf16.msra.mxu1 %v7027_v59 }
 0x499   :  { %6110 = vmatpush1.bf16.msra.mxu0 %v7029_v54  ;;  %5947 = vmatprep.subr.bf16.mxu1 %v7036_v55 }
 0x49a   :  { %6111 = vmatprep.subr.bf16.mxu0 %v7038_v19 }
 0x49c   :  { %5948 = vmatpush1.bf16.msra.mxu1 %v7035_v6 }
 0x49d   :  { %6112 = vmatpush1.bf16.msra.mxu0 %v7037_v9  ;;  %5949 = vmatprep.subr.bf16.mxu1 %v7044_v7 }
 0x49e   :  { %6113 = vmatprep.subr.bf16.mxu0 %v7046_v10 }
 0x4a0   :  { %5950 = vmatpush1.bf16.msra.mxu1 %v7043_v49 }
 0x4a1   :  { %6114 = vmatpush1.bf16.msra.mxu0 %v7045_v11 }
 0x4a3   :  { %5952 = vmatmul.mubr.bf16.vlgmr.msra.gmra.mrb[16].mxu1 %v9061_v34 }
 0x4a4   :  { %6116 = vmatmul.mubr.bf16.vlgmr.msra.gmra.mrb[20].mxu0 %v9061_v34  ;;  %v6160_v34 = vrot.slane %v6134_v20, %v7777_v5 }
 0x4a6   :  { %v6200_v24 = vrot.slane %v6160_v34, %v7587_v58 }
 0x576   :  { %v5953_v60 = vpop.f32.mrb[16].mxu1 }
 0x577   :  { %v7077_v42 = vadd.f32 %v5953_v60, %v2887_v27  ;;  %v6117_v21 = vpop.f32.mrb[20].mxu0  ;;  %v5955_v23 = vpop.f32.mrb[17].mxu1 }
 0x578   :  { %v7079_v41 = vadd.f32 %v6117_v21, %v2895_v16  ;;  %v7078_v25 = vadd.f32 %v5955_v23, %v2891_v17  ;;  %v6119_v15 = vpop.f32.mrb[21].mxu0  ;;  %v5957_v3 = vpop.f32.mrb[18].mxu1 }
 0x579   :  { %v6128_v26 = vmax.f32 %v7077_v42, 0.0  ;;  %v7080_v5 = vadd.f32 %v6119_v15, %v2899_v18  ;;  %v6121_v28 = vpop.f32.mrb[22].mxu0  ;;  %v5958_v57 = vpop.f32.mrb[19].mxu1 }
 0x57a   :  { %v6129_v37 = vmax.f32 %v7078_v25, 0.0  ;;  %v6122_v29 = vpop.f32.mrb[23].mxu0  ;;  %v6130_v2 = vmax.f32 %v7079_v41, 0.0 }
 0x57b   :  { %v6213_v30 = vmul.f32 %v6196_v61, %v6128_v26  ;;  %v6131_v62 = vmax.f32 %v7080_v5, 0.0 }
 0x57c   :  { %v6214_v63 = vmul.f32 %v6200_v24, %v6129_v37  ;;  %v6215_v48 = vmul.f32 %v6204_v52, %v6130_v2 }
 0x57d   :  { %v6220_v40 = vadd.f32 %v9784_v13, %v6213_v30  ;;  %v6216_v33 = vmul.f32 %v6208_v31, %v6131_v62 }
 0x57f   :  { %v6221_v32 = vadd.f32 %v6220_v40, %v6214_v63 }
 0x581   :  { %v6222_v35 = vadd.f32 %v6221_v32, %v6215_v48 }
 0x583   :  { %v6223_v36 = vadd.f32 %v6222_v35, %v6216_v33 }
 0x585   :  { %6224 = vadd.xlane.f32.xlu0 %v6223_v36 }
 0x612   :  { %v6225_v53 = vpop.xlane.xlu0 %6224 }
 0x613   :  { %v6233_v39 = vadd.f32 %v7047_v38, %v6225_v53 }
 0x615   :  { %7200 = vtanh.f32 %v6233_v39 }
 0x61f   :  { %v7201_v43 = vpop.eup %7200 }
 0x620   :  { %6236 = vst.msk [vmem:[%s9897_s11] sm:$0xff] %vm6235_vm2, %v7201_v43 }

</bundles_post_ra>
